<compile_context>
chip_gen: v5e
topology: v5e:2x2
jax: 0.10.0
libtpu: 0.0.40
codegen_flags: <defaults>
</compile_context>

<pallas_src>
import jax
import jax.numpy as jnp
import numpy as np
from jax import lax
from jax.experimental import pallas as pl
from jax.experimental.pallas import tpu as pltpu

EPS = 1e-5


def _round_up(x, m):
    return (x + m - 1) // m * m


def inception_compute_kernel(x_ref, wb_ref, wf_ref, wm_ref,
                             z_ref, stats_ref, zbpad_ref):
    # x_ref:     (L, C_in)        input slice for this batch element
    # wb_ref:    (C_in, Cb)       bottleneck 1x1 conv
    # wf_ref:    (K_max, Cb, 3F)  fused branch conv weights (taps on axis 0)
    # wm_ref:    (C_in, F)        1x1 conv after max-pool
    # z_ref:     (L, 4F)          pre-BatchNorm output block
    # stats_ref: (2, 4F)          row 0: sum over L, row 1: sum of squares
    # zbpad_ref: (pad + L + pad, Cb)  VMEM scratch, pad is 8-aligned
    L, C_in = x_ref.shape
    K_max, Cb, F3 = wf_ref.shape
    pad = (zbpad_ref.shape[0] - L) // 2          # static, multiple of 8
    base = pad - (K_max // 2)

    xn = x_ref[...]                              # (L, C_in)

    # --- bottleneck 1x1 conv (pointwise matmul) ---
    zb = jnp.dot(xn, wb_ref[...], preferred_element_type=jnp.float32)  # (L, Cb)

    # Zero only the halo rows (body rows fully overwritten below). Done every
    # grid step so it stays correct when the grid is sharded across cores.
    zbpad_ref[pl.ds(0, pad), :] = jnp.zeros((pad, Cb), jnp.float32)
    zbpad_ref[pl.ds(pad + L, pad), :] = jnp.zeros((pad, Cb), jnp.float32)
    zbpad_ref[pl.ds(pad, L), :] = zb             # aligned store (pad % 8 == 0)

    # --- fused "same" convolutions for the three branches ---
    # out[l, :] = sum_t zbpad[l + t + (pad - K_max//2), :] @ wf[t]
    acc = jnp.zeros((L, F3), jnp.float32)
    for t in range(K_max):                       # static unroll over 39 taps
        acc = acc + jnp.dot(zbpad_ref[pl.ds(base + t, L), :], wf_ref[t],
                            preferred_element_type=jnp.float32)

    # --- MaxPool1d(kernel=3, stride=1, padding=1) on the raw input ---
    # register-level sublane rotations (XLU) + boundary masks; no scratch.
    idx = lax.broadcasted_iota(jnp.int32, (L, C_in), 0)
    x_prev = jnp.where(idx == 0, -jnp.inf, pltpu.roll(xn, shift=1, axis=0))
    x_next = jnp.where(idx == L - 1, -jnp.inf,
                       pltpu.roll(xn, shift=L - 1, axis=0))
    mp = jnp.maximum(jnp.maximum(x_prev, xn), x_next)                  # (L, C_in)

    z4 = jnp.dot(mp, wm_ref[...], preferred_element_type=jnp.float32)  # (L, F)

    # single lane-dense (L, 4F) assembly / store (96 + 32 lanes)
    z_all = jnp.concatenate([acc, z4], axis=-1)  # (L, 4F)
    z_ref[...] = z_all

    # per-block BatchNorm statistics (reduced over the batch outside)
    s1 = jnp.sum(z_all, axis=0, keepdims=True)
    s2 = jnp.sum(z_all * z_all, axis=0, keepdims=True)
    stats_ref[...] = jnp.concatenate([s1, s2], axis=0)


def bn_relu_kernel(z_ref, scale_ref, bias_ref, y_ref):
    # z_ref: (L, 4F); scale/bias: (1, 4F); y_ref: (L, 4F)
    y_ref[...] = jnp.maximum(z_ref[...] * scale_ref[...] + bias_ref[...], 0.0)


def inception_forward(x_ncl, params):
    """x_ncl: (N, C_in, L) float32, PyTorch Conv1d layout. Returns (N, 4F, L)."""
    N, C_in, L = x_ncl.shape
    wb_t = params["wb"]                                   # (Cb, C_in, 1)
    w_branches = [params["w1"], params["w2"], params["w3"]]  # (F, Cb, Kx)
    wm_t = params["wm"]                                   # (F, C_in, 1)
    Cb = wb_t.shape[0]
    F = wm_t.shape[0]
    C_out = 4 * F
    K_max = max(w.shape[-1] for w in w_branches)
    pad = _round_up(K_max // 2, 8)       # 8-aligned halo -> aligned body store

    # ---- trace-time glue: channels-last layouts + fused branch weight ----
    x = jnp.transpose(x_ncl, (0, 2, 1))                   # (N, L, C_in)
    wb = jnp.transpose(wb_t[:, :, 0], (1, 0))             # (C_in, Cb)
    wm = jnp.transpose(wm_t[:, :, 0], (1, 0))             # (C_in, F)
    wf = jnp.zeros((K_max, Cb, 3 * F), jnp.float32)       # (K_max, Cb, 3F)
    for i, w in enumerate(w_branches):
        K = w.shape[-1]
        off = (K_max - K) // 2                            # center the taps
        wf = wf.at[off:off + K, :, i * F:(i + 1) * F].set(
            jnp.transpose(w, (2, 1, 0)))                  # (K, Cb, F)
    gamma = params["gamma"].astype(jnp.float32)
    beta = params["beta"].astype(jnp.float32)

    # ---- pass 1: branches + maxpool conv + per-block BN statistics ----
    z, stats = pl.pallas_call(
        inception_compute_kernel,
        out_shape=(
            jax.ShapeDtypeStruct((N, L, C_out), jnp.float32),
            jax.ShapeDtypeStruct((N, 2, C_out), jnp.float32),
        ),
        grid_spec=pltpu.PrefetchScalarGridSpec(
            num_scalar_prefetch=0,
            grid=(N,),
            in_specs=[
                pl.BlockSpec((None, L, C_in), lambda n: (n, 0, 0)),
                pl.BlockSpec((C_in, Cb), lambda n: (0, 0)),
                pl.BlockSpec((K_max, Cb, 3 * F), lambda n: (0, 0, 0)),
                pl.BlockSpec((C_in, F), lambda n: (0, 0)),
            ],
            out_specs=(
                pl.BlockSpec((None, L, C_out), lambda n: (n, 0, 0)),
                pl.BlockSpec((None, 2, C_out), lambda n: (n, 0, 0)),
            ),
            scratch_shapes=[pltpu.VMEM((L + 2 * pad, Cb), jnp.float32)],
        ),
        compiler_params=pltpu.CompilerParams(
            dimension_semantics=("parallel",)),
    )(x, wb, wf, wm)

    # ---- tiny batch reduction: training-mode BN scale / bias ----
    totals = jnp.sum(stats, axis=0)                       # (2, 4F)
    cnt = jnp.float32(N * L)
    mean = totals[0] / cnt
    var = jnp.maximum(totals[1] / cnt - mean * mean, 0.0)  # biased variance
    inv_std = lax.rsqrt(var + EPS)
    scale = (gamma * inv_std).reshape(1, C_out)
    bias = (beta - mean * gamma * inv_std).reshape(1, C_out)

    # ---- pass 2: normalize + affine + ReLU (lane-dense elementwise) ----
    y = pl.pallas_call(
        bn_relu_kernel,
        out_shape=jax.ShapeDtypeStruct((N, L, C_out), jnp.float32),
        grid_spec=pltpu.PrefetchScalarGridSpec(
            num_scalar_prefetch=0,
            grid=(N,),
            in_specs=[
                pl.BlockSpec((None, L, C_out), lambda n: (n, 0, 0)),
                pl.BlockSpec((1, C_out), lambda n: (0, 0)),
                pl.BlockSpec((1, C_out), lambda n: (0, 0)),
            ],
            out_specs=pl.BlockSpec((None, L, C_out), lambda n: (n, 0, 0)),
        ),
        compiler_params=pltpu.CompilerParams(
            dimension_semantics=("parallel",)),
    )(z, scale, bias)

    return jnp.transpose(y, (0, 2, 1))                    # back to (N, 4F, L)


def inception_reference(x, params):
    """Independent pure-JAX (XLA) reference in PyTorch NCL layout."""
    def conv1d(z, w, pad):
        dn = lax.conv_dimension_numbers(z.shape, w.shape, ("NCH", "OIH", "NCH"))
        return lax.conv_general_dilated(z, w, (1,), [(pad, pad)],
                                        dimension_numbers=dn)

    zb = conv1d(x, params["wb"], 0)
    z1 = conv1d(zb, params["w1"], params["w1"].shape[-1] // 2)
    z2 = conv1d(zb, params["w2"], params["w2"].shape[-1] // 2)
    z3 = conv1d(zb, params["w3"], params["w3"].shape[-1] // 2)
    mp = lax.reduce_window(x, -jnp.inf, lax.max,
                           (1, 1, 3), (1, 1, 1), [(0, 0), (0, 0), (1, 1)])
    z4 = conv1d(mp, params["wm"], 0)
    z = jnp.concatenate([z1, z2, z3, z4], axis=1)         # (N, 4F, L)
    mean = jnp.mean(z, axis=(0, 2), keepdims=True)
    var = jnp.mean((z - mean) ** 2, axis=(0, 2), keepdims=True)
    zhat = (z - mean) / jnp.sqrt(var + EPS)
    y = zhat * params["gamma"][None, :, None] + params["beta"][None, :, None]
    return jnp.maximum(y, 0.0)


if __name__ == "__main__":
    # Small, module-consistent shapes.
    N, C_in, L = 2, 4, 64
    n_filters = 32
    bottleneck_channels = 32
    kernel_sizes = [9, 19, 39]

    key = jax.random.PRNGKey(0)
    ks = jax.random.split(key, 8)
    params = {
        "wb": 0.1 * jax.random.normal(ks[0], (bottleneck_channels, C_in, 1), jnp.float32),
        "w1": 0.1 * jax.random.normal(ks[1], (n_filters, bottleneck_channels, kernel_sizes[0]), jnp.float32),
        "w2": 0.1 * jax.random.normal(ks[2], (n_filters, bottleneck_channels, kernel_sizes[1]), jnp.float32),
        "w3": 0.1 * jax.random.normal(ks[3], (n_filters, bottleneck_channels, kernel_sizes[2]), jnp.float32),
        "wm": 0.1 * jax.random.normal(ks[4], (n_filters, C_in, 1), jnp.float32),
        "gamma": 1.0 + 0.1 * jax.random.normal(ks[5], (4 * n_filters,), jnp.float32),
        "beta": 0.1 * jax.random.normal(ks[6], (4 * n_filters,), jnp.float32),
    }
    x = jax.random.normal(ks[7], (N, C_in, L), jnp.float32)

    out = jax.block_until_ready(jax.jit(inception_forward)(x, params))
    ref = jax.block_until_ready(inception_reference(x, params))

    assert out.shape == (N, 4 * n_filters, L), out.shape
    np.testing.assert_allclose(np.asarray(out), np.asarray(ref), rtol=2e-3, atol=2e-3)
    print("KERNEL_OK")
</pallas_src>

<mosaic_0001>
module attributes {stable_mosaic.version = 11 : i64} {
  func.func @inception_compute_kernel(%arg0: i32, %arg1: memref<1x64x4xf32, #tpu.memory_space<vmem>>, %arg2: memref<4x32xf32, #tpu.memory_space<vmem>>, %arg3: memref<39x32x96xf32, #tpu.memory_space<vmem>>, %arg4: memref<4x32xf32, #tpu.memory_space<vmem>>, %arg5: memref<1x64x128xf32, #tpu.memory_space<vmem>>, %arg6: memref<1x2x128xf32, #tpu.memory_space<vmem>>, %arg7: memref<112x32xf32, #tpu.memory_space<vmem>>) attributes {dimension_semantics = [#tpu.dimension_semantics<parallel>], iteration_bounds = array<i64: 2>, scalar_prefetch = 0 : i64, scratch_operands = 1 : i64, tpu.core_type = #tpu.core_type<tc>, window_params = [{transform_indices = @transform_0, window_bounds = array<i64: 1, 64, 4>}, {pipeline_mode = #tpu.pipeline_mode<synchronous>, transform_indices = @transform_1, window_bounds = array<i64: 4, 32>}, {pipeline_mode = #tpu.pipeline_mode<synchronous>, transform_indices = @transform_2, window_bounds = array<i64: 39, 32, 96>}, {pipeline_mode = #tpu.pipeline_mode<synchronous>, transform_indices = @transform_3, window_bounds = array<i64: 4, 32>}, {transform_indices = @transform_4, window_bounds = array<i64: 1, 64, 128>}, {transform_indices = @transform_5, window_bounds = array<i64: 1, 2, 128>}]} {
    %c0 = arith.constant 0 : index
    %c0_0 = arith.constant 0 : index
    %c0_1 = arith.constant 0 : index
    %0 = vector.load %arg1[%c0, %c0_0, %c0_1] : memref<1x64x4xf32, #tpu.memory_space<vmem>>, vector<1x64x4xf32>
    %1 = vector.shape_cast %0 : vector<1x64x4xf32> to vector<64x4xf32>
    %c0_2 = arith.constant 0 : index
    %c0_3 = arith.constant 0 : index
    %2 = vector.load %arg2[%c0_2, %c0_3] : memref<4x32xf32, #tpu.memory_space<vmem>>, vector<4x32xf32>
    %cst = arith.constant dense<0.000000e+00> : vector<64x32xf32>
    %3 = tpu.matmul %1, %2, %cst {dimension_numbers = #tpu.dot_dimension_numbers<[1], [0], [0], [1], [0, 0, 1, 1], [], []>} : vector<64x4xf32>, vector<4x32xf32>, vector<64x32xf32> -> vector<64x32xf32>
    %cst_4 = arith.constant 0.000000e+00 : f32
    %4 = vector.broadcast %cst_4 : f32 to vector<24x32xf32>
    %c0_5 = arith.constant 0 : index
    %c0_6 = arith.constant 0 : index
    %5 = vector.load %arg7[%c0_5, %c0_6] : memref<112x32xf32, #tpu.memory_space<vmem>>, vector<24x32xf32>
    tpu.vector_store %arg7[%c0_5, %c0_6], %4 {strides = array<i32>} : memref<112x32xf32, #tpu.memory_space<vmem>>, vector<24x32xf32>,
    %cst_7 = arith.constant 0.000000e+00 : f32
    %6 = vector.broadcast %cst_7 : f32 to vector<24x32xf32>
    %c88 = arith.constant 88 : index
    %c0_8 = arith.constant 0 : index
    %7 = vector.load %arg7[%c88, %c0_8] : memref<112x32xf32, #tpu.memory_space<vmem>>, vector<24x32xf32>
    tpu.vector_store %arg7[%c88, %c0_8], %6 {strides = array<i32>} : memref<112x32xf32, #tpu.memory_space<vmem>>, vector<24x32xf32>,
    %c24 = arith.constant 24 : index
    %c0_9 = arith.constant 0 : index
    %8 = vector.load %arg7[%c24, %c0_9] : memref<112x32xf32, #tpu.memory_space<vmem>>, vector<64x32xf32>
    tpu.vector_store %arg7[%c24, %c0_9], %3 {strides = array<i32>} : memref<112x32xf32, #tpu.memory_space<vmem>>, vector<64x32xf32>,
    %cst_10 = arith.constant 0.000000e+00 : f32
    %9 = vector.broadcast %cst_10 : f32 to vector<64x96xf32>
    %c5 = arith.constant 5 : index
    %c0_11 = arith.constant 0 : index
    %10 = vector.load %arg7[%c5, %c0_11] : memref<112x32xf32, #tpu.memory_space<vmem>>, vector<64x32xf32>
    %c0_12 = arith.constant 0 : index
    %c0_13 = arith.constant 0 : index
    %c0_14 = arith.constant 0 : index
    %11 = vector.load %arg3[%c0_12, %c0_13, %c0_14] : memref<39x32x96xf32, #tpu.memory_space<vmem>>, vector<1x32x96xf32>
    %12 = vector.shape_cast %11 : vector<1x32x96xf32> to vector<32x96xf32>
    %cst_15 = arith.constant dense<0.000000e+00> : vector<64x96xf32>
    %13 = tpu.matmul %10, %12, %cst_15 {dimension_numbers = #tpu.dot_dimension_numbers<[1], [0], [0], [1], [0, 0, 1, 1], [], []>} : vector<64x32xf32>, vector<32x96xf32>, vector<64x96xf32> -> vector<64x96xf32>
    %14 = arith.addf %9, %13 : vector<64x96xf32>
    %c6 = arith.constant 6 : index
    %c0_16 = arith.constant 0 : index
    %15 = vector.load %arg7[%c6, %c0_16] : memref<112x32xf32, #tpu.memory_space<vmem>>, vector<64x32xf32>
    %c1 = arith.constant 1 : index
    %c0_17 = arith.constant 0 : index
    %c0_18 = arith.constant 0 : index
    %16 = vector.load %arg3[%c1, %c0_17, %c0_18] : memref<39x32x96xf32, #tpu.memory_space<vmem>>, vector<1x32x96xf32>
    %17 = vector.shape_cast %16 : vector<1x32x96xf32> to vector<32x96xf32>
    %cst_19 = arith.constant dense<0.000000e+00> : vector<64x96xf32>
    %18 = tpu.matmul %15, %17, %cst_19 {dimension_numbers = #tpu.dot_dimension_numbers<[1], [0], [0], [1], [0, 0, 1, 1], [], []>} : vector<64x32xf32>, vector<32x96xf32>, vector<64x96xf32> -> vector<64x96xf32>
    %19 = arith.addf %14, %18 : vector<64x96xf32>
    %c7 = arith.constant 7 : index
    %c0_20 = arith.constant 0 : index
    %20 = vector.load %arg7[%c7, %c0_20] : memref<112x32xf32, #tpu.memory_space<vmem>>, vector<64x32xf32>
    %c2 = arith.constant 2 : index
    %c0_21 = arith.constant 0 : index
    %c0_22 = arith.constant 0 : index
    %21 = vector.load %arg3[%c2, %c0_21, %c0_22] : memref<39x32x96xf32, #tpu.memory_space<vmem>>, vector<1x32x96xf32>
    %22 = vector.shape_cast %21 : vector<1x32x96xf32> to vector<32x96xf32>
    %cst_23 = arith.constant dense<0.000000e+00> : vector<64x96xf32>
    %23 = tpu.matmul %20, %22, %cst_23 {dimension_numbers = #tpu.dot_dimension_numbers<[1], [0], [0], [1], [0, 0, 1, 1], [], []>} : vector<64x32xf32>, vector<32x96xf32>, vector<64x96xf32> -> vector<64x96xf32>
    %24 = arith.addf %19, %23 : vector<64x96xf32>
    %c8 = arith.constant 8 : index
    %c0_24 = arith.constant 0 : index
    %25 = vector.load %arg7[%c8, %c0_24] : memref<112x32xf32, #tpu.memory_space<vmem>>, vector<64x32xf32>
    %c3 = arith.constant 3 : index
    %c0_25 = arith.constant 0 : index
    %c0_26 = arith.constant 0 : index
    %26 = vector.load %arg3[%c3, %c0_25, %c0_26] : memref<39x32x96xf32, #tpu.memory_space<vmem>>, vector<1x32x96xf32>
    %27 = vector.shape_cast %26 : vector<1x32x96xf32> to vector<32x96xf32>
    %cst_27 = arith.constant dense<0.000000e+00> : vector<64x96xf32>
    %28 = tpu.matmul %25, %27, %cst_27 {dimension_numbers = #tpu.dot_dimension_numbers<[1], [0], [0], [1], [0, 0, 1, 1], [], []>} : vector<64x32xf32>, vector<32x96xf32>, vector<64x96xf32> -> vector<64x96xf32>
    %29 = arith.addf %24, %28 : vector<64x96xf32>
    %c9 = arith.constant 9 : index
    %c0_28 = arith.constant 0 : index
    %30 = vector.load %arg7[%c9, %c0_28] : memref<112x32xf32, #tpu.memory_space<vmem>>, vector<64x32xf32>
    %c4 = arith.constant 4 : index
    %c0_29 = arith.constant 0 : index
    %c0_30 = arith.constant 0 : index
    %31 = vector.load %arg3[%c4, %c0_29, %c0_30] : memref<39x32x96xf32, #tpu.memory_space<vmem>>, vector<1x32x96xf32>
    %32 = vector.shape_cast %31 : vector<1x32x96xf32> to vector<32x96xf32>
    %cst_31 = arith.constant dense<0.000000e+00> : vector<64x96xf32>
    %33 = tpu.matmul %30, %32, %cst_31 {dimension_numbers = #tpu.dot_dimension_numbers<[1], [0], [0], [1], [0, 0, 1, 1], [], []>} : vector<64x32xf32>, vector<32x96xf32>, vector<64x96xf32> -> vector<64x96xf32>
    %34 = arith.addf %29, %33 : vector<64x96xf32>
    %c10 = arith.constant 10 : index
    %c0_32 = arith.constant 0 : index
    %35 = vector.load %arg7[%c10, %c0_32] : memref<112x32xf32, #tpu.memory_space<vmem>>, vector<64x32xf32>
    %c5_33 = arith.constant 5 : index
    %c0_34 = arith.constant 0 : index
    %c0_35 = arith.constant 0 : index
    %36 = vector.load %arg3[%c5_33, %c0_34, %c0_35] : memref<39x32x96xf32, #tpu.memory_space<vmem>>, vector<1x32x96xf32>
    %37 = vector.shape_cast %36 : vector<1x32x96xf32> to vector<32x96xf32>
    %cst_36 = arith.constant dense<0.000000e+00> : vector<64x96xf32>
    %38 = tpu.matmul %35, %37, %cst_36 {dimension_numbers = #tpu.dot_dimension_numbers<[1], [0], [0], [1], [0, 0, 1, 1], [], []>} : vector<64x32xf32>, vector<32x96xf32>, vector<64x96xf32> -> vector<64x96xf32>
    %39 = arith.addf %34, %38 : vector<64x96xf32>
    %c11 = arith.constant 11 : index
    %c0_37 = arith.constant 0 : index
    %40 = vector.load %arg7[%c11, %c0_37] : memref<112x32xf32, #tpu.memory_space<vmem>>, vector<64x32xf32>
    %c6_38 = arith.constant 6 : index
    %c0_39 = arith.constant 0 : index
    %c0_40 = arith.constant 0 : index
    %41 = vector.load %arg3[%c6_38, %c0_39, %c0_40] : memref<39x32x96xf32, #tpu.memory_space<vmem>>, vector<1x32x96xf32>
    %42 = vector.shape_cast %41 : vector<1x32x96xf32> to vector<32x96xf32>
    %cst_41 = arith.constant dense<0.000000e+00> : vector<64x96xf32>
    %43 = tpu.matmul %40, %42, %cst_41 {dimension_numbers = #tpu.dot_dimension_numbers<[1], [0], [0], [1], [0, 0, 1, 1], [], []>} : vector<64x32xf32>, vector<32x96xf32>, vector<64x96xf32> -> vector<64x96xf32>
    %44 = arith.addf %39, %43 : vector<64x96xf32>
    %c12 = arith.constant 12 : index
    %c0_42 = arith.constant 0 : index
    %45 = vector.load %arg7[%c12, %c0_42] : memref<112x32xf32, #tpu.memory_space<vmem>>, vector<64x32xf32>
    %c7_43 = arith.constant 7 : index
    %c0_44 = arith.constant 0 : index
    %c0_45 = arith.constant 0 : index
    %46 = vector.load %arg3[%c7_43, %c0_44, %c0_45] : memref<39x32x96xf32, #tpu.memory_space<vmem>>, vector<1x32x96xf32>
    %47 = vector.shape_cast %46 : vector<1x32x96xf32> to vector<32x96xf32>
    %cst_46 = arith.constant dense<0.000000e+00> : vector<64x96xf32>
    %48 = tpu.matmul %45, %47, %cst_46 {dimension_numbers = #tpu.dot_dimension_numbers<[1], [0], [0], [1], [0, 0, 1, 1], [], []>} : vector<64x32xf32>, vector<32x96xf32>, vector<64x96xf32> -> vector<64x96xf32>
    %49 = arith.addf %44, %48 : vector<64x96xf32>
    %c13 = arith.constant 13 : index
    %c0_47 = arith.constant 0 : index
    %50 = vector.load %arg7[%c13, %c0_47] : memref<112x32xf32, #tpu.memory_space<vmem>>, vector<64x32xf32>
    %c8_48 = arith.constant 8 : index
    %c0_49 = arith.constant 0 : index
    %c0_50 = arith.constant 0 : index
    %51 = vector.load %arg3[%c8_48, %c0_49, %c0_50] : memref<39x32x96xf32, #tpu.memory_space<vmem>>, vector<1x32x96xf32>
    %52 = vector.shape_cast %51 : vector<1x32x96xf32> to vector<32x96xf32>
    %cst_51 = arith.constant dense<0.000000e+00> : vector<64x96xf32>
    %53 = tpu.matmul %50, %52, %cst_51 {dimension_numbers = #tpu.dot_dimension_numbers<[1], [0], [0], [1], [0, 0, 1, 1], [], []>} : vector<64x32xf32>, vector<32x96xf32>, vector<64x96xf32> -> vector<64x96xf32>
    %54 = arith.addf %49, %53 : vector<64x96xf32>
    %c14 = arith.constant 14 : index
    %c0_52 = arith.constant 0 : index
    %55 = vector.load %arg7[%c14, %c0_52] : memref<112x32xf32, #tpu.memory_space<vmem>>, vector<64x32xf32>
    %c9_53 = arith.constant 9 : index
    %c0_54 = arith.constant 0 : index
    %c0_55 = arith.constant 0 : index
    %56 = vector.load %arg3[%c9_53, %c0_54, %c0_55] : memref<39x32x96xf32, #tpu.memory_space<vmem>>, vector<1x32x96xf32>
    %57 = vector.shape_cast %56 : vector<1x32x96xf32> to vector<32x96xf32>
    %cst_56 = arith.constant dense<0.000000e+00> : vector<64x96xf32>
    %58 = tpu.matmul %55, %57, %cst_56 {dimension_numbers = #tpu.dot_dimension_numbers<[1], [0], [0], [1], [0, 0, 1, 1], [], []>} : vector<64x32xf32>, vector<32x96xf32>, vector<64x96xf32> -> vector<64x96xf32>
    %59 = arith.addf %54, %58 : vector<64x96xf32>
    %c15 = arith.constant 15 : index
    %c0_57 = arith.constant 0 : index
    %60 = vector.load %arg7[%c15, %c0_57] : memref<112x32xf32, #tpu.memory_space<vmem>>, vector<64x32xf32>
    %c10_58 = arith.constant 10 : index
    %c0_59 = arith.constant 0 : index
    %c0_60 = arith.constant 0 : index
    %61 = vector.load %arg3[%c10_58, %c0_59, %c0_60] : memref<39x32x96xf32, #tpu.memory_space<vmem>>, vector<1x32x96xf32>
    %62 = vector.shape_cast %61 : vector<1x32x96xf32> to vector<32x96xf32>
    %cst_61 = arith.constant dense<0.000000e+00> : vector<64x96xf32>
    %63 = tpu.matmul %60, %62, %cst_61 {dimension_numbers = #tpu.dot_dimension_numbers<[1], [0], [0], [1], [0, 0, 1, 1], [], []>} : vector<64x32xf32>, vector<32x96xf32>, vector<64x96xf32> -> vector<64x96xf32>
    %64 = arith.addf %59, %63 : vector<64x96xf32>
    %c16 = arith.constant 16 : index
    %c0_62 = arith.constant 0 : index
    %65 = vector.load %arg7[%c16, %c0_62] : memref<112x32xf32, #tpu.memory_space<vmem>>, vector<64x32xf32>
    %c11_63 = arith.constant 11 : index
    %c0_64 = arith.constant 0 : index
    %c0_65 = arith.constant 0 : index
    %66 = vector.load %arg3[%c11_63, %c0_64, %c0_65] : memref<39x32x96xf32, #tpu.memory_space<vmem>>, vector<1x32x96xf32>
    %67 = vector.shape_cast %66 : vector<1x32x96xf32> to vector<32x96xf32>
    %cst_66 = arith.constant dense<0.000000e+00> : vector<64x96xf32>
    %68 = tpu.matmul %65, %67, %cst_66 {dimension_numbers = #tpu.dot_dimension_numbers<[1], [0], [0], [1], [0, 0, 1, 1], [], []>} : vector<64x32xf32>, vector<32x96xf32>, vector<64x96xf32> -> vector<64x96xf32>
    %69 = arith.addf %64, %68 : vector<64x96xf32>
    %c17 = arith.constant 17 : index
    %c0_67 = arith.constant 0 : index
    %70 = vector.load %arg7[%c17, %c0_67] : memref<112x32xf32, #tpu.memory_space<vmem>>, vector<64x32xf32>
    %c12_68 = arith.constant 12 : index
    %c0_69 = arith.constant 0 : index
    %c0_70 = arith.constant 0 : index
    %71 = vector.load %arg3[%c12_68, %c0_69, %c0_70] : memref<39x32x96xf32, #tpu.memory_space<vmem>>, vector<1x32x96xf32>
    %72 = vector.shape_cast %71 : vector<1x32x96xf32> to vector<32x96xf32>
    %cst_71 = arith.constant dense<0.000000e+00> : vector<64x96xf32>
    %73 = tpu.matmul %70, %72, %cst_71 {dimension_numbers = #tpu.dot_dimension_numbers<[1], [0], [0], [1], [0, 0, 1, 1], [], []>} : vector<64x32xf32>, vector<32x96xf32>, vector<64x96xf32> -> vector<64x96xf32>
    %74 = arith.addf %69, %73 : vector<64x96xf32>
    %c18 = arith.constant 18 : index
    %c0_72 = arith.constant 0 : index
    %75 = vector.load %arg7[%c18, %c0_72] : memref<112x32xf32, #tpu.memory_space<vmem>>, vector<64x32xf32>
    %c13_73 = arith.constant 13 : index
    %c0_74 = arith.constant 0 : index
    %c0_75 = arith.constant 0 : index
    %76 = vector.load %arg3[%c13_73, %c0_74, %c0_75] : memref<39x32x96xf32, #tpu.memory_space<vmem>>, vector<1x32x96xf32>
    %77 = vector.shape_cast %76 : vector<1x32x96xf32> to vector<32x96xf32>
    %cst_76 = arith.constant dense<0.000000e+00> : vector<64x96xf32>
    %78 = tpu.matmul %75, %77, %cst_76 {dimension_numbers = #tpu.dot_dimension_numbers<[1], [0], [0], [1], [0, 0, 1, 1], [], []>} : vector<64x32xf32>, vector<32x96xf32>, vector<64x96xf32> -> vector<64x96xf32>
    %79 = arith.addf %74, %78 : vector<64x96xf32>
    %c19 = arith.constant 19 : index
    %c0_77 = arith.constant 0 : index
    %80 = vector.load %arg7[%c19, %c0_77] : memref<112x32xf32, #tpu.memory_space<vmem>>, vector<64x32xf32>
    %c14_78 = arith.constant 14 : index
    %c0_79 = arith.constant 0 : index
    %c0_80 = arith.constant 0 : index
    %81 = vector.load %arg3[%c14_78, %c0_79, %c0_80] : memref<39x32x96xf32, #tpu.memory_space<vmem>>, vector<1x32x96xf32>
    %82 = vector.shape_cast %81 : vector<1x32x96xf32> to vector<32x96xf32>
    %cst_81 = arith.constant dense<0.000000e+00> : vector<64x96xf32>
    %83 = tpu.matmul %80, %82, %cst_81 {dimension_numbers = #tpu.dot_dimension_numbers<[1], [0], [0], [1], [0, 0, 1, 1], [], []>} : vector<64x32xf32>, vector<32x96xf32>, vector<64x96xf32> -> vector<64x96xf32>
    %84 = arith.addf %79, %83 : vector<64x96xf32>
    %c20 = arith.constant 20 : index
    %c0_82 = arith.constant 0 : index
    %85 = vector.load %arg7[%c20, %c0_82] : memref<112x32xf32, #tpu.memory_space<vmem>>, vector<64x32xf32>
    %c15_83 = arith.constant 15 : index
    %c0_84 = arith.constant 0 : index
    %c0_85 = arith.constant 0 : index
    %86 = vector.load %arg3[%c15_83, %c0_84, %c0_85] : memref<39x32x96xf32, #tpu.memory_space<vmem>>, vector<1x32x96xf32>
    %87 = vector.shape_cast %86 : vector<1x32x96xf32> to vector<32x96xf32>
    %cst_86 = arith.constant dense<0.000000e+00> : vector<64x96xf32>
    %88 = tpu.matmul %85, %87, %cst_86 {dimension_numbers = #tpu.dot_dimension_numbers<[1], [0], [0], [1], [0, 0, 1, 1], [], []>} : vector<64x32xf32>, vector<32x96xf32>, vector<64x96xf32> -> vector<64x96xf32>
    %89 = arith.addf %84, %88 : vector<64x96xf32>
    %c21 = arith.constant 21 : index
    %c0_87 = arith.constant 0 : index
    %90 = vector.load %arg7[%c21, %c0_87] : memref<112x32xf32, #tpu.memory_space<vmem>>, vector<64x32xf32>
    %c16_88 = arith.constant 16 : index
    %c0_89 = arith.constant 0 : index
    %c0_90 = arith.constant 0 : index
    %91 = vector.load %arg3[%c16_88, %c0_89, %c0_90] : memref<39x32x96xf32, #tpu.memory_space<vmem>>, vector<1x32x96xf32>
    %92 = vector.shape_cast %91 : vector<1x32x96xf32> to vector<32x96xf32>
    %cst_91 = arith.constant dense<0.000000e+00> : vector<64x96xf32>
    %93 = tpu.matmul %90, %92, %cst_91 {dimension_numbers = #tpu.dot_dimension_numbers<[1], [0], [0], [1], [0, 0, 1, 1], [], []>} : vector<64x32xf32>, vector<32x96xf32>, vector<64x96xf32> -> vector<64x96xf32>
    %94 = arith.addf %89, %93 : vector<64x96xf32>
    %c22 = arith.constant 22 : index
    %c0_92 = arith.constant 0 : index
    %95 = vector.load %arg7[%c22, %c0_92] : memref<112x32xf32, #tpu.memory_space<vmem>>, vector<64x32xf32>
    %c17_93 = arith.constant 17 : index
    %c0_94 = arith.constant 0 : index
    %c0_95 = arith.constant 0 : index
    %96 = vector.load %arg3[%c17_93, %c0_94, %c0_95] : memref<39x32x96xf32, #tpu.memory_space<vmem>>, vector<1x32x96xf32>
    %97 = vector.shape_cast %96 : vector<1x32x96xf32> to vector<32x96xf32>
    %cst_96 = arith.constant dense<0.000000e+00> : vector<64x96xf32>
    %98 = tpu.matmul %95, %97, %cst_96 {dimension_numbers = #tpu.dot_dimension_numbers<[1], [0], [0], [1], [0, 0, 1, 1], [], []>} : vector<64x32xf32>, vector<32x96xf32>, vector<64x96xf32> -> vector<64x96xf32>
    %99 = arith.addf %94, %98 : vector<64x96xf32>
    %c23 = arith.constant 23 : index
    %c0_97 = arith.constant 0 : index
    %100 = vector.load %arg7[%c23, %c0_97] : memref<112x32xf32, #tpu.memory_space<vmem>>, vector<64x32xf32>
    %c18_98 = arith.constant 18 : index
    %c0_99 = arith.constant 0 : index
    %c0_100 = arith.constant 0 : index
    %101 = vector.load %arg3[%c18_98, %c0_99, %c0_100] : memref<39x32x96xf32, #tpu.memory_space<vmem>>, vector<1x32x96xf32>
    %102 = vector.shape_cast %101 : vector<1x32x96xf32> to vector<32x96xf32>
    %cst_101 = arith.constant dense<0.000000e+00> : vector<64x96xf32>
    %103 = tpu.matmul %100, %102, %cst_101 {dimension_numbers = #tpu.dot_dimension_numbers<[1], [0], [0], [1], [0, 0, 1, 1], [], []>} : vector<64x32xf32>, vector<32x96xf32>, vector<64x96xf32> -> vector<64x96xf32>
    %104 = arith.addf %99, %103 : vector<64x96xf32>
    %c24_102 = arith.constant 24 : index
    %c0_103 = arith.constant 0 : index
    %105 = vector.load %arg7[%c24_102, %c0_103] : memref<112x32xf32, #tpu.memory_space<vmem>>, vector<64x32xf32>
    %c19_104 = arith.constant 19 : index
    %c0_105 = arith.constant 0 : index
    %c0_106 = arith.constant 0 : index
    %106 = vector.load %arg3[%c19_104, %c0_105, %c0_106] : memref<39x32x96xf32, #tpu.memory_space<vmem>>, vector<1x32x96xf32>
    %107 = vector.shape_cast %106 : vector<1x32x96xf32> to vector<32x96xf32>
    %cst_107 = arith.constant dense<0.000000e+00> : vector<64x96xf32>
    %108 = tpu.matmul %105, %107, %cst_107 {dimension_numbers = #tpu.dot_dimension_numbers<[1], [0], [0], [1], [0, 0, 1, 1], [], []>} : vector<64x32xf32>, vector<32x96xf32>, vector<64x96xf32> -> vector<64x96xf32>
    %109 = arith.addf %104, %108 : vector<64x96xf32>
    %c25 = arith.constant 25 : index
    %c0_108 = arith.constant 0 : index
    %110 = vector.load %arg7[%c25, %c0_108] : memref<112x32xf32, #tpu.memory_space<vmem>>, vector<64x32xf32>
    %c20_109 = arith.constant 20 : index
    %c0_110 = arith.constant 0 : index
    %c0_111 = arith.constant 0 : index
    %111 = vector.load %arg3[%c20_109, %c0_110, %c0_111] : memref<39x32x96xf32, #tpu.memory_space<vmem>>, vector<1x32x96xf32>
    %112 = vector.shape_cast %111 : vector<1x32x96xf32> to vector<32x96xf32>
    %cst_112 = arith.constant dense<0.000000e+00> : vector<64x96xf32>
    %113 = tpu.matmul %110, %112, %cst_112 {dimension_numbers = #tpu.dot_dimension_numbers<[1], [0], [0], [1], [0, 0, 1, 1], [], []>} : vector<64x32xf32>, vector<32x96xf32>, vector<64x96xf32> -> vector<64x96xf32>
    %114 = arith.addf %109, %113 : vector<64x96xf32>
    %c26 = arith.constant 26 : index
    %c0_113 = arith.constant 0 : index
    %115 = vector.load %arg7[%c26, %c0_113] : memref<112x32xf32, #tpu.memory_space<vmem>>, vector<64x32xf32>
    %c21_114 = arith.constant 21 : index
    %c0_115 = arith.constant 0 : index
    %c0_116 = arith.constant 0 : index
    %116 = vector.load %arg3[%c21_114, %c0_115, %c0_116] : memref<39x32x96xf32, #tpu.memory_space<vmem>>, vector<1x32x96xf32>
    %117 = vector.shape_cast %116 : vector<1x32x96xf32> to vector<32x96xf32>
    %cst_117 = arith.constant dense<0.000000e+00> : vector<64x96xf32>
    %118 = tpu.matmul %115, %117, %cst_117 {dimension_numbers = #tpu.dot_dimension_numbers<[1], [0], [0], [1], [0, 0, 1, 1], [], []>} : vector<64x32xf32>, vector<32x96xf32>, vector<64x96xf32> -> vector<64x96xf32>
    %119 = arith.addf %114, %118 : vector<64x96xf32>
    %c27 = arith.constant 27 : index
    %c0_118 = arith.constant 0 : index
    %120 = vector.load %arg7[%c27, %c0_118] : memref<112x32xf32, #tpu.memory_space<vmem>>, vector<64x32xf32>
    %c22_119 = arith.constant 22 : index
    %c0_120 = arith.constant 0 : index
    %c0_121 = arith.constant 0 : index
    %121 = vector.load %arg3[%c22_119, %c0_120, %c0_121] : memref<39x32x96xf32, #tpu.memory_space<vmem>>, vector<1x32x96xf32>
    %122 = vector.shape_cast %121 : vector<1x32x96xf32> to vector<32x96xf32>
    %cst_122 = arith.constant dense<0.000000e+00> : vector<64x96xf32>
    %123 = tpu.matmul %120, %122, %cst_122 {dimension_numbers = #tpu.dot_dimension_numbers<[1], [0], [0], [1], [0, 0, 1, 1], [], []>} : vector<64x32xf32>, vector<32x96xf32>, vector<64x96xf32> -> vector<64x96xf32>
    %124 = arith.addf %119, %123 : vector<64x96xf32>
    %c28 = arith.constant 28 : index
    %c0_123 = arith.constant 0 : index
    %125 = vector.load %arg7[%c28, %c0_123] : memref<112x32xf32, #tpu.memory_space<vmem>>, vector<64x32xf32>
    %c23_124 = arith.constant 23 : index
    %c0_125 = arith.constant 0 : index
    %c0_126 = arith.constant 0 : index
    %126 = vector.load %arg3[%c23_124, %c0_125, %c0_126] : memref<39x32x96xf32, #tpu.memory_space<vmem>>, vector<1x32x96xf32>
    %127 = vector.shape_cast %126 : vector<1x32x96xf32> to vector<32x96xf32>
    %cst_127 = arith.constant dense<0.000000e+00> : vector<64x96xf32>
    %128 = tpu.matmul %125, %127, %cst_127 {dimension_numbers = #tpu.dot_dimension_numbers<[1], [0], [0], [1], [0, 0, 1, 1], [], []>} : vector<64x32xf32>, vector<32x96xf32>, vector<64x96xf32> -> vector<64x96xf32>
    %129 = arith.addf %124, %128 : vector<64x96xf32>
    %c29 = arith.constant 29 : index
    %c0_128 = arith.constant 0 : index
    %130 = vector.load %arg7[%c29, %c0_128] : memref<112x32xf32, #tpu.memory_space<vmem>>, vector<64x32xf32>
    %c24_129 = arith.constant 24 : index
    %c0_130 = arith.constant 0 : index
    %c0_131 = arith.constant 0 : index
    %131 = vector.load %arg3[%c24_129, %c0_130, %c0_131] : memref<39x32x96xf32, #tpu.memory_space<vmem>>, vector<1x32x96xf32>
    %132 = vector.shape_cast %131 : vector<1x32x96xf32> to vector<32x96xf32>
    %cst_132 = arith.constant dense<0.000000e+00> : vector<64x96xf32>
    %133 = tpu.matmul %130, %132, %cst_132 {dimension_numbers = #tpu.dot_dimension_numbers<[1], [0], [0], [1], [0, 0, 1, 1], [], []>} : vector<64x32xf32>, vector<32x96xf32>, vector<64x96xf32> -> vector<64x96xf32>
    %134 = arith.addf %129, %133 : vector<64x96xf32>
    %c30 = arith.constant 30 : index
    %c0_133 = arith.constant 0 : index
    %135 = vector.load %arg7[%c30, %c0_133] : memref<112x32xf32, #tpu.memory_space<vmem>>, vector<64x32xf32>
    %c25_134 = arith.constant 25 : index
    %c0_135 = arith.constant 0 : index
    %c0_136 = arith.constant 0 : index
    %136 = vector.load %arg3[%c25_134, %c0_135, %c0_136] : memref<39x32x96xf32, #tpu.memory_space<vmem>>, vector<1x32x96xf32>
    %137 = vector.shape_cast %136 : vector<1x32x96xf32> to vector<32x96xf32>
    %cst_137 = arith.constant dense<0.000000e+00> : vector<64x96xf32>
    %138 = tpu.matmul %135, %137, %cst_137 {dimension_numbers = #tpu.dot_dimension_numbers<[1], [0], [0], [1], [0, 0, 1, 1], [], []>} : vector<64x32xf32>, vector<32x96xf32>, vector<64x96xf32> -> vector<64x96xf32>
    %139 = arith.addf %134, %138 : vector<64x96xf32>
    %c31 = arith.constant 31 : index
    %c0_138 = arith.constant 0 : index
    %140 = vector.load %arg7[%c31, %c0_138] : memref<112x32xf32, #tpu.memory_space<vmem>>, vector<64x32xf32>
    %c26_139 = arith.constant 26 : index
    %c0_140 = arith.constant 0 : index
    %c0_141 = arith.constant 0 : index
    %141 = vector.load %arg3[%c26_139, %c0_140, %c0_141] : memref<39x32x96xf32, #tpu.memory_space<vmem>>, vector<1x32x96xf32>
    %142 = vector.shape_cast %141 : vector<1x32x96xf32> to vector<32x96xf32>
    %cst_142 = arith.constant dense<0.000000e+00> : vector<64x96xf32>
    %143 = tpu.matmul %140, %142, %cst_142 {dimension_numbers = #tpu.dot_dimension_numbers<[1], [0], [0], [1], [0, 0, 1, 1], [], []>} : vector<64x32xf32>, vector<32x96xf32>, vector<64x96xf32> -> vector<64x96xf32>
    %144 = arith.addf %139, %143 : vector<64x96xf32>
    %c32 = arith.constant 32 : index
    %c0_143 = arith.constant 0 : index
    %145 = vector.load %arg7[%c32, %c0_143] : memref<112x32xf32, #tpu.memory_space<vmem>>, vector<64x32xf32>
    %c27_144 = arith.constant 27 : index
    %c0_145 = arith.constant 0 : index
    %c0_146 = arith.constant 0 : index
    %146 = vector.load %arg3[%c27_144, %c0_145, %c0_146] : memref<39x32x96xf32, #tpu.memory_space<vmem>>, vector<1x32x96xf32>
    %147 = vector.shape_cast %146 : vector<1x32x96xf32> to vector<32x96xf32>
    %cst_147 = arith.constant dense<0.000000e+00> : vector<64x96xf32>
    %148 = tpu.matmul %145, %147, %cst_147 {dimension_numbers = #tpu.dot_dimension_numbers<[1], [0], [0], [1], [0, 0, 1, 1], [], []>} : vector<64x32xf32>, vector<32x96xf32>, vector<64x96xf32> -> vector<64x96xf32>
    %149 = arith.addf %144, %148 : vector<64x96xf32>
    %c33 = arith.constant 33 : index
    %c0_148 = arith.constant 0 : index
    %150 = vector.load %arg7[%c33, %c0_148] : memref<112x32xf32, #tpu.memory_space<vmem>>, vector<64x32xf32>
    %c28_149 = arith.constant 28 : index
    %c0_150 = arith.constant 0 : index
    %c0_151 = arith.constant 0 : index
    %151 = vector.load %arg3[%c28_149, %c0_150, %c0_151] : memref<39x32x96xf32, #tpu.memory_space<vmem>>, vector<1x32x96xf32>
    %152 = vector.shape_cast %151 : vector<1x32x96xf32> to vector<32x96xf32>
    %cst_152 = arith.constant dense<0.000000e+00> : vector<64x96xf32>
    %153 = tpu.matmul %150, %152, %cst_152 {dimension_numbers = #tpu.dot_dimension_numbers<[1], [0], [0], [1], [0, 0, 1, 1], [], []>} : vector<64x32xf32>, vector<32x96xf32>, vector<64x96xf32> -> vector<64x96xf32>
    %154 = arith.addf %149, %153 : vector<64x96xf32>
    %c34 = arith.constant 34 : index
    %c0_153 = arith.constant 0 : index
    %155 = vector.load %arg7[%c34, %c0_153] : memref<112x32xf32, #tpu.memory_space<vmem>>, vector<64x32xf32>
    %c29_154 = arith.constant 29 : index
    %c0_155 = arith.constant 0 : index
    %c0_156 = arith.constant 0 : index
    %156 = vector.load %arg3[%c29_154, %c0_155, %c0_156] : memref<39x32x96xf32, #tpu.memory_space<vmem>>, vector<1x32x96xf32>
    %157 = vector.shape_cast %156 : vector<1x32x96xf32> to vector<32x96xf32>
    %cst_157 = arith.constant dense<0.000000e+00> : vector<64x96xf32>
    %158 = tpu.matmul %155, %157, %cst_157 {dimension_numbers = #tpu.dot_dimension_numbers<[1], [0], [0], [1], [0, 0, 1, 1], [], []>} : vector<64x32xf32>, vector<32x96xf32>, vector<64x96xf32> -> vector<64x96xf32>
    %159 = arith.addf %154, %158 : vector<64x96xf32>
    %c35 = arith.constant 35 : index
    %c0_158 = arith.constant 0 : index
    %160 = vector.load %arg7[%c35, %c0_158] : memref<112x32xf32, #tpu.memory_space<vmem>>, vector<64x32xf32>
    %c30_159 = arith.constant 30 : index
    %c0_160 = arith.constant 0 : index
    %c0_161 = arith.constant 0 : index
    %161 = vector.load %arg3[%c30_159, %c0_160, %c0_161] : memref<39x32x96xf32, #tpu.memory_space<vmem>>, vector<1x32x96xf32>
    %162 = vector.shape_cast %161 : vector<1x32x96xf32> to vector<32x96xf32>
    %cst_162 = arith.constant dense<0.000000e+00> : vector<64x96xf32>
    %163 = tpu.matmul %160, %162, %cst_162 {dimension_numbers = #tpu.dot_dimension_numbers<[1], [0], [0], [1], [0, 0, 1, 1], [], []>} : vector<64x32xf32>, vector<32x96xf32>, vector<64x96xf32> -> vector<64x96xf32>
    %164 = arith.addf %159, %163 : vector<64x96xf32>
    %c36 = arith.constant 36 : index
    %c0_163 = arith.constant 0 : index
    %165 = vector.load %arg7[%c36, %c0_163] : memref<112x32xf32, #tpu.memory_space<vmem>>, vector<64x32xf32>
    %c31_164 = arith.constant 31 : index
    %c0_165 = arith.constant 0 : index
    %c0_166 = arith.constant 0 : index
    %166 = vector.load %arg3[%c31_164, %c0_165, %c0_166] : memref<39x32x96xf32, #tpu.memory_space<vmem>>, vector<1x32x96xf32>
    %167 = vector.shape_cast %166 : vector<1x32x96xf32> to vector<32x96xf32>
    %cst_167 = arith.constant dense<0.000000e+00> : vector<64x96xf32>
    %168 = tpu.matmul %165, %167, %cst_167 {dimension_numbers = #tpu.dot_dimension_numbers<[1], [0], [0], [1], [0, 0, 1, 1], [], []>} : vector<64x32xf32>, vector<32x96xf32>, vector<64x96xf32> -> vector<64x96xf32>
    %169 = arith.addf %164, %168 : vector<64x96xf32>
    %c37 = arith.constant 37 : index
    %c0_168 = arith.constant 0 : index
    %170 = vector.load %arg7[%c37, %c0_168] : memref<112x32xf32, #tpu.memory_space<vmem>>, vector<64x32xf32>
    %c32_169 = arith.constant 32 : index
    %c0_170 = arith.constant 0 : index
    %c0_171 = arith.constant 0 : index
    %171 = vector.load %arg3[%c32_169, %c0_170, %c0_171] : memref<39x32x96xf32, #tpu.memory_space<vmem>>, vector<1x32x96xf32>
    %172 = vector.shape_cast %171 : vector<1x32x96xf32> to vector<32x96xf32>
    %cst_172 = arith.constant dense<0.000000e+00> : vector<64x96xf32>
    %173 = tpu.matmul %170, %172, %cst_172 {dimension_numbers = #tpu.dot_dimension_numbers<[1], [0], [0], [1], [0, 0, 1, 1], [], []>} : vector<64x32xf32>, vector<32x96xf32>, vector<64x96xf32> -> vector<64x96xf32>
    %174 = arith.addf %169, %173 : vector<64x96xf32>
    %c38 = arith.constant 38 : index
    %c0_173 = arith.constant 0 : index
    %175 = vector.load %arg7[%c38, %c0_173] : memref<112x32xf32, #tpu.memory_space<vmem>>, vector<64x32xf32>
    %c33_174 = arith.constant 33 : index
    %c0_175 = arith.constant 0 : index
    %c0_176 = arith.constant 0 : index
    %176 = vector.load %arg3[%c33_174, %c0_175, %c0_176] : memref<39x32x96xf32, #tpu.memory_space<vmem>>, vector<1x32x96xf32>
    %177 = vector.shape_cast %176 : vector<1x32x96xf32> to vector<32x96xf32>
    %cst_177 = arith.constant dense<0.000000e+00> : vector<64x96xf32>
    %178 = tpu.matmul %175, %177, %cst_177 {dimension_numbers = #tpu.dot_dimension_numbers<[1], [0], [0], [1], [0, 0, 1, 1], [], []>} : vector<64x32xf32>, vector<32x96xf32>, vector<64x96xf32> -> vector<64x96xf32>
    %179 = arith.addf %174, %178 : vector<64x96xf32>
    %c39 = arith.constant 39 : index
    %c0_178 = arith.constant 0 : index
    %180 = vector.load %arg7[%c39, %c0_178] : memref<112x32xf32, #tpu.memory_space<vmem>>, vector<64x32xf32>
    %c34_179 = arith.constant 34 : index
    %c0_180 = arith.constant 0 : index
    %c0_181 = arith.constant 0 : index
    %181 = vector.load %arg3[%c34_179, %c0_180, %c0_181] : memref<39x32x96xf32, #tpu.memory_space<vmem>>, vector<1x32x96xf32>
    %182 = vector.shape_cast %181 : vector<1x32x96xf32> to vector<32x96xf32>
    %cst_182 = arith.constant dense<0.000000e+00> : vector<64x96xf32>
    %183 = tpu.matmul %180, %182, %cst_182 {dimension_numbers = #tpu.dot_dimension_numbers<[1], [0], [0], [1], [0, 0, 1, 1], [], []>} : vector<64x32xf32>, vector<32x96xf32>, vector<64x96xf32> -> vector<64x96xf32>
    %184 = arith.addf %179, %183 : vector<64x96xf32>
    %c40 = arith.constant 40 : index
    %c0_183 = arith.constant 0 : index
    %185 = vector.load %arg7[%c40, %c0_183] : memref<112x32xf32, #tpu.memory_space<vmem>>, vector<64x32xf32>
    %c35_184 = arith.constant 35 : index
    %c0_185 = arith.constant 0 : index
    %c0_186 = arith.constant 0 : index
    %186 = vector.load %arg3[%c35_184, %c0_185, %c0_186] : memref<39x32x96xf32, #tpu.memory_space<vmem>>, vector<1x32x96xf32>
    %187 = vector.shape_cast %186 : vector<1x32x96xf32> to vector<32x96xf32>
    %cst_187 = arith.constant dense<0.000000e+00> : vector<64x96xf32>
    %188 = tpu.matmul %185, %187, %cst_187 {dimension_numbers = #tpu.dot_dimension_numbers<[1], [0], [0], [1], [0, 0, 1, 1], [], []>} : vector<64x32xf32>, vector<32x96xf32>, vector<64x96xf32> -> vector<64x96xf32>
    %189 = arith.addf %184, %188 : vector<64x96xf32>
    %c41 = arith.constant 41 : index
    %c0_188 = arith.constant 0 : index
    %190 = vector.load %arg7[%c41, %c0_188] : memref<112x32xf32, #tpu.memory_space<vmem>>, vector<64x32xf32>
    %c36_189 = arith.constant 36 : index
    %c0_190 = arith.constant 0 : index
    %c0_191 = arith.constant 0 : index
    %191 = vector.load %arg3[%c36_189, %c0_190, %c0_191] : memref<39x32x96xf32, #tpu.memory_space<vmem>>, vector<1x32x96xf32>
    %192 = vector.shape_cast %191 : vector<1x32x96xf32> to vector<32x96xf32>
    %cst_192 = arith.constant dense<0.000000e+00> : vector<64x96xf32>
    %193 = tpu.matmul %190, %192, %cst_192 {dimension_numbers = #tpu.dot_dimension_numbers<[1], [0], [0], [1], [0, 0, 1, 1], [], []>} : vector<64x32xf32>, vector<32x96xf32>, vector<64x96xf32> -> vector<64x96xf32>
    %194 = arith.addf %189, %193 : vector<64x96xf32>
    %c42 = arith.constant 42 : index
    %c0_193 = arith.constant 0 : index
    %195 = vector.load %arg7[%c42, %c0_193] : memref<112x32xf32, #tpu.memory_space<vmem>>, vector<64x32xf32>
    %c37_194 = arith.constant 37 : index
    %c0_195 = arith.constant 0 : index
    %c0_196 = arith.constant 0 : index
    %196 = vector.load %arg3[%c37_194, %c0_195, %c0_196] : memref<39x32x96xf32, #tpu.memory_space<vmem>>, vector<1x32x96xf32>
    %197 = vector.shape_cast %196 : vector<1x32x96xf32> to vector<32x96xf32>
    %cst_197 = arith.constant dense<0.000000e+00> : vector<64x96xf32>
    %198 = tpu.matmul %195, %197, %cst_197 {dimension_numbers = #tpu.dot_dimension_numbers<[1], [0], [0], [1], [0, 0, 1, 1], [], []>} : vector<64x32xf32>, vector<32x96xf32>, vector<64x96xf32> -> vector<64x96xf32>
    %199 = arith.addf %194, %198 : vector<64x96xf32>
    %c43 = arith.constant 43 : index
    %c0_198 = arith.constant 0 : index
    %200 = vector.load %arg7[%c43, %c0_198] : memref<112x32xf32, #tpu.memory_space<vmem>>, vector<64x32xf32>
    %c38_199 = arith.constant 38 : index
    %c0_200 = arith.constant 0 : index
    %c0_201 = arith.constant 0 : index
    %201 = vector.load %arg3[%c38_199, %c0_200, %c0_201] : memref<39x32x96xf32, #tpu.memory_space<vmem>>, vector<1x32x96xf32>
    %202 = vector.shape_cast %201 : vector<1x32x96xf32> to vector<32x96xf32>
    %cst_202 = arith.constant dense<0.000000e+00> : vector<64x96xf32>
    %203 = tpu.matmul %200, %202, %cst_202 {dimension_numbers = #tpu.dot_dimension_numbers<[1], [0], [0], [1], [0, 0, 1, 1], [], []>} : vector<64x32xf32>, vector<32x96xf32>, vector<64x96xf32> -> vector<64x96xf32>
    %204 = arith.addf %199, %203 : vector<64x96xf32>
    %205 = tpu.iota {dimensions = array<i32: 0>} : vector<64x4xi32>
    %c0_i32 = arith.constant 0 : i32
    %206 = vector.broadcast %c0_i32 : i32 to vector<64x4xi32>
    %207 = arith.cmpi eq, %205, %206 : vector<64x4xi32>
    %c1_i32 = arith.constant 1 : i32
    %208 = tpu.dynamic_rotate %1 by %c1_i32 dim 0 : vector<64x4xf32>, i32 -> vector<64x4xf32>
    %cst_203 = arith.constant 0xFF800000 : f32
    %209 = vector.broadcast %cst_203 : f32 to vector<64x4xf32>
    %210 = arith.select %207, %209, %208 : vector<64x4xi1>, vector<64x4xf32>
    %c63_i32 = arith.constant 63 : i32
    %211 = vector.broadcast %c63_i32 : i32 to vector<64x4xi32>
    %212 = arith.cmpi eq, %205, %211 : vector<64x4xi32>
    %c63_i32_204 = arith.constant 63 : i32
    %213 = tpu.dynamic_rotate %1 by %c63_i32_204 dim 0 : vector<64x4xf32>, i32 -> vector<64x4xf32>
    %cst_205 = arith.constant 0xFF800000 : f32
    %214 = vector.broadcast %cst_205 : f32 to vector<64x4xf32>
    %215 = arith.select %212, %214, %213 : vector<64x4xi1>, vector<64x4xf32>
    %216 = arith.maximumf %210, %1 : vector<64x4xf32>
    %217 = arith.maximumf %216, %215 : vector<64x4xf32>
    %c0_206 = arith.constant 0 : index
    %c0_207 = arith.constant 0 : index
    %218 = vector.load %arg4[%c0_206, %c0_207] : memref<4x32xf32, #tpu.memory_space<vmem>>, vector<4x32xf32>
    %cst_208 = arith.constant dense<0.000000e+00> : vector<64x32xf32>
    %219 = tpu.matmul %217, %218, %cst_208 {dimension_numbers = #tpu.dot_dimension_numbers<[1], [0], [0], [1], [0, 0, 1, 1], [], []>} : vector<64x4xf32>, vector<4x32xf32>, vector<64x32xf32> -> vector<64x32xf32>
    %220 = tpu.concatenate %204, %219 in 1 : vector<64x96xf32>, vector<64x32xf32> -> vector<64x128xf32>
    %c0_209 = arith.constant 0 : index
    %c0_210 = arith.constant 0 : index
    %c0_211 = arith.constant 0 : index
    %221 = vector.load %arg5[%c0_209, %c0_210, %c0_211] : memref<1x64x128xf32, #tpu.memory_space<vmem>>, vector<1x64x128xf32>
    %222 = vector.shape_cast %221 : vector<1x64x128xf32> to vector<64x128xf32>
    %223 = vector.shape_cast %220 : vector<64x128xf32> to vector<1x64x128xf32>
    tpu.vector_store %arg5[%c0_209, %c0_210, %c0_211], %223 {strides = array<i32>} : memref<1x64x128xf32, #tpu.memory_space<vmem>>, vector<1x64x128xf32>,
    %cst_212 = arith.constant dense<0.000000e+00> : vector<128xf32>
    %224 = vector.multi_reduction <add>, %220, %cst_212 [0] : vector<64x128xf32> to vector<128xf32>
    %225 = vector.shape_cast %224 : vector<128xf32> to vector<1x128xf32>
    %226 = arith.mulf %220, %220 : vector<64x128xf32>
    %cst_213 = arith.constant dense<0.000000e+00> : vector<128xf32>
    %227 = vector.multi_reduction <add>, %226, %cst_213 [0] : vector<64x128xf32> to vector<128xf32>
    %228 = vector.shape_cast %227 : vector<128xf32> to vector<1x128xf32>
    %229 = tpu.concatenate %225, %228 in 0 : vector<1x128xf32>, vector<1x128xf32> -> vector<2x128xf32>
    %c0_214 = arith.constant 0 : index
    %c0_215 = arith.constant 0 : index
    %c0_216 = arith.constant 0 : index
    %230 = vector.load %arg6[%c0_214, %c0_215, %c0_216] : memref<1x2x128xf32, #tpu.memory_space<vmem>>, vector<1x2x128xf32>
    %231 = vector.shape_cast %230 : vector<1x2x128xf32> to vector<2x128xf32>
    %232 = vector.shape_cast %229 : vector<2x128xf32> to vector<1x2x128xf32>
    tpu.vector_store %arg6[%c0_214, %c0_215, %c0_216], %232 {strides = array<i32>} : memref<1x2x128xf32, #tpu.memory_space<vmem>>, vector<1x2x128xf32>,
    return
  }
  func.func @transform_0(%arg0: i32) -> (i32, i32, i32) {
    %c0_i32 = arith.constant 0 : i32
    %c0_i32_0 = arith.constant 0 : i32
    %c0_i32_1 = arith.constant 0 : i32
    return %arg0, %c0_i32, %c0_i32_0 : i32, i32, i32
  }
  func.func @transform_1(%arg0: i32) -> (i32, i32) {
    %c0_i32 = arith.constant 0 : i32
    %c0_i32_0 = arith.constant 0 : i32
    %c0_i32_1 = arith.constant 0 : i32
    return %c0_i32, %c0_i32_0 : i32, i32
  }
  func.func @transform_2(%arg0: i32) -> (i32, i32, i32) {
    %c0_i32 = arith.constant 0 : i32
    %c0_i32_0 = arith.constant 0 : i32
    %c0_i32_1 = arith.constant 0 : i32
    %c0_i32_2 = arith.constant 0 : i32
    return %c0_i32, %c0_i32_0, %c0_i32_1 : i32, i32, i32
  }
  func.func @transform_3(%arg0: i32) -> (i32, i32) {
    %c0_i32 = arith.constant 0 : i32
    %c0_i32_0 = arith.constant 0 : i32
    %c0_i32_1 = arith.constant 0 : i32
    return %c0_i32, %c0_i32_0 : i32, i32
  }
  func.func @transform_4(%arg0: i32) -> (i32, i32, i32) {
    %c0_i32 = arith.constant 0 : i32
    %c0_i32_0 = arith.constant 0 : i32
    %c0_i32_1 = arith.constant 0 : i32
    return %arg0, %c0_i32, %c0_i32_0 : i32, i32, i32
  }
  func.func @transform_5(%arg0: i32) -> (i32, i32, i32) {
    %c0_i32 = arith.constant 0 : i32
    %c0_i32_0 = arith.constant 0 : i32
    %c0_i32_1 = arith.constant 0 : i32
    return %arg0, %c0_i32, %c0_i32_0 : i32, i32, i32
  }
}

module attributes {stable_mosaic.version = 11 : i64} {
  func.func @bn_relu_kernel(%arg0: i32, %arg1: memref<1x64x128xf32, #tpu.memory_space<vmem>>, %arg2: memref<1x128xf32, #tpu.memory_space<vmem>>, %arg3: memref<1x128xf32, #tpu.memory_space<vmem>>, %arg4: memref<1x64x128xf32, #tpu.memory_space<vmem>>) attributes {dimension_semantics = [#tpu.dimension_semantics<parallel>], iteration_bounds = array<i64: 2>, scalar_prefetch = 0 : i64, scratch_operands = 0 : i64, tpu.core_type = #tpu.core_type<tc>, window_params = [{transform_indices = @transform_0, window_bounds = array<i64: 1, 64, 128>}, {pipeline_mode = #tpu.pipeline_mode<synchronous>, transform_indices = @transform_1, window_bounds = array<i64: 1, 128>}, {pipeline_mode = #tpu.pipeline_mode<synchronous>, transform_indices = @transform_2, window_bounds = array<i64: 1, 128>}, {transform_indices = @transform_3, window_bounds = array<i64: 1, 64, 128>}]} {
    %c0 = arith.constant 0 : index
    %c0_0 = arith.constant 0 : index
    %c0_1 = arith.constant 0 : index
    %0 = vector.load %arg1[%c0, %c0_0, %c0_1] : memref<1x64x128xf32, #tpu.memory_space<vmem>>, vector<1x64x128xf32>
    %1 = vector.shape_cast %0 : vector<1x64x128xf32> to vector<64x128xf32>
    %c0_2 = arith.constant 0 : index
    %c0_3 = arith.constant 0 : index
    %2 = vector.load %arg2[%c0_2, %c0_3] : memref<1x128xf32, #tpu.memory_space<vmem>>, vector<1x128xf32>
    %3 = vector.broadcast %2 : vector<1x128xf32> to vector<64x128xf32>
    %4 = arith.mulf %1, %3 : vector<64x128xf32>
    %c0_4 = arith.constant 0 : index
    %c0_5 = arith.constant 0 : index
    %5 = vector.load %arg3[%c0_4, %c0_5] : memref<1x128xf32, #tpu.memory_space<vmem>>, vector<1x128xf32>
    %6 = vector.broadcast %5 : vector<1x128xf32> to vector<64x128xf32>
    %7 = arith.addf %4, %6 : vector<64x128xf32>
    %cst = arith.constant 0.000000e+00 : f32
    %8 = vector.broadcast %cst : f32 to vector<64x128xf32>
    %9 = arith.maximumf %7, %8 : vector<64x128xf32>
    %c0_6 = arith.constant 0 : index
    %c0_7 = arith.constant 0 : index
    %c0_8 = arith.constant 0 : index
    %10 = vector.load %arg4[%c0_6, %c0_7, %c0_8] : memref<1x64x128xf32, #tpu.memory_space<vmem>>, vector<1x64x128xf32>
    %11 = vector.shape_cast %10 : vector<1x64x128xf32> to vector<64x128xf32>
    %12 = vector.shape_cast %9 : vector<64x128xf32> to vector<1x64x128xf32>
    tpu.vector_store %arg4[%c0_6, %c0_7, %c0_8], %12 {strides = array<i32>} : memref<1x64x128xf32, #tpu.memory_space<vmem>>, vector<1x64x128xf32>,
    return
  }
  func.func @transform_0(%arg0: i32) -> (i32, i32, i32) {
    %c0_i32 = arith.constant 0 : i32
    %c0_i32_0 = arith.constant 0 : i32
    %c0_i32_1 = arith.constant 0 : i32
    return %arg0, %c0_i32, %c0_i32_0 : i32, i32, i32
  }
  func.func @transform_1(%arg0: i32) -> (i32, i32) {
    %c0_i32 = arith.constant 0 : i32
    %c0_i32_0 = arith.constant 0 : i32
    %c0_i32_1 = arith.constant 0 : i32
    return %c0_i32, %c0_i32_0 : i32, i32
  }
  func.func @transform_2(%arg0: i32) -> (i32, i32) {
    %c0_i32 = arith.constant 0 : i32
    %c0_i32_0 = arith.constant 0 : i32
    %c0_i32_1 = arith.constant 0 : i32
    return %c0_i32, %c0_i32_0 : i32, i32
  }
  func.func @transform_3(%arg0: i32) -> (i32, i32, i32) {
    %c0_i32 = arith.constant 0 : i32
    %c0_i32_0 = arith.constant 0 : i32
    %c0_i32_1 = arith.constant 0 : i32
    return %arg0, %c0_i32, %c0_i32_0 : i32, i32, i32
  }
}

</mosaic_0001>

<bundles_post_ra>
// kernel: inception_forward.3
= control target key start
LH: loop header
LB: loop body
LE: loop exit
PB: predicated region body
PF: predicated region fallthrough
CT: control target
= control target key end

     0   :  { %8 = vsyncpa [#allocation3], 0  ;;  %s533_s0 = inlined_call_operand.vmem [shape: f32[2,64,128], index: 0, kind: input, shape index: {}]   ;;  %s534_s1 = inlined_call_operand.vmem [shape: f32[1,128], index: 1, kind: input, shape index: {}]   ;;  %s535_s2 = inlined_call_operand.vmem [shape: f32[1,128], index: 2, kind: input, shape index: {}]   ;;  %s536_s3 = inlined_call_operand.hbm [shape: f32[2,64,128], index: 3, kind: output, shape index: {}]  }
   0x1   :  { %10 = vsyncpa [#allocation3 + $0x1], 0  ;;  %s438_s12 = smov 0   ;;  %s440_s13 = smov 0  }
   0x2   :  { %s442_s14 = smov 0   ;;  %s444_s15 = smov 0  }
   0x3 LB: > { %s459_s16 = sadd.s32 4294967295, %s414_s15   ;;  %s295_s17 = sadd.s32 4294967294, %s414_s15   ;;  %s414_s15 = sphi %s444_s15, %s542_s15   ;;  %s410_s14 = sphi %s442_s14, %s541_s14   ;;  %s406_s13 = sphi %s440_s13, %s540_s13   ;;  %s402_s12 = sphi %s438_s12, %s539_s12  }
   0x4   : > { %s463_s18 = sadd.s32 1, %s414_s15   ;;  %s91_s19 = sadd.s32 1, %s410_s14 }
   0x5   : > { %s88_s20 = ssub.s32 %s414_s15, %s463_s18  ;;  %p101_p0 = scmp.ne.s32.totalorder %s410_s14, %s406_s13 }
   0x6   : > { %p89_p1 = scmp.eq.s32.totalorder %s88_s20, 0  ;;  %p102_p2 = scmp.eq.s32.totalorder %s459_s16, 1 }
   0x7   : > { %p107_p3 = scmp.ne.s32.totalorder %s406_s13, %s402_s12  ;;  %p108_p4 = scmp.eq.s32.totalorder %s295_s17, 1 }
   0x8   : > { %s474_s21 = scalar_select %p89_p1, %s410_s14, %s91_s19  }
   0x9   : > { %p476_p5 = por %p102_p2, %p101_p0  ;;  %p480_p6 = por %p108_p4, %p107_p3 }
   0xa   : > { %p298_p7 = scmp.ge.s32.totalorder %s414_s15, 1  ;;  %p140_p8 = scmp.lt.s32.totalorder %s414_s15, 3 }
   0xc   : > { %p141_p9 = pnand %p298_p7, %p140_p8 }
   0xd   : > { %p164_p10 = scmp.lt.s32.totalorder (!%p141_p9), %s459_s16, 1  ;;  %s161_s27 = sand.u32 (!%p141_p9), 1, %s406_s13  }
   0xe   : > { %144 = sbr.rel (%p141_p9) target bundleno = 41 (0x29), region = 32  ;;  %s299_s7 = sshll.u32 (!%p141_p9), %s161_s27, 6 }
   0xf   : > { %s308_s8 = sshll.u32 (!%p141_p9), %s459_s16, 6  ;;  %s163_s17 = scalar_lea.vmem (!%p141_p9), [#allocation2], %s299_s7 }
  0x10   : > { %s229_s11 = scalar_lea.hbm (!%p141_p9), %s536_s3, %s308_s8  ;;  %s218_s20 = scalar_lea.sflag (!%p141_p9), [#allocation3], %s161_s27 }
  0x11   : > { %s232_s19 = sshll.u32 (!%p141_p9), %s229_s11, 4  ;;  %s372_s29 = scalar_lea.hbm (!%p141_p9), %s536_s3, 128  ;;  %s233_s19 = int_to_ptr.hbm [resolvable:$true] %s232_s19 }
  0x13   : > { %s165_s24 = scalar_select %p164_p10, %s459_s16, 1  ;;  %v350_v0 = vld [vmem:[%s534_s1] ss:$0 sm:$0xff] }
  0x14   : > { %v351_v1 = vld [vmem:[%s535_s2] ss:$0 sm:$0xff]  ;;  %s230_s16 = sshll.u32 %s163_s17, 4  ;;  %s231_s16 = int_to_ptr.vmem [resolvable:$true] %s230_s16 }
  0x15   : > { %s307_s28 = sshll.u32 %s165_s24, 6  ;;  %s366_s24 = sshra.s32 %s233_s19, 4  ;;  %s367_s24 = int_to_ptr.hbm [resolvable:$true] %s366_s24 }
  0x16   : > { %s168_s4 = scalar_lea.vmem %s533_s0, %s307_s28  ;;  %s368_s25 = scalar_lea.hbm %s367_s24, 64 }
  0x17   : > { %v169_v2 = vld [vmem:[%s168_s4] sm:$0xff]  ;;  %v170_v3 = vld [vmem:[%s168_s4 + $0x8] sm:$0xff]  ;;  %v171_v4 = vld [vmem:[%s168_s4 + $0x10] sm:$0xff]  ;;  %p369_p11 = scmp.ne.s32.totalorder %s367_s24, %s368_s25  ;;  %p373_p0 = scmp.lt.s32.totalorder %s367_s24, %s536_s3 }
  0x18   : > { %v181_v5 = vmul.f32 %v350_v0, %v169_v2  ;;  %v182_v6 = vmul.f32 %v350_v0, %v170_v3  ;;  %v183_v7 = vmul.f32 %v350_v0, %v171_v4  ;;  %v172_v8 = vld [vmem:[%s168_s4 + $0x18] sm:$0xff]  ;;  %v173_v9 = vld [vmem:[%s168_s4 + $0x20] sm:$0xff]  ;;  %v174_v10 = vld [vmem:[%s168_s4 + $0x28] sm:$0xff]  ;;  %p374_p1 = scmp.lt.s32.totalorder %s372_s29, %s368_s25 }
  0x19   : > { %v184_v11 = vmul.f32 %v350_v0, %v172_v8  ;;  %v185_v12 = vmul.f32 %v350_v0, %v173_v9  ;;  %v186_v13 = vmul.f32 %v350_v0, %v174_v10  ;;  %v175_v14 = vld [vmem:[%s168_s4 + $0x30] sm:$0xff]  ;;  %v176_v15 = vld [vmem:[%s168_s4 + $0x38] sm:$0xff]  ;;  %p370_p12 = pnand %p369_p11, %p476_p5 }
  0x1a   : > { %v193_v16 = vadd.f32 %v351_v1, %v181_v5  ;;  %v194_v17 = vadd.f32 %v351_v1, %v182_v6  ;;  %v195_v18 = vadd.f32 %v351_v1, %v183_v7  ;;  %v187_v19 = vmul.f32 %v350_v0, %v175_v14  ;;  %p375_p2 = por %p374_p1, %p373_p0 }
  0x1b   : > { %v196_v20 = vadd.f32 %v351_v1, %v184_v11  ;;  %v197_v21 = vadd.f32 %v351_v1, %v185_v12  ;;  %v198_v22 = vadd.f32 %v351_v1, %v186_v13  ;;  %v188_v23 = vmul.f32 %v350_v0, %v176_v15  ;;  %p371_p13 = pneg %p370_p12 }
  0x1c   : > { %v201_v24 = vmax.f32 %v193_v16, 0.0  ;;  %v202_v25 = vmax.f32 %v194_v17, 0.0  ;;  %v203_v26 = vmax.f32 %v195_v18, 0.0  ;;  %v199_v27 = vadd.f32 %v351_v1, %v187_v19 }
  0x1d   : > { %v204_v28 = vmax.f32 %v196_v20, 0.0  ;;  %v200_v29 = vadd.f32 %v351_v1, %v188_v23  ;;  %v205_v30 = vmax.f32 %v197_v21, 0.0  ;;  %v206_v31 = vmax.f32 %v198_v22, 0.0  ;;  %p376_p3 = pnand %p375_p2, %p371_p13 }
  0x1e   : > { %209 = vst [vmem:[%s163_s17] sm:$0xff] %v201_v24  ;;  %v207_v32 = vmax.f32 %v199_v27, 0.0 }
  0x1f   : > { %210 = vst [vmem:[%s163_s17 + $0x8] sm:$0xff] %v202_v25  ;;  %v208_v33 = vmax.f32 %v200_v29, 0.0 }
  0x20   : > { %211 = vst [vmem:[%s163_s17 + $0x10] sm:$0xff] %v203_v26 }
  0x21   : > { %212 = vst [vmem:[%s163_s17 + $0x18] sm:$0xff] %v204_v28 }
  0x22   : > { %213 = vst [vmem:[%s163_s17 + $0x20] sm:$0xff] %v205_v30 }
  0x23   : > { %214 = vst [vmem:[%s163_s17 + $0x28] sm:$0xff] %v206_v31 }
  0x24   : > { %215 = vst [vmem:[%s163_s17 + $0x30] sm:$0xff] %v207_v32 }
  0x25   : > { %216 = vst [vmem:[%s163_s17 + $0x38] sm:$0xff] %v208_v33 }
  0x26   : > { %379 = shalt.err (!%p376_p3)
}
  0x27   : > { %s416_s27 = smov 128   ;;  %s417_s5 = smov 8  }
  0x28   : > { %309 = dma.vmem_to_hbm [thread:$0]  (%p476_p5), %s231_s16, 1024, %s233_s19, %s218_s20, %s416_s27, %s416_s27, %s417_s5  }
  0x29 PF: > { %p315_p4 = scmp.ge.s32.totalorder %s414_s15, 2  ;;  %s247_s6 = sand.u32 1, %s402_s12  }
  0x2a   : > { %s248_s7 = scalar_lea.sflag [#allocation3], %s247_s6 }
  0x2b   : > { %p312_p7 = pnand %p315_p4, %p480_p6 }
  0x2d   : > { %p313_p8 = pneg %p312_p7 }
  0x2f   : > { %397 = dma.done.wait (%p313_p8), %s248_s7, 1024  }
  0x30   : > { %399 = vsyncadd (%p313_p8), %s248_s7, 4294966272  ;;  %p13_p9 = scmp.ge.s32.totalorder %s463_s18, 4   ;;  %s539_s12 = smov %s406_s13 }
  0x31   : > { %s540_s13 = smov %s410_s14  ;;  %s541_s14 = smov %s474_s21 }
  0x32   : > { %s542_s15 = smov %s463_s18  ;;  %15 = sbr.rel (!%p13_p9) target bundleno = 3 (0x3), region = 67 }
  0x37   :  { %254 = vsyncpa [#allocation3], 1 }
  0x38   :  { %256 = vsyncpa [#allocation3 + $0x1], 1 }

// kernel: inception_forward.2
= control target key start
LH: loop header
LB: loop body
LE: loop exit
PB: predicated region body
PF: predicated region fallthrough
CT: control target
= control target key end

     0   :  { %s4554_s18 = smov 0   ;;  %s6314_s0 = inlined_call_operand.vmem [shape: f32[2,64,4], index: 0, kind: input, shape index: {}]   ;;  %s6315_s1 = inlined_call_operand.vmem [shape: f32[4,32], index: 1, kind: input, shape index: {}]   ;;  %s6316_s2 = inlined_call_operand.vmem [shape: f32[39,32,96], index: 2, kind: input, shape index: {}]   ;;  %s6317_s3 = inlined_call_operand.vmem [shape: f32[4,32], index: 3, kind: input, shape index: {}]   ;;  %s6318_s4 = inlined_call_operand.vmem [shape: f32[2,64,128], index: 4, kind: output, shape index: {0}]   ;;  %s6319_s5 = inlined_call_operand.vmem [shape: f32[2,2,128], index: 5, kind: output, shape index: {1}]  }
   0x1 LB: > { %s3999_s19 = sadd.s32 4294967295, %s4520_s18   ;;  %p4003_p0 = scmp.ge.s32.totalorder %s4520_s18, 1  ;;  %s4520_s18 = sphi %s4554_s18, %s16_s18  }
   0x2   : > { %p190_p1 = scmp.lt.s32.totalorder %s4520_s18, 3 }
   0x4   : > { %p191_p2 = pnand %p4003_p0, %p190_p1 }
   0x6   : > { %194 = sbr.rel (%p191_p2) target bundleno = 1034 (0x40a), region = 36 }
   0xb   : > { %v244_v0 = vld [vmem:[%s6315_s1] sm:$0xf]  ;;  %vm270_vm0 = vcmask 1043456   ;;  %p222_p3 = scmp.lt.s32.totalorder %s3999_s19, 1  ;;  %v3667_v1 = vlaneseq  ;;  %v341_v2 = vld [vmem:[%s6316_s2 + $0x18] sm:$0xff]  ;;  %vm315_vm1 = vcmask 261120  }
   0xc   : > { %4009 = vmatpush.msk.msra.mxu0 %vm270_vm0, %v244_v0  ;;  %4495 = vmatpush.msk.msra.mxu1 %vm270_vm0, %v244_v0  ;;  %v4053_v3 = vld [vmem:[%s6316_s2 + $0x78] sm:$0xff]  ;;  %v340_v5 = vld [vmem:[%s6316_s2 + $0x10] sm:$0xff]  ;;  %v4522_v7 = vmov 0.0   ;;  %vm245_vm2 = vcmask 31744   ;;  %v339_v11 = vld [vmem:[%s6316_s2 + $0x8] sm:$0xff]  ;;  %vm3859_vm7 = vcmask 785408  }
   0xd   : > { %v4041_v4 = vld [vmem:[%s6316_s2 + $0x58] sm:$0xff]  ;;  %s6423_s19 = smov (!%p222_p3, %s3999_s19), 1  ;;  %4496 = vmatpush.msk.msra.mxu2 %vm270_vm0, %v244_v0  ;;  %4497 = vmatpush.msk.msra.mxu3 %vm270_vm0, %v244_v0  ;;  %v4052_v6 = vld [vmem:[%s6316_s2 + $0x70] sm:$0xff]  ;;  %316 = vst.msk [vmem:[#allocation2] sm:$0xff] %vm315_vm1, %v4522_v7  ;;  %v4595_v10 = vshrl.u32 %v3667_v1, 7  ;;  %v4039_v13 = vld [vmem:[%s6316_s2 + $0x48] sm:$0xff] }
   0xe   : > { %620 = vmatpush.msrb.mxu0 %v4053_v3  ;;  %v4040_v8 = vld [vmem:[%s6316_s2 + $0x50] sm:$0xff]  ;;  %v4021_v9 = vld [vmem:[%s6316_s2 + $0x38] sm:$0xff]  ;;  %317 = vst.msk [vmem:[#allocation2 + $0x8] sm:$0xff] %vm315_vm1, %v4522_v7  ;;  %s4493_s11 = sshll.u32 %s6423_s19, 6  ;;  %v4038_v14 = vld [vmem:[%s6316_s2 + $0x40] sm:$0xff]  ;;  %vm3910_vm8 = vcmask 1040384  }
   0xf   : > { %456 = vmatpush.msrb.mxu2 %v341_v2  ;;  %6353 = vst [vmem:[#allocation3_spill] sm:$0xff] %v4595_v10  ;;  %534 = vmatpush.msrb.mxu3 %v4041_v4  ;;  %v4020_v12 = vld [vmem:[%s6316_s2 + $0x30] sm:$0xff]  ;;  %s4609_s20 = scalar_lea.vmem %s6314_s0, %s4493_s11  ;;  %v4051_v15 = vld [vmem:[%s6316_s2 + $0x68] sm:$0xff]  ;;  %vm3725_vm3 = vcmp.lt.s32.totalorder %v4595_v10, 7  ;;  %vm3692_vm4 = vcmp.lt.s32.totalorder %v4595_v10, 1  ;;  %v338_v28 = vld [vmem:[%s6316_s2] sm:$0xff]  ;;  %s6283_s25 = scalar_lea.vmem %s6318_s4, %s4493_s11 }
  0x10   : > { %391 = vmatpush.msrb.mxu1 %v4021_v9  ;;  %318 = vst.msk [vmem:[#allocation2 + $0x10] sm:$0xff] %vm315_vm1, %v4522_v7  ;;  %621 = vmatpush.msrb.mxu0 %v4052_v6  ;;  %v4622_v16 = vld [vmem:[%s4609_s20] sm:$0xff]  ;;  %v4625_v17 = vld [vmem:[%s4609_s20 + $0x8] sm:$0xff]  ;;  %v4629_v18 = vld [vmem:[%s4609_s20 + $0x10] sm:$0xff]  ;;  %vm3676_vm5 = vcmp.eq.s32.totalorder %v4595_v10, 0  ;;  %s4008_s11 = sshll.u32 %s6423_s19, 1 }
  0x11   : > { %457 = vmatpush.msrb.mxu2 %v340_v5  ;;  %319 = vst.msk [vmem:[#allocation2 + $0x58] sm:$0xff] %vm315_vm1, %v4522_v7  ;;  %535 = vmatpush.msrb.mxu3 %v4040_v8  ;;  %v3684_v19 = vrot.slane %v4622_v16, 7  ;;  %v6320_v20 = vrot.slane %v4622_v16, 1  ;;  %v3685_v21 = vrot.slane %v4625_v17, 7  ;;  %v6321_v22 = vrot.slane %v4625_v17, 1  ;;  %v4641_v23 = vld [vmem:[%s4609_s20 + $0x18] sm:$0xff]  ;;  %s235_s28 = scalar_lea.vmem %s6319_s5, %s4008_s11 }
  0x12   : > { %6354 = vst [vmem:[#allocation4_spill] sm:$0xff] %v4622_v16  ;;  %392 = vmatpush.msrb.mxu1 %v4020_v12  ;;  %4010 = vmatmul.msk.f32.vlgmr.msra.gmra.mxu0 %vm245_vm2, %v4622_v16  ;;  %v4644_v24 = vld [vmem:[%s4609_s20 + $0x20] sm:$0xff]  ;;  %v3686_v25 = vrot.slane %v4629_v18, 7  ;;  %v3687_v26 = vrot.slane %v4641_v23, 7  ;;  %v4652_v27 = vld [vmem:[%s4609_s20 + $0x30] sm:$0xff]  ;;  %v4019_v29 = vld [vmem:[%s6316_s2 + $0x28] sm:$0xff] }
  0x13   : > { %6355 = vst [vmem:[#allocation5_spill] sm:$0xff] %v4625_v17  ;;  %4012 = vmatmul.msk.f32.vlgmr.msra.gmra.mxu1 %vm245_vm2, %v4629_v18  ;;  %4014 = vmatmul.msk.f32.vlgmr.msra.gmra.mxu2 %vm245_vm2, %v4644_v24  ;;  %v4662_v30 = vsel %vm3692_vm4, %v3684_v19, %v3685_v21  ;;  %v3732_v31 = vsel %vm3725_vm3, %v6320_v20, %v6321_v22  ;;  %v3688_v32 = vrot.slane %v4644_v24, 7  ;;  %v4672_v33 = vld [vmem:[%s4609_s20 + $0x28] sm:$0xff]  ;;  %v4050_v34 = vld [vmem:[%s6316_s2 + $0x60] sm:$0xff]  ;;  %v3690_v45 = vrot.slane %v4652_v27, 7  ;;  %v4710_v46 = vld [vmem:[%s4609_s20 + $0x38] sm:$0xff] }
  0x14   : > { %6356 = vst [vmem:[#allocation6_spill] sm:$0xff] %v4629_v18  ;;  %536 = vmatpush.msrb.mxu3 %v4039_v13  ;;  %458 = vmatpush.msrb.mxu2 %v339_v11  ;;  %v4684_v36 = vsel %vm3692_vm4, %v3685_v21, %v3686_v25  ;;  %v4688_v37 = vsel %vm3692_vm4, %v3686_v25, %v3687_v26  ;;  %v3689_v38 = vrot.slane %v4672_v33, 7  ;;  %v4018_v39 = vld [vmem:[%s6316_s2 + $0x20] sm:$0xff]  ;;  %v4101_v47 = vld [vmem:[%s6316_s2 + $0xf8] sm:$0xff]  ;;  %v3691_v49 = vrot.slane %v4710_v46, 7  ;;  %v4100_v2 = vld [vmem:[%s6316_s2 + $0xf0] sm:$0xff] }
  0x15   : > { %320 = vst.msk [vmem:[#allocation2 + $0x60] sm:$0xff] %vm315_vm1, %v4522_v7  ;;  %4016 = vmatmul.msk.f32.vlgmr.msra.gmra.mxu3 %vm245_vm2, %v4652_v27  ;;  %622 = vmatpush.msrb.mxu0 %v4051_v15  ;;  %v4700_v42 = vsel %vm3692_vm4, %v3687_v26, %v3688_v32  ;;  %v342_v58 = vld [vmem:[#allocation2 + $0x6] sm:$0xff]  ;;  %v4125_v48 = vld [vmem:[%s6316_s2 + $0x138] sm:$0xff]  ;;  %v4112_v41 = vld [vmem:[%s6316_s2 + $0x110] sm:$0xff] }
  0x16   : > { %6357 = vst [vmem:[#allocation7_spill] sm:$0xff] %v4641_v23  ;;  %537 = vmatpush.msrb.mxu3 %v4038_v14  ;;  %459 = vmatpush.msrb.mxu2 %v338_v28  ;;  %v4706_v44 = vsel %vm3692_vm4, %v3688_v32, %v3689_v38  ;;  %v4721_v50 = vsel %vm3692_vm4, %v3689_v38, %v3690_v45  ;;  %v571_v59 = vld [vmem:[#allocation2 + $0x8] sm:$0xff]  ;;  %v4098_v15 = vld [vmem:[%s6316_s2 + $0xe0] sm:$0xff]  ;;  %v4089_v32 = vld [vmem:[%s6316_s2 + $0xd8] sm:$0xff] }
  0x17   : > { %6358 = vst [vmem:[#allocation8_spill] sm:$0xff] %v4644_v24  ;;  %393 = vmatpush.msrb.mxu1 %v4019_v29  ;;  %623 = vmatpush.msrb.mxu0 %v4050_v34  ;;  %v4731_v52 = vsel %vm3692_vm4, %v3690_v45, %v3691_v49  ;;  %v3700_v53 = vsel %vm3692_vm4, %v3691_v49, %v3684_v19  ;;  %v330_v60 = vld [vmem:[#allocation2 + $0x5] sm:$0xff]  ;;  %v4748_v62 = vld [vmem:[#allocation2 + $0xe] sm:$0xff]  ;;  %v4065_v29 = vld [vmem:[%s6316_s2 + $0x98] sm:$0xff] }
  0x18   : > { %6359 = vst [vmem:[#allocation9_spill] sm:$0xff] %v4652_v27  ;;  %v3701_v54 = vsel %vm3676_vm5, -inf, %v3700_v53  ;;  %v485_v61 = vld [vmem:[#allocation2 + $0x7] sm:$0xff]  ;;  %v4752_v0 = vld [vmem:[#allocation2 + $0xf] sm:$0xff]  ;;  %878 = vmatpush.msra.mxu3 %v4089_v32  ;;  %v4137_v43 = vld [vmem:[%s6316_s2 + $0x158] sm:$0xff] }
  0x19   : > { %6360 = vst [vmem:[#allocation10_spill] sm:$0xff] %v4662_v30  ;;  %394 = vmatpush.msrb.mxu1 %v4018_v39  ;;  %964 = vmatpush.msra.mxu0 %v4101_v47  ;;  %v3742_v56 = vmax.f32 %v3701_v54, %v4622_v16  ;;  %v4750_v63 = vld [vmem:[#allocation2 + $0xd] sm:$0xff]  ;;  %v4194_v10 = vld [vmem:[%s6316_s2 + $0x1e0] sm:$0xff] }
  0x1a   : > { %6361 = vst [vmem:[#allocation11_spill] sm:$0xff] %v4672_v33  ;;  %4011 = vmatmul.msk.f32.gmra.mxu0 %vm245_vm2, %v4625_v17  ;;  %v4760_v1 = vld [vmem:[#allocation2 + $0x10] sm:$0xff]  ;;  %v4099_v3 = vld [vmem:[%s6316_s2 + $0xe8] sm:$0xff] }
  0x1b   : > { %321 = vst.msk [vmem:[#allocation2 + $0x68] sm:$0xff] %vm315_vm1, %v4522_v7  ;;  %4013 = vmatmul.msk.f32.gmra.mxu1 %vm245_vm2, %v4641_v23  ;;  %4015 = vmatmul.msk.f32.gmra.mxu2 %vm245_vm2, %v4672_v33  ;;  %v4742_v57 = vmax.f32 %v3742_v56, %v3732_v31  ;;  %v4077_v31 = vld [vmem:[%s6316_s2 + $0xb8] sm:$0xff]  ;;  %v4064_v34 = vld [vmem:[%s6316_s2 + $0x90] sm:$0xff]  ;;  %v4063_v53 = vld [vmem:[%s6316_s2 + $0x88] sm:$0xff] }
  0x1c   : > { %6362 = vst [vmem:[#allocation12_spill] sm:$0xff] %v4684_v36  ;;  %965 = vmatpush.msra.mxu0 %v4100_v2  ;;  %706 = vmatpush.msra.mxu1 %v4065_v29  ;;  %v4076_v38 = vld [vmem:[%s6316_s2 + $0xb0] sm:$0xff]  ;;  %v4075_v54 = vld [vmem:[%s6316_s2 + $0xa8] sm:$0xff]  ;;  %v4149_v2 = vld [vmem:[%s6316_s2 + $0x178] sm:$0xff] }
  0x1d   : > { %6363 = vst [vmem:[#allocation13_spill] sm:$0xff] %v4688_v37  ;;  %4017 = vmatmul.msk.f32.gmra.mxu3 %vm245_vm2, %v4710_v46  ;;  %792 = vmatpush.msra.mxu2 %v4077_v31  ;;  %v4088_v39 = vld [vmem:[%s6316_s2 + $0xd0] sm:$0xff]  ;;  %v4111_v22 = vld [vmem:[%s6316_s2 + $0x108] sm:$0xff] }
  0x1e   : > { %6364 = vst [vmem:[#allocation14_spill] sm:$0xff] %v4700_v42  ;;  %966 = vmatpush.msra.mxu0 %v4099_v3  ;;  %707 = vmatpush.msra.mxu1 %v4064_v34  ;;  %v4124_v40 = vld [vmem:[%s6316_s2 + $0x130] sm:$0xff]  ;;  %v4195_v18 = vld [vmem:[%s6316_s2 + $0x1e8] sm:$0xff] }
  0x1f   : > { %6365 = vst [vmem:[#allocation15_spill] sm:$0xff] %v4706_v44  ;;  %793 = vmatpush.msra.mxu2 %v4076_v38  ;;  %879 = vmatpush.msra.mxu3 %v4088_v39  ;;  %v657_v38 = vld [vmem:[#allocation2 + $0x9] sm:$0xff] }
  0x20   : > { %6366 = vst [vmem:[#allocation16_spill] sm:$0xff] %v4710_v46  ;;  %967 = vmatpush.msra.mxu0 %v4098_v15  ;;  %708 = vmatpush.msra.mxu1 %v4063_v53  ;;  %v743_v39 = vld [vmem:[#allocation2 + $0xa] sm:$0xff] }
  0x21   : > { %6367 = vst [vmem:[#allocation17_spill] sm:$0xff] %v4721_v50  ;;  %794 = vmatpush.msra.mxu2 %v4075_v54  ;;  %v829_v53 = vld [vmem:[#allocation2 + $0xb] sm:$0xff] }
  0x22   : > { %6368 = vst [vmem:[#allocation18_spill] sm:$0xff] %v4731_v52  ;;  %4054 = vmatmul.msk.f32.vlgmr.msrb.gmra.mxu0 %vm315_vm1, %v571_v59  ;;  %v4062_v59 = vld [vmem:[%s6316_s2 + $0x80] sm:$0xff]  ;;  %v915_v54 = vld [vmem:[#allocation2 + $0xc] sm:$0xff] }
  0x23   : > { %6369 = vst [vmem:[#allocation19_spill] sm:$0xff] %v4742_v57  ;;  %4022 = vmatmul.msk.f32.vlgmr.msrb.gmra.mxu1 %vm315_vm1, %v342_v58  ;;  %4030 = vmatmul.msk.f32.vlgmr.msrb.gmra.mxu2 %vm315_vm1, %v330_v60  ;;  %v4087_v58 = vld [vmem:[%s6316_s2 + $0xc8] sm:$0xff]  ;;  %v4074_v60 = vld [vmem:[%s6316_s2 + $0xa0] sm:$0xff]  ;;  %v4136_v35 = vld [vmem:[%s6316_s2 + $0x150] sm:$0xff] }
  0x24   : > { %880 = vmatpush.msra.mxu3 %v4087_v58  ;;  %1308 = vmatpush.msrb.mxu0 %v4149_v2  ;;  %v4147_v58 = vld [vmem:[%s6316_s2 + $0x168] sm:$0xff]  ;;  %v4110_v52 = vld [vmem:[%s6316_s2 + $0x100] sm:$0xff]  ;;  %v4196_v33 = vld [vmem:[%s6316_s2 + $0x1f0] sm:$0xff] }
  0x25   : > { %4042 = vmatmul.msk.f32.vlgmr.msrb.gmra.mxu3 %vm315_vm1, %v485_v61  ;;  %v4086_v61 = vld [vmem:[%s6316_s2 + $0xc0] sm:$0xff]  ;;  %709 = vmatpush.msra.mxu1 %v4062_v59 }
  0x26   : > { %795 = vmatpush.msra.mxu2 %v4074_v60  ;;  %881 = vmatpush.msra.mxu3 %v4086_v61 }
  0x28   : > { %1136 = vmatpush.msrb.mxu2 %v4125_v48  ;;  %1222 = vmatpush.msrb.mxu3 %v4137_v43  ;;  %v4123_v48 = vld [vmem:[%s6316_s2 + $0x128] sm:$0xff] }
  0x2a   : > { %4055 = vmatmul.msk.f32.gmra.mxu0 %vm315_vm1, %v4760_v1  ;;  %1137 = vmatpush.msrb.mxu2 %v4124_v40  ;;  %v4122_v40 = vld [vmem:[%s6316_s2 + $0x120] sm:$0xff] }
  0x2b   : > { %4023 = vmatmul.msk.f32.gmra.mxu1 %vm315_vm1, %v4748_v62  ;;  %4031 = vmatmul.msk.f32.gmra.mxu2 %vm315_vm1, %v4750_v63 }
  0x2c   : > { %1223 = vmatpush.msrb.mxu3 %v4136_v35  ;;  %1138 = vmatpush.msrb.mxu2 %v4123_v48  ;;  %v4197_v48 = vld [vmem:[%s6316_s2 + $0x1f8] sm:$0xff] }
  0x2d   : > { %4043 = vmatmul.msk.f32.gmra.mxu3 %vm315_vm1, %v4752_v0 }
  0x2e   : > { %1139 = vmatpush.msrb.mxu2 %v4122_v40 }
  0x8f   : > { %v291_v4 = vpop.f32.mrf.mxu0 }
  0x90   : > { %v297_v5 = vpop.f32.mrf.mxu1  ;;  %322 = vst.msk [vmem:[#allocation2 + $0x18] sm:$0xff] %vm315_vm1, %v291_v4 }
  0x91   : > { %324 = vst.msk [vmem:[#allocation2 + $0x28] sm:$0xff] %vm315_vm1, %v297_v5 }
  0x96   : > { %v303_v6 = vpop.f32.mrf.mxu2 }
  0x97   : > { %v294_v7 = vpop.f32.mrf.mxu0  ;;  %v4772_v8 = vld [vmem:[#allocation2 + $0x16] sm:$0xff]  ;;  %326 = vst.msk [vmem:[#allocation2 + $0x38] sm:$0xff] %vm315_vm1, %v303_v6 }
  0x98   : > { %6370 = vst [vmem:[#allocation20_spill] sm:$0xff] %v4772_v8  ;;  %v4774_v9 = vld [vmem:[#allocation2 + $0x15] sm:$0xff]  ;;  %v300_v12 = vpop.f32.mrf.mxu1  ;;  %4024 = vmatmul.msk.f32.gmra.mxu1 %vm315_vm1, %v4772_v8  ;;  %v309_v14 = vpop.f32.mrf.mxu3  ;;  %v4832_v47 = vld [vmem:[#allocation2 + $0x28] sm:$0xff] }
  0x99   : > { %6371 = vst [vmem:[#allocation21_spill] sm:$0xff] %v4774_v9  ;;  %v4776_v11 = vld [vmem:[#allocation2 + $0x17] sm:$0xff]  ;;  %4032 = vmatmul.msk.f32.gmra.mxu2 %vm315_vm1, %v4774_v9 }
  0x9a   : > { %6372 = vst [vmem:[#allocation22_spill] sm:$0xff] %v4776_v11  ;;  %v4784_v13 = vld [vmem:[#allocation2 + $0x18] sm:$0xff]  ;;  %4044 = vmatmul.msk.f32.gmra.mxu3 %vm315_vm1, %v4776_v11 }
  0x9b   : > { %323 = vst.msk [vmem:[#allocation2 + $0x20] sm:$0xff] %vm315_vm1, %v294_v7  ;;  %4056 = vmatmul.msk.f32.gmra.mxu0 %vm315_vm1, %v4784_v13  ;;  %v4925_v59 = vld [vmem:[#allocation2 + $0x11] sm:$0xff] }
  0x9c   : > { %6373 = vst [vmem:[#allocation23_spill] sm:$0xff] %v4784_v13  ;;  %v4927_v60 = vld [vmem:[#allocation2 + $0x12] sm:$0xff] }
  0x9d   : > { %325 = vst.msk [vmem:[#allocation2 + $0x30] sm:$0xff] %vm315_vm1, %v300_v12  ;;  %v4933_v61 = vld [vmem:[#allocation2 + $0x13] sm:$0xff] }
  0x9e   : > { %328 = vst.msk [vmem:[#allocation2 + $0x48] sm:$0xff] %vm315_vm1, %v309_v14  ;;  %v306_v19 = vpop.f32.mrf.mxu2  ;;  %v4883_v7 = vld [vmem:[#allocation2 + $0x38] sm:$0xff] }
  0x9f   : > { %327 = vst.msk [vmem:[#allocation2 + $0x40] sm:$0xff] %vm315_vm1, %v306_v19  ;;  %v4148_v19 = vld [vmem:[%s6316_s2 + $0x170] sm:$0xff] }
  0xa0   : > { %6377 = vst [vmem:[#allocation27_spill] sm:$0xff] %v4832_v47  ;;  %1309 = vmatpush.msrb.mxu0 %v4148_v19  ;;  %v4935_v2 = vld [vmem:[#allocation2 + $0x14] sm:$0xff]  ;;  %v312_v19 = vpop.f32.mrf.mxu3  ;;  %v5085_v23 = vpop.f32.mrf.mxu1 }
  0xa1   : > { %329 = vst.msk [vmem:[#allocation2 + $0x50] sm:$0xff] %vm315_vm1, %v312_v19 }
  0xa2   : > { %v4795_v21 = vld [vmem:[#allocation2 + $0x1e] sm:$0xff]  ;;  %v4830_v45 = vld [vmem:[#allocation2 + $0x26] sm:$0xff]  ;;  %1310 = vmatpush.msrb.mxu0 %v4147_v58 }
  0xa3   : > { %v4797_v25 = vld [vmem:[#allocation2 + $0x1d] sm:$0xff]  ;;  %4025 = vmatmul.msk.f32.gmra.mxu1 %vm315_vm1, %v4795_v21  ;;  %6376 = vst [vmem:[#allocation26_spill] sm:$0xff] %v4830_v45  ;;  %v4834_v49 = vld [vmem:[#allocation2 + $0x25] sm:$0xff] }
  0xa4   : > { %6374 = vst [vmem:[#allocation24_spill] sm:$0xff] %v4797_v25  ;;  %v4799_v26 = vld [vmem:[#allocation2 + $0x1f] sm:$0xff]  ;;  %4033 = vmatmul.msk.f32.gmra.mxu2 %vm315_vm1, %v4797_v25  ;;  %v4846_v56 = vld [vmem:[#allocation2 + $0x27] sm:$0xff]  ;;  %v4867_v3 = vld [vmem:[#allocation2 + $0x30] sm:$0xff] }
  0xa5   : > { %6375 = vst [vmem:[#allocation25_spill] sm:$0xff] %v4799_v26  ;;  %v4806_v28 = vld [vmem:[#allocation2 + $0x20] sm:$0xff]  ;;  %4045 = vmatmul.msk.f32.gmra.mxu3 %vm315_vm1, %v4799_v26  ;;  %v4869_v4 = vld [vmem:[#allocation2 + $0x2e] sm:$0xff]  ;;  %v4885_v12 = vld [vmem:[#allocation2 + $0x36] sm:$0xff] }
  0xa6   : > { %4057 = vmatmul.msk.f32.gmra.mxu0 %vm315_vm1, %v4806_v28  ;;  %6378 = vst [vmem:[#allocation28_spill] sm:$0xff] %v4834_v49  ;;  %v4871_v5 = vld [vmem:[#allocation2 + $0x2d] sm:$0xff]  ;;  %v4887_v14 = vld [vmem:[#allocation2 + $0x35] sm:$0xff]  ;;  %v4902_v29 = vld [vmem:[#allocation2 + $0x40] sm:$0xff]  ;;  %v5091_v37 = vpop.f32.mrf.mxu2 }
  0xa7   : > { %6379 = vst [vmem:[#allocation29_spill] sm:$0xff] %v4846_v56  ;;  %v4877_v6 = vld [vmem:[#allocation2 + $0x2f] sm:$0xff]  ;;  %v4893_v15 = vld [vmem:[#allocation2 + $0x37] sm:$0xff]  ;;  %v4912_v34 = vld [vmem:[#allocation2 + $0x3f] sm:$0xff] }
  0xa8   : > { %6380 = vst [vmem:[#allocation30_spill] sm:$0xff] %v4867_v3  ;;  %v4904_v31 = vld [vmem:[#allocation2 + $0x3e] sm:$0xff]  ;;  %v5004_v46 = vld [vmem:[#allocation2 + $0x29] sm:$0xff]  ;;  %v5034_v16 = vld [vmem:[#allocation2 + $0x32] sm:$0xff]  ;;  %v5100_v36 = vpop.f32.mrf.mxu3 }
  0xa9   : > { %6381 = vst [vmem:[#allocation31_spill] sm:$0xff] %v4869_v4  ;;  %v4906_v32 = vld [vmem:[#allocation2 + $0x3d] sm:$0xff]  ;;  %v5006_v43 = vld [vmem:[#allocation2 + $0x2a] sm:$0xff]  ;;  %v5040_v27 = vld [vmem:[#allocation2 + $0x33] sm:$0xff] }
  0xaa   : > { %6382 = vst [vmem:[#allocation32_spill] sm:$0xff] %v4877_v6  ;;  %v4146_v58 = vld [vmem:[%s6316_s2 + $0x160] sm:$0xff]  ;;  %v5018_v35 = vld [vmem:[#allocation2 + $0x2b] sm:$0xff]  ;;  %v5042_v50 = vld [vmem:[#allocation2 + $0x34] sm:$0xff] }
  0xab   : > { %4026 = vmatmul.msk.f32.gmra.mxu1 %vm315_vm1, %v4830_v45  ;;  %1311 = vmatpush.msrb.mxu0 %v4146_v58  ;;  %v4961_v19 = vld [vmem:[#allocation2 + $0x21] sm:$0xff]  ;;  %v4113_v58 = vld [vmem:[%s6316_s2 + $0x118] sm:$0xff] }
  0xac   : > { %4034 = vmatmul.msk.f32.gmra.mxu2 %vm315_vm1, %v4834_v49  ;;  %v4963_v55 = vld [vmem:[#allocation2 + $0x22] sm:$0xff]  ;;  %1050 = vmatpush.msrb.mxu1 %v4113_v58  ;;  %v5050_v40 = vld [vmem:[#allocation2 + $0x3a] sm:$0xff] }
  0xad   : > { %4046 = vmatmul.msk.f32.gmra.mxu3 %vm315_vm1, %v4846_v56  ;;  %v4969_v20 = vld [vmem:[#allocation2 + $0x23] sm:$0xff] }
  0xae   : > { %4058 = vmatmul.msk.f32.gmra.mxu0 %vm315_vm1, %v4832_v47  ;;  %v4971_v51 = vld [vmem:[#allocation2 + $0x24] sm:$0xff]  ;;  %1051 = vmatpush.msrb.mxu1 %v4112_v41 }
  0xaf   : > { %v4135_v58 = vld [vmem:[%s6316_s2 + $0x148] sm:$0xff]  ;;  %v4134_v41 = vld [vmem:[%s6316_s2 + $0x140] sm:$0xff] }
  0xb0   : > { %1052 = vmatpush.msrb.mxu1 %v4111_v22  ;;  %1224 = vmatpush.msrb.mxu3 %v4135_v58  ;;  %v5020_v22 = vld [vmem:[#allocation2 + $0x2c] sm:$0xff]  ;;  %v5067_v44 = vld [vmem:[#allocation2 + $0x41] sm:$0xff] }
  0xb1   : > { %v5032_v58 = vld [vmem:[#allocation2 + $0x31] sm:$0xff]  ;;  %v5069_v24 = vld [vmem:[#allocation2 + $0x42] sm:$0xff] }
  0xb2   : > { %1053 = vmatpush.msrb.mxu1 %v4110_v52  ;;  %1225 = vmatpush.msrb.mxu3 %v4134_v41  ;;  %v5048_v52 = vld [vmem:[#allocation2 + $0x39] sm:$0xff]  ;;  %v5075_v42 = vld [vmem:[#allocation2 + $0x43] sm:$0xff] }
  0xb3   : > { %4027 = vmatmul.msk.f32.gmra.mxu1 %vm315_vm1, %v4869_v4  ;;  %v5056_v41 = vld [vmem:[#allocation2 + $0x3b] sm:$0xff]  ;;  %v5077_v57 = vld [vmem:[#allocation2 + $0x44] sm:$0xff] }
  0xb4   : > { %4035 = vmatmul.msk.f32.gmra.mxu2 %vm315_vm1, %v4871_v5 }
  0xb5   : > { %4047 = vmatmul.msk.f32.gmra.mxu3 %vm315_vm1, %v4877_v6 }
  0xb6   : > { %4059 = vmatmul.msk.f32.gmra.mxu0 %vm315_vm1, %v4867_v3 }
  0xbb   : > { %4028 = vmatmul.msk.f32.gmra.mxu1 %vm315_vm1, %v4885_v12 }
  0xbc   : > { %4036 = vmatmul.msk.f32.gmra.mxu2 %vm315_vm1, %v4887_v14 }
  0xbd   : > { %4048 = vmatmul.msk.f32.gmra.mxu3 %vm315_vm1, %v4893_v15 }
  0xbe   : > { %4060 = vmatmul.msk.f32.gmra.mxu0 %vm315_vm1, %v4883_v7 }
  0xc3   : > { %4029 = vmatmul.msk.f32.gmra.mxu1 %vm315_vm1, %v4904_v31 }
  0xc4   : > { %4037 = vmatmul.msk.f32.gmra.mxu2 %vm315_vm1, %v4906_v32 }
  0xc5   : > { %4049 = vmatmul.msk.f32.gmra.mxu3 %vm315_vm1, %v4912_v34 }
  0xc6   : > { %4061 = vmatmul.msk.f32.gmra.mxu0 %vm315_vm1, %v4902_v29 }
  0xcb   : > { %4066 = vmatmul.msk.f32.vlgmr.msra.gmra.mxu1 %vm315_vm1, %v657_v38  ;;  %v4942_v38 = vld [vmem:[#allocation2 + $0x19] sm:$0xff] }
  0xcc   : > { %4078 = vmatmul.msk.f32.vlgmr.msra.gmra.mxu2 %vm315_vm1, %v743_v39  ;;  %v4944_v39 = vld [vmem:[#allocation2 + $0x1a] sm:$0xff] }
  0xcd   : > { %4090 = vmatmul.msk.f32.vlgmr.msra.gmra.mxu3 %vm315_vm1, %v829_v53  ;;  %v4950_v53 = vld [vmem:[#allocation2 + $0x1b] sm:$0xff] }
  0xce   : > { %4102 = vmatmul.msk.f32.vlgmr.msra.gmra.mxu0 %vm315_vm1, %v915_v54  ;;  %v4952_v54 = vld [vmem:[#allocation2 + $0x1c] sm:$0xff] }
  0xcf   : > { %1652 = vmatpush.msra.mxu0 %v4197_v48  ;;  %v5058_v48 = vld [vmem:[#allocation2 + $0x3c] sm:$0xff] }
  0xd1   : > { %1653 = vmatpush.msra.mxu0 %v4196_v33  ;;  %v5083_v33 = vpop.f32.mrf.mxu0 }
  0xd3   : > { %4067 = vmatmul.msk.f32.gmra.mxu1 %vm315_vm1, %v4925_v59  ;;  %1654 = vmatpush.msra.mxu0 %v4195_v18 }
  0xd4   : > { %4079 = vmatmul.msk.f32.gmra.mxu2 %vm315_vm1, %v4927_v60 }
  0xd5   : > { %4091 = vmatmul.msk.f32.gmra.mxu3 %vm315_vm1, %v4933_v61  ;;  %1655 = vmatpush.msra.mxu0 %v4194_v10  ;;  %v4161_v10 = vld [vmem:[%s6316_s2 + $0x198] sm:$0xff] }
  0xd6   : > { %4103 = vmatmul.msk.f32.gmra.mxu0 %vm315_vm1, %v4935_v2  ;;  %1394 = vmatpush.msra.mxu1 %v4161_v10  ;;  %v4184_v10 = vld [vmem:[%s6316_s2 + $0x1d0] sm:$0xff] }
  0xd9   : > { %v5102_v30 = vpop.f32.mrf.mxu0 }
  0xdb   : > { %4068 = vmatmul.msk.f32.gmra.mxu1 %vm315_vm1, %v4942_v38 }
  0xdc   : > { %4080 = vmatmul.msk.f32.gmra.mxu2 %vm315_vm1, %v4944_v39 }
  0xdd   : > { %4092 = vmatmul.msk.f32.gmra.mxu3 %vm315_vm1, %v4950_v53 }
  0xde   : > { %4104 = vmatmul.msk.f32.gmra.mxu0 %vm315_vm1, %v4952_v54 }
  0xe3   : > { %4069 = vmatmul.msk.f32.gmra.mxu1 %vm315_vm1, %v4961_v19 }
  0xe4   : > { %4081 = vmatmul.msk.f32.gmra.mxu2 %vm315_vm1, %v4963_v55 }
  0xe5   : > { %4093 = vmatmul.msk.f32.gmra.mxu3 %vm315_vm1, %v4969_v20 }
  0xe6   : > { %4105 = vmatmul.msk.f32.gmra.mxu0 %vm315_vm1, %v4971_v51 }
  0xeb   : > { %4070 = vmatmul.msk.f32.gmra.mxu1 %vm315_vm1, %v5004_v46 }
  0xec   : > { %4082 = vmatmul.msk.f32.gmra.mxu2 %vm315_vm1, %v5006_v43 }
  0xed   : > { %4094 = vmatmul.msk.f32.gmra.mxu3 %vm315_vm1, %v5018_v35 }
  0xee   : > { %4106 = vmatmul.msk.f32.gmra.mxu0 %vm315_vm1, %v5020_v22 }
  0xf3   : > { %4071 = vmatmul.msk.f32.gmra.mxu1 %vm315_vm1, %v5032_v58 }
  0xf4   : > { %4083 = vmatmul.msk.f32.gmra.mxu2 %vm315_vm1, %v5034_v16 }
  0xf5   : > { %4095 = vmatmul.msk.f32.gmra.mxu3 %vm315_vm1, %v5040_v27 }
  0xf6   : > { %4107 = vmatmul.msk.f32.gmra.mxu0 %vm315_vm1, %v5042_v50 }
  0xfb   : > { %4072 = vmatmul.msk.f32.gmra.mxu1 %vm315_vm1, %v5048_v52 }
  0xfc   : > { %4084 = vmatmul.msk.f32.gmra.mxu2 %vm315_vm1, %v5050_v40 }
  0xfd   : > { %4096 = vmatmul.msk.f32.gmra.mxu3 %vm315_vm1, %v5056_v41 }
  0xfe   : > { %4108 = vmatmul.msk.f32.gmra.mxu0 %vm315_vm1, %v5058_v48 }
 0x103   : > { %4073 = vmatmul.msk.f32.gmra.mxu1 %vm315_vm1, %v5067_v44 }
 0x104   : > { %4085 = vmatmul.msk.f32.gmra.mxu2 %vm315_vm1, %v5069_v24 }
 0x105   : > { %4097 = vmatmul.msk.f32.gmra.mxu3 %vm315_vm1, %v5075_v42 }
 0x106   : > { %4109 = vmatmul.msk.f32.gmra.mxu0 %vm315_vm1, %v5077_v57 }
 0x10b   : > { %4114 = vmatmul.msk.f32.vlgmr.msrb.gmra.mxu1 %vm315_vm1, %v4750_v63  ;;  %v5104_v63 = vpop.f32.mrf.mxu1 }
 0x10c   : > { %4126 = vmatmul.msk.f32.vlgmr.msrb.gmra.mxu2 %vm315_vm1, %v4748_v62  ;;  %v5114_v62 = vpop.f32.mrf.mxu2 }
 0x10d   : > { %4138 = vmatmul.msk.f32.vlgmr.msrb.gmra.mxu3 %vm315_vm1, %v4752_v0  ;;  %v5116_v0 = vpop.f32.mrf.mxu3 }
 0x10e   : > { %4150 = vmatmul.msk.f32.vlgmr.msrb.gmra.mxu0 %vm315_vm1, %v4760_v1 }
 0x113   : > { %4115 = vmatmul.msk.f32.gmra.mxu1 %vm315_vm1, %v4774_v9 }
 0x114   : > { %4127 = vmatmul.msk.f32.gmra.mxu2 %vm315_vm1, %v4772_v8 }
 0x115   : > { %4139 = vmatmul.msk.f32.gmra.mxu3 %vm315_vm1, %v4776_v11  ;;  %v402_v18 = vpop.f32.mrf.mxu1 }
 0x116   : > { %4151 = vmatmul.msk.f32.gmra.mxu0 %vm315_vm1, %v4784_v13 }
 0x118   : > { %v631_v1 = vpop.f32.mrf.mxu0 }
 0x11b   : > { %4116 = vmatmul.msk.f32.gmra.mxu1 %vm315_vm1, %v4797_v25 }
 0x11c   : > { %4128 = vmatmul.msk.f32.gmra.mxu2 %vm315_vm1, %v4795_v21  ;;  %v467_v17 = vpop.f32.mrf.mxu2 }
 0x11d   : > { %4140 = vmatmul.msk.f32.gmra.mxu3 %vm315_vm1, %v4799_v26  ;;  %v468_v13 = vadd.f32 %v467_v17, %v402_v18  ;;  %v545_v11 = vpop.f32.mrf.mxu3  ;;  %v4173_v17 = vld [vmem:[%s6316_s2 + $0x1b8] sm:$0xff] }
 0x11e   : > { %4152 = vmatmul.msk.f32.gmra.mxu0 %vm315_vm1, %v4806_v28  ;;  %1480 = vmatpush.msra.mxu2 %v4173_v17  ;;  %v4171_v17 = vld [vmem:[%s6316_s2 + $0x1a8] sm:$0xff] }
 0x11f   : > { %v565_v9 = vadd.f32 %v545_v11, %v468_v13  ;;  %v4185_v11 = vld [vmem:[%s6316_s2 + $0x1d8] sm:$0xff] }
 0x120   : > { %v405_v8 = vpop.f32.mrf.mxu1  ;;  %1566 = vmatpush.msra.mxu3 %v4185_v11  ;;  %v4158_v11 = vld [vmem:[%s6316_s2 + $0x180] sm:$0xff] }
 0x121   : > { %v5133_v26 = vadd.f32 %v631_v1, %v565_v9 }
 0x122   : > { %1567 = vmatpush.msra.mxu3 %v4184_v10 }
 0x123   : > { %v634_v25 = vpop.f32.mrf.mxu0  ;;  %4117 = vmatmul.msk.f32.gmra.mxu1 %vm315_vm1, %v4834_v49  ;;  %v4172_v49 = vld [vmem:[%s6316_s2 + $0x1b0] sm:$0xff] }
 0x124   : > { %4129 = vmatmul.msk.f32.gmra.mxu2 %vm315_vm1, %v4830_v45  ;;  %v4160_v45 = vld [vmem:[%s6316_s2 + $0x190] sm:$0xff] }
 0x125   : > { %4141 = vmatmul.msk.f32.gmra.mxu3 %vm315_vm1, %v4846_v56  ;;  %1395 = vmatpush.msra.mxu1 %v4160_v45 }
 0x126   : > { %4153 = vmatmul.msk.f32.gmra.mxu0 %vm315_vm1, %v4832_v47  ;;  %1481 = vmatpush.msra.mxu2 %v4172_v49  ;;  %v4183_v49 = vld [vmem:[%s6316_s2 + $0x1c8] sm:$0xff] }
 0x127   : > { %v470_v9 = vpop.f32.mrf.mxu2  ;;  %1568 = vmatpush.msra.mxu3 %v4183_v49 }
 0x128   : > { %v471_v13 = vadd.f32 %v470_v9, %v405_v8  ;;  %v548_v18 = vpop.f32.mrf.mxu3  ;;  %v408_v1 = vpop.f32.mrf.mxu1  ;;  %v4159_v8 = vld [vmem:[%s6316_s2 + $0x188] sm:$0xff]  ;;  %v4245_v9 = vld [vmem:[%s6316_s2 + $0x278] sm:$0xff]  ;;  %1482 = vmatpush.msra.mxu2 %v4171_v17 }
 0x129   : > { %1396 = vmatpush.msra.mxu1 %v4159_v8  ;;  %1996 = vmatpush.msrb.mxu0 %v4245_v9 }
 0x12a   : > { %v566_v47 = vadd.f32 %v548_v18, %v471_v13  ;;  %v4182_v13 = vld [vmem:[%s6316_s2 + $0x1c0] sm:$0xff] }
 0x12b   : > { %v637_v56 = vpop.f32.mrf.mxu0  ;;  %4118 = vmatmul.msk.f32.gmra.mxu1 %vm315_vm1, %v4871_v5  ;;  %1569 = vmatpush.msra.mxu3 %v4182_v13 }
 0x12c   : > { %4130 = vmatmul.msk.f32.gmra.mxu2 %vm315_vm1, %v4869_v4  ;;  %v5167_v45 = vadd.f32 %v634_v25, %v566_v47  ;;  %v4170_v25 = vld [vmem:[%s6316_s2 + $0x1a0] sm:$0xff]  ;;  %1397 = vmatpush.msra.mxu1 %v4158_v11 }
 0x12d   : > { %4142 = vmatmul.msk.f32.gmra.mxu3 %vm315_vm1, %v4877_v6  ;;  %1483 = vmatpush.msra.mxu2 %v4170_v25  ;;  %v5213_v25 = vld [vmem:[#allocation2 + $0x46] sm:$0xff] }
 0x12e   : > { %4154 = vmatmul.msk.f32.gmra.mxu0 %vm315_vm1, %v4867_v3 }
 0x12f   : > { %v473_v47 = vpop.f32.mrf.mxu2 }
 0x130   : > { %v474_v18 = vadd.f32 %v473_v47, %v408_v1  ;;  %v551_v3 = vpop.f32.mrf.mxu3  ;;  %v411_v6 = vpop.f32.mrf.mxu1  ;;  %v5223_v47 = vld [vmem:[#allocation2 + $0x48] sm:$0xff] }
 0x132   : > { %v567_v4 = vadd.f32 %v551_v3, %v474_v18 }
 0x133   : > { %v640_v10 = vpop.f32.mrf.mxu0  ;;  %4119 = vmatmul.msk.f32.gmra.mxu1 %vm315_vm1, %v4887_v14 }
 0x134   : > { %4131 = vmatmul.msk.f32.gmra.mxu2 %vm315_vm1, %v4885_v12  ;;  %v5192_v8 = vadd.f32 %v637_v56, %v567_v4  ;;  %v4244_v4 = vld [vmem:[%s6316_s2 + $0x270] sm:$0xff] }
 0x135   : > { %4143 = vmatmul.msk.f32.gmra.mxu3 %vm315_vm1, %v4893_v15  ;;  %1997 = vmatpush.msrb.mxu0 %v4244_v4 }
 0x136   : > { %4155 = vmatmul.msk.f32.gmra.mxu0 %vm315_vm1, %v4883_v7 }
 0x137   : > { %v476_v1 = vpop.f32.mrf.mxu2 }
 0x138   : > { %v477_v17 = vadd.f32 %v476_v1, %v411_v6  ;;  %v554_v49 = vpop.f32.mrf.mxu3  ;;  %v414_v3 = vpop.f32.mrf.mxu1 }
 0x13a   : > { %v568_v11 = vadd.f32 %v554_v49, %v477_v17 }
 0x13b   : > { %v643_v9 = vpop.f32.mrf.mxu0  ;;  %4120 = vmatmul.msk.f32.gmra.mxu1 %vm315_vm1, %v4906_v32 }
 0x13c   : > { %4132 = vmatmul.msk.f32.gmra.mxu2 %vm315_vm1, %v4904_v31  ;;  %v5202_v56 = vadd.f32 %v640_v10, %v568_v11  ;;  %v5211_v31 = vld [vmem:[#allocation2 + $0x45] sm:$0xff]  ;;  %v465_v11 = vadd.f32 %v5114_v62, %v5104_v63 }
 0x13d   : > { %4144 = vmatmul.msk.f32.gmra.mxu3 %vm315_vm1, %v4912_v34  ;;  %v462_v34 = vadd.f32 %v5091_v37, %v5085_v23 }
 0x13e   : > { %4156 = vmatmul.msk.f32.gmra.mxu0 %vm315_vm1, %v4902_v29  ;;  %v5221_v29 = vld [vmem:[#allocation2 + $0x47] sm:$0xff] }
 0x13f   : > { %v479_v6 = vpop.f32.mrf.mxu2  ;;  %v563_v23 = vadd.f32 %v5100_v36, %v462_v34  ;;  %v4243_v36 = vld [vmem:[%s6316_s2 + $0x268] sm:$0xff] }
 0x140   : > { %v480_v7 = vadd.f32 %v479_v6, %v414_v3  ;;  %v557_v12 = vpop.f32.mrf.mxu3  ;;  %v417_v14 = vpop.f32.mrf.mxu1  ;;  %1998 = vmatpush.msrb.mxu0 %v4243_v36  ;;  %v4207_v36 = vld [vmem:[%s6316_s2 + $0x208] sm:$0xff] }
 0x141   : > { %v649_v3 = vadd.f32 %v5083_v33, %v563_v23 }
 0x142   : > { %v569_v15 = vadd.f32 %v557_v12, %v480_v7 }
 0x143   : > { %v646_v32 = vpop.f32.mrf.mxu0  ;;  %4121 = vmatmul.msk.f32.gmra.mxu1 %vm315_vm1, %v5211_v31 }
 0x144   : > { %4133 = vmatmul.msk.f32.gmra.mxu2 %vm315_vm1, %v5213_v25  ;;  %v5225_v13 = vadd.f32 %v643_v9, %v569_v15 }
 0x145   : > { %4145 = vmatmul.msk.f32.gmra.mxu3 %vm315_vm1, %v5221_v29 }
 0x146   : > { %4157 = vmatmul.msk.f32.gmra.mxu0 %vm315_vm1, %v5223_v47 }
 0x147   : > { %v482_v18 = vpop.f32.mrf.mxu2 }
 0x148   : > { %v483_v37 = vadd.f32 %v482_v18, %v417_v14  ;;  %v560_v10 = vpop.f32.mrf.mxu3  ;;  %v711_v1 = vpop.f32.mrf.mxu1 }
 0x149   : > { %v735_v33 = vadd.f32 %v711_v1, %v649_v3  ;;  %v4208_v3 = vld [vmem:[%s6316_s2 + $0x210] sm:$0xff] }
 0x14a   : > { %v570_v17 = vadd.f32 %v560_v10, %v483_v37 }
 0x14b   : > { %v969_v49 = vpop.f32.mrf.mxu0  ;;  %4162 = vmatmul.msk.f32.vlgmr.msra.gmra.mxu1 %vm315_vm1, %v4925_v59  ;;  %v564_v59 = vadd.f32 %v5116_v0, %v465_v11  ;;  %v4220_v11 = vld [vmem:[%s6316_s2 + $0x230] sm:$0xff] }
 0x14c   : > { %4174 = vmatmul.msk.f32.vlgmr.msra.gmra.mxu2 %vm315_vm1, %v4927_v60  ;;  %v5239_v9 = vadd.f32 %v646_v32, %v570_v17 }
 0x14d   : > { %4186 = vmatmul.msk.f32.vlgmr.msra.gmra.mxu3 %vm315_vm1, %v4933_v61  ;;  %v650_v12 = vadd.f32 %v5102_v30, %v564_v59  ;;  %v4231_v59 = vld [vmem:[%s6316_s2 + $0x248] sm:$0xff] }
 0x14e   : > { %4198 = vmatmul.msk.f32.vlgmr.msra.gmra.mxu0 %vm315_vm1, %v4935_v2 }
 0x14f   : > { %v797_v63 = vpop.f32.mrf.mxu2 }
 0x150   : > { %v821_v62 = vadd.f32 %v797_v63, %v735_v33  ;;  %v883_v4 = vpop.f32.mrf.mxu3  ;;  %v714_v60 = vpop.f32.mrf.mxu1  ;;  %v4219_v33 = vld [vmem:[%s6316_s2 + $0x228] sm:$0xff] }
 0x151   : > { %v736_v2 = vadd.f32 %v714_v60, %v650_v12 }
 0x152   : > { %v907_v6 = vadd.f32 %v883_v4, %v821_v62  ;;  %v4230_v4 = vld [vmem:[%s6316_s2 + $0x240] sm:$0xff] }
 0x153   : > { %v972_v7 = vpop.f32.mrf.mxu0  ;;  %4163 = vmatmul.msk.f32.gmra.mxu1 %vm315_vm1, %v4942_v38 }
 0x154   : > { %4175 = vmatmul.msk.f32.gmra.mxu2 %vm315_vm1, %v4944_v39  ;;  %v5254_v61 = vadd.f32 %v969_v49, %v907_v6  ;;  %v4242_v39 = vld [vmem:[%s6316_s2 + $0x260] sm:$0xff] }
 0x155   : > { %4187 = vmatmul.msk.f32.gmra.mxu3 %vm315_vm1, %v4950_v53  ;;  %1999 = vmatpush.msrb.mxu0 %v4242_v39 }
 0x156   : > { %4199 = vmatmul.msk.f32.gmra.mxu0 %vm315_vm1, %v4952_v54 }
 0x157   : > { %v800_v0 = vpop.f32.mrf.mxu2 }
 0x158   : > { %v822_v14 = vadd.f32 %v800_v0, %v736_v2  ;;  %v886_v15 = vpop.f32.mrf.mxu3  ;;  %v717_v32 = vpop.f32.mrf.mxu1 }
 0x159   : > { %v737_v53 = vadd.f32 %v717_v32, %v5133_v26  ;;  %v4221_v26 = vld [vmem:[%s6316_s2 + $0x238] sm:$0xff] }
 0x15a   : > { %v908_v30 = vadd.f32 %v886_v15, %v822_v14  ;;  %1824 = vmatpush.msrb.mxu2 %v4221_v26 }
 0x15b   : > { %v975_v34 = vpop.f32.mrf.mxu0  ;;  %4164 = vmatmul.msk.f32.gmra.mxu1 %vm315_vm1, %v4961_v19 }
 0x15c   : > { %4176 = vmatmul.msk.f32.gmra.mxu2 %vm315_vm1, %v4963_v55  ;;  %v5264_v38 = vadd.f32 %v972_v7, %v908_v30 }
 0x15d   : > { %4188 = vmatmul.msk.f32.gmra.mxu3 %vm315_vm1, %v4969_v20  ;;  %1825 = vmatpush.msrb.mxu2 %v4220_v11 }
 0x15e   : > { %4200 = vmatmul.msk.f32.gmra.mxu0 %vm315_vm1, %v4971_v51  ;;  %v4209_v51 = vld [vmem:[%s6316_s2 + $0x218] sm:$0xff] }
 0x15f   : > { %v803_v54 = vpop.f32.mrf.mxu2  ;;  %1738 = vmatpush.msrb.mxu1 %v4209_v51  ;;  %1826 = vmatpush.msrb.mxu2 %v4219_v33 }
 0x160   : > { %v823_v19 = vadd.f32 %v803_v54, %v737_v53  ;;  %v889_v18 = vpop.f32.mrf.mxu3  ;;  %v720_v23 = vpop.f32.mrf.mxu1 }
 0x161   : > { %1739 = vmatpush.msrb.mxu1 %v4208_v3 }
 0x162   : > { %v909_v55 = vadd.f32 %v889_v18, %v823_v19  ;;  %v5360_v19 = vld [vmem:[#allocation2 + $0x49] sm:$0xff] }
 0x163   : > { %v978_v37 = vpop.f32.mrf.mxu0  ;;  %4165 = vmatmul.msk.f32.gmra.mxu1 %vm315_vm1, %v5004_v46  ;;  %v4233_v46 = vld [vmem:[%s6316_s2 + $0x258] sm:$0xff]  ;;  %v5362_v18 = vld [vmem:[#allocation2 + $0x4a] sm:$0xff] }
 0x164   : > { %4177 = vmatmul.msk.f32.gmra.mxu2 %vm315_vm1, %v5006_v43  ;;  %v5278_v20 = vadd.f32 %v975_v34, %v909_v55  ;;  %v738_v43 = vadd.f32 %v720_v23, %v5167_v45  ;;  %1910 = vmatpush.msrb.mxu3 %v4233_v46  ;;  %v4232_v45 = vld [vmem:[%s6316_s2 + $0x250] sm:$0xff] }
 0x165   : > { %4189 = vmatmul.msk.f32.gmra.mxu3 %vm315_vm1, %v5018_v35  ;;  %1740 = vmatpush.msrb.mxu1 %v4207_v36 }
 0x166   : > { %4201 = vmatmul.msk.f32.gmra.mxu0 %vm315_vm1, %v5020_v22  ;;  %1911 = vmatpush.msrb.mxu3 %v4232_v45 }
 0x167   : > { %v806_v35 = vpop.f32.mrf.mxu2 }
 0x168   : > { %v824_v10 = vadd.f32 %v806_v35, %v738_v43  ;;  %v892_v22 = vpop.f32.mrf.mxu3  ;;  %v723_v1 = vpop.f32.mrf.mxu1  ;;  %1912 = vmatpush.msrb.mxu3 %v4231_v59  ;;  %v6383_v35 = vld [vmem:[#allocation21_spill] sm:$0xff] }
 0x169   : > { %v739_v62 = vadd.f32 %v723_v1, %v5192_v8  ;;  %v6385_v1 = vld [vmem:[#allocation22_spill] sm:$0xff] }
 0x16a   : > { %v910_v17 = vadd.f32 %v892_v22, %v824_v10  ;;  %1913 = vmatpush.msrb.mxu3 %v4230_v4  ;;  %v6384_v10 = vld [vmem:[#allocation20_spill] sm:$0xff] }
 0x16b   : > { %v981_v49 = vpop.f32.mrf.mxu0  ;;  %4166 = vmatmul.msk.f32.gmra.mxu1 %vm315_vm1, %v5032_v58  ;;  %v4293_v58 = vld [vmem:[%s6316_s2 + $0x2f8] sm:$0xff] }
 0x16c   : > { %4178 = vmatmul.msk.f32.gmra.mxu2 %vm315_vm1, %v5034_v16  ;;  %v5313_v63 = vadd.f32 %v978_v37, %v910_v17  ;;  %v4206_v16 = vld [vmem:[%s6316_s2 + $0x200] sm:$0xff]  ;;  %2340 = vmatpush.msra.mxu0 %v4293_v58  ;;  %v6386_v17 = vld [vmem:[#allocation23_spill] sm:$0xff] }
 0x16d   : > { %4190 = vmatmul.msk.f32.gmra.mxu3 %vm315_vm1, %v5040_v27  ;;  %v4218_v27 = vld [vmem:[%s6316_s2 + $0x220] sm:$0xff]  ;;  %1741 = vmatpush.msrb.mxu1 %v4206_v16  ;;  %v6387_v16 = vld [vmem:[#allocation24_spill] sm:$0xff] }
 0x16e   : > { %4202 = vmatmul.msk.f32.gmra.mxu0 %vm315_vm1, %v5042_v50  ;;  %1827 = vmatpush.msrb.mxu2 %v4218_v27 }
 0x16f   : > { %v809_v50 = vpop.f32.mrf.mxu2 }
 0x170   : > { %v825_v60 = vadd.f32 %v809_v50, %v739_v62  ;;  %v895_v6 = vpop.f32.mrf.mxu3  ;;  %v726_v7 = vpop.f32.mrf.mxu1  ;;  %v6388_v62 = vld [vmem:[#allocation25_spill] sm:$0xff] }
 0x171   : > { %v740_v0 = vadd.f32 %v726_v7, %v5202_v56 }
 0x172   : > { %v911_v8 = vadd.f32 %v895_v6, %v825_v60 }
 0x173   : > { %v984_v12 = vpop.f32.mrf.mxu0  ;;  %4167 = vmatmul.msk.f32.gmra.mxu1 %vm315_vm1, %v5048_v52 }
 0x174   : > { %4179 = vmatmul.msk.f32.gmra.mxu2 %vm315_vm1, %v5050_v40  ;;  %v5339_v2 = vadd.f32 %v981_v49, %v911_v8  ;;  %v4292_v40 = vld [vmem:[%s6316_s2 + $0x2f0] sm:$0xff]  ;;  %v6389_v8 = vld [vmem:[#allocation28_spill] sm:$0xff] }
 0x175   : > { %4191 = vmatmul.msk.f32.gmra.mxu3 %vm315_vm1, %v5056_v41  ;;  %2341 = vmatpush.msra.mxu0 %v4292_v40 }
 0x176   : > { %4203 = vmatmul.msk.f32.gmra.mxu0 %vm315_vm1, %v5058_v48 }
 0x177   : > { %v812_v14 = vpop.f32.mrf.mxu2 }
 0x178   : > { %v826_v15 = vadd.f32 %v812_v14, %v740_v0  ;;  %v898_v32 = vpop.f32.mrf.mxu3  ;;  %v729_v30 = vpop.f32.mrf.mxu1  ;;  %v6391_v0 = vld [vmem:[#allocation29_spill] sm:$0xff] }
 0x179   : > { %v741_v41 = vadd.f32 %v729_v30, %v5225_v13 }
 0x17a   : > { %v912_v34 = vadd.f32 %v898_v32, %v826_v15 }
 0x17b   : > { %v987_v39 = vpop.f32.mrf.mxu0  ;;  %4168 = vmatmul.msk.f32.gmra.mxu1 %vm315_vm1, %v5067_v44 }
 0x17c   : > { %4180 = vmatmul.msk.f32.gmra.mxu2 %vm315_vm1, %v5069_v24  ;;  %v5350_v52 = vadd.f32 %v984_v12, %v912_v34 }
 0x17d   : > { %4192 = vmatmul.msk.f32.gmra.mxu3 %vm315_vm1, %v5075_v42  ;;  %v5368_v42 = vld [vmem:[#allocation2 + $0x4b] sm:$0xff] }
 0x17e   : > { %4204 = vmatmul.msk.f32.gmra.mxu0 %vm315_vm1, %v5077_v57  ;;  %v5370_v57 = vld [vmem:[#allocation2 + $0x4c] sm:$0xff] }
 0x17f   : > { %v815_v48 = vpop.f32.mrf.mxu2 }
 0x180   : > { %v827_v44 = vadd.f32 %v815_v48, %v741_v41  ;;  %v901_v56 = vpop.f32.mrf.mxu3  ;;  %v732_v53 = vpop.f32.mrf.mxu1  ;;  %v6393_v41 = vld [vmem:[#allocation31_spill] sm:$0xff] }
 0x181   : > { %v742_v23 = vadd.f32 %v732_v53, %v5239_v9  ;;  %v4291_v9 = vld [vmem:[%s6316_s2 + $0x2e8] sm:$0xff]  ;;  %v4269_v53 = vld [vmem:[%s6316_s2 + $0x2b8] sm:$0xff] }
 0x182   : > { %v913_v24 = vadd.f32 %v901_v56, %v827_v44  ;;  %2342 = vmatpush.msra.mxu0 %v4291_v9  ;;  %v6394_v44 = vld [vmem:[#allocation32_spill] sm:$0xff]  ;;  %v6395_v56 = vld [vmem:[#allocation30_spill] sm:$0xff]  ;;  %2168 = vmatpush.msra.mxu2 %v4269_v53 }
 0x183   : > { %v990_v54 = vpop.f32.mrf.mxu0  ;;  %4169 = vmatmul.msk.f32.gmra.mxu1 %vm315_vm1, %v5360_v19  ;;  %v5460_v9 = vld [vmem:[#allocation2 + $0x38] sm:$0xff]  ;;  %v5522_v53 = vld [vmem:[#allocation2 + $0x4e] sm:$0xff] }
 0x184   : > { %4181 = vmatmul.msk.f32.gmra.mxu2 %vm315_vm1, %v5362_v18  ;;  %v5372_v13 = vadd.f32 %v987_v39, %v913_v24 }
 0x185   : > { %4193 = vmatmul.msk.f32.gmra.mxu3 %vm315_vm1, %v5368_v42 }
 0x186   : > { %4205 = vmatmul.msk.f32.gmra.mxu0 %vm315_vm1, %v5370_v57 }
 0x187   : > { %v818_v55 = vpop.f32.mrf.mxu2 }
 0x188   : > { %v828_v37 = vadd.f32 %v818_v55, %v742_v23  ;;  %v904_v51 = vpop.f32.mrf.mxu3  ;;  %v1055_v26 = vpop.f32.mrf.mxu1 }
 0x189   : > { %v1079_v49 = vadd.f32 %v1055_v26, %v5254_v61 }
 0x18a   : > { %v914_v46 = vadd.f32 %v904_v51, %v828_v37 }
 0x18b   : > { %v1313_v43 = vpop.f32.mrf.mxu0  ;;  %4210 = vmatmul.msk.f32.vlgmr.msrb.gmra.mxu1 %vm315_vm1, %v6383_v35  ;;  %v4268_v35 = vld [vmem:[%s6316_s2 + $0x2b0] sm:$0xff] }
 0x18c   : > { %4222 = vmatmul.msk.f32.vlgmr.msrb.gmra.mxu2 %vm315_vm1, %v6384_v10  ;;  %v5383_v22 = vadd.f32 %v990_v54, %v914_v46  ;;  %v5438_v46 = vld [vmem:[#allocation2 + $0x35] sm:$0xff] }
 0x18d   : > { %4234 = vmatmul.msk.f32.vlgmr.msrb.gmra.mxu3 %vm315_vm1, %v6385_v1  ;;  %2169 = vmatpush.msra.mxu2 %v4268_v35  ;;  %v4280_v10 = vld [vmem:[%s6316_s2 + $0x2d0] sm:$0xff]  ;;  %v4255_v1 = vld [vmem:[%s6316_s2 + $0x288] sm:$0xff]  ;;  %v2205_v35 = vld [vmem:[#allocation2 + $0x1b] sm:$0xff] }
 0x18e   : > { %4246 = vmatmul.msk.f32.vlgmr.msrb.gmra.mxu0 %vm315_vm1, %v6386_v17  ;;  %v5458_v17 = vld [vmem:[#allocation2 + $0x37] sm:$0xff] }
 0x18f   : > { %v1141_v3 = vpop.f32.mrf.mxu2 }
 0x190   : > { %v1165_v11 = vadd.f32 %v1141_v3, %v1079_v49  ;;  %v1227_v45 = vpop.f32.mrf.mxu3  ;;  %v1058_v36 = vpop.f32.mrf.mxu1  ;;  %v4267_v49 = vld [vmem:[%s6316_s2 + $0x2a8] sm:$0xff] }
 0x191   : > { %v1080_v61 = vadd.f32 %v1058_v36, %v5264_v38  ;;  %v4290_v38 = vld [vmem:[%s6316_s2 + $0x2e0] sm:$0xff]  ;;  %v4341_v36 = vld [vmem:[%s6316_s2 + $0x378] sm:$0xff]  ;;  %2170 = vmatpush.msra.mxu2 %v4267_v49 }
 0x192   : > { %v1251_v33 = vadd.f32 %v1227_v45, %v1165_v11  ;;  %2343 = vmatpush.msra.mxu0 %v4290_v38  ;;  %v4279_v11 = vld [vmem:[%s6316_s2 + $0x2c8] sm:$0xff]  ;;  %v4254_v45 = vld [vmem:[%s6316_s2 + $0x280] sm:$0xff] }
 0x193   : > { %v1316_v59 = vpop.f32.mrf.mxu0  ;;  %4211 = vmatmul.msk.f32.gmra.mxu1 %vm315_vm1, %v6387_v16 }
 0x194   : > { %4223 = vmatmul.msk.f32.gmra.mxu2 %vm315_vm1, %v4795_v21  ;;  %v5397_v58 = vadd.f32 %v1313_v43, %v1251_v33  ;;  %v6390_v21 = vld [vmem:[#allocation26_spill] sm:$0xff]  ;;  %v4256_v43 = vld [vmem:[%s6316_s2 + $0x290] sm:$0xff]  ;;  %2684 = vmatpush.msrb.mxu0 %v4341_v36 }
 0x195   : > { %4235 = vmatmul.msk.f32.gmra.mxu3 %vm315_vm1, %v6388_v62  ;;  %v4278_v62 = vld [vmem:[%s6316_s2 + $0x2c0] sm:$0xff] }
 0x196   : > { %4247 = vmatmul.msk.f32.gmra.mxu0 %vm315_vm1, %v4806_v28  ;;  %v6392_v28 = vld [vmem:[#allocation27_spill] sm:$0xff] }
 0x197   : > { %v1144_v27 = vpop.f32.mrf.mxu2 }
 0x198   : > { %v1166_v50 = vadd.f32 %v1144_v27, %v1080_v61  ;;  %v1230_v4 = vpop.f32.mrf.mxu3  ;;  %v1061_v60 = vpop.f32.mrf.mxu1 }
 0x199   : > { %v1081_v14 = vadd.f32 %v1061_v60, %v5278_v20  ;;  %v4257_v20 = vld [vmem:[%s6316_s2 + $0x298] sm:$0xff] }
 0x19a   : > { %v1252_v6 = vadd.f32 %v1230_v4, %v1166_v50  ;;  %2082 = vmatpush.msra.mxu1 %v4257_v20  ;;  %v5487_v60 = vld [vmem:[#allocation2 + $0x3d] sm:$0xff]  ;;  %v5520_v20 = vld [vmem:[#allocation2 + $0x4d] sm:$0xff] }
 0x19b   : > { %v1319_v7 = vpop.f32.mrf.mxu0  ;;  %4212 = vmatmul.msk.f32.gmra.mxu1 %vm315_vm1, %v6389_v8  ;;  %v5497_v8 = vld [vmem:[#allocation2 + $0x40] sm:$0xff] }
 0x19c   : > { %4224 = vmatmul.msk.f32.gmra.mxu2 %vm315_vm1, %v6390_v21  ;;  %v5408_v12 = vadd.f32 %v1316_v59, %v1252_v6  ;;  %2083 = vmatpush.msra.mxu1 %v4256_v43  ;;  %v4266_v59 = vld [vmem:[%s6316_s2 + $0x2a0] sm:$0xff] }
 0x19d   : > { %4236 = vmatmul.msk.f32.gmra.mxu3 %vm315_vm1, %v6391_v0  ;;  %2171 = vmatpush.msra.mxu2 %v4266_v59  ;;  %v5489_v6 = vld [vmem:[#allocation2 + $0x3e] sm:$0xff] }
 0x19e   : > { %4248 = vmatmul.msk.f32.gmra.mxu0 %vm315_vm1, %v6392_v28  ;;  %2084 = vmatpush.msra.mxu1 %v4255_v1  ;;  %v2119_v43 = vld [vmem:[#allocation2 + $0x1a] sm:$0xff] }
 0x19f   : > { %v1147_v15 = vpop.f32.mrf.mxu2 }
 0x1a0   : > { %v1167_v32 = vadd.f32 %v1147_v15, %v1081_v14  ;;  %v1233_v30 = vpop.f32.mrf.mxu3  ;;  %v1064_v34 = vpop.f32.mrf.mxu1  ;;  %2085 = vmatpush.msra.mxu1 %v4254_v45 }
 0x1a1   : > { %v1082_v24 = vadd.f32 %v1064_v34, %v5313_v63  ;;  %v5446_v63 = vld [vmem:[#allocation2 + $0x36] sm:$0xff] }
 0x1a2   : > { %v1253_v39 = vadd.f32 %v1233_v30, %v1167_v32 }
 0x1a3   : > { %v1322_v40 = vpop.f32.mrf.mxu0  ;;  %4213 = vmatmul.msk.f32.gmra.mxu1 %vm315_vm1, %v4871_v5  ;;  %v4281_v5 = vld [vmem:[%s6316_s2 + $0x2d8] sm:$0xff] }
 0x1a4   : > { %4225 = vmatmul.msk.f32.gmra.mxu2 %vm315_vm1, %v6393_v41  ;;  %v5422_v48 = vadd.f32 %v1319_v7, %v1253_v39  ;;  %2254 = vmatpush.msra.mxu3 %v4281_v5  ;;  %v5495_v7 = vld [vmem:[#allocation2 + $0x3f] sm:$0xff] }
 0x1a5   : > { %4237 = vmatmul.msk.f32.gmra.mxu3 %vm315_vm1, %v6394_v44 }
 0x1a6   : > { %4249 = vmatmul.msk.f32.gmra.mxu0 %vm315_vm1, %v6395_v56  ;;  %2255 = vmatpush.msra.mxu3 %v4280_v10  ;;  %v2291_v10 = vld [vmem:[#allocation2 + $0x1c] sm:$0xff] }
 0x1a7   : > { %v1150_v54 = vpop.f32.mrf.mxu2 }
 0x1a8   : > { %v1168_v23 = vadd.f32 %v1150_v54, %v1082_v24  ;;  %v1236_v55 = vpop.f32.mrf.mxu3  ;;  %v1067_v37 = vpop.f32.mrf.mxu1  ;;  %2256 = vmatpush.msra.mxu3 %v4279_v11 }
 0x1a9   : > { %v1083_v33 = vadd.f32 %v1067_v37, %v5339_v2 }
 0x1aa   : > { %v1254_v51 = vadd.f32 %v1236_v55, %v1168_v23  ;;  %2257 = vmatpush.msra.mxu3 %v4278_v62  ;;  %v5549_v62 = vld [vmem:[#allocation2 + $0x21] sm:$0xff] }
 0x1ab   : > { %v1325_v26 = vpop.f32.mrf.mxu0  ;;  %4214 = vmatmul.msk.f32.gmra.mxu1 %vm315_vm1, %v5438_v46 }
 0x1ac   : > { %4226 = vmatmul.msk.f32.gmra.mxu2 %vm315_vm1, %v5446_v63  ;;  %v5465_v3 = vadd.f32 %v1322_v40, %v1254_v51 }
 0x1ad   : > { %4238 = vmatmul.msk.f32.gmra.mxu3 %vm315_vm1, %v5458_v17 }
 0x1ae   : > { %4250 = vmatmul.msk.f32.gmra.mxu0 %vm315_vm1, %v5460_v9 }
 0x1af   : > { %v1153_v16 = vpop.f32.mrf.mxu2 }
 0x1b0   : > { %v1169_v61 = vadd.f32 %v1153_v16, %v1083_v33  ;;  %v1239_v27 = vpop.f32.mrf.mxu3  ;;  %v1070_v50 = vpop.f32.mrf.mxu1 }
 0x1b1   : > { %v1084_v0 = vadd.f32 %v1070_v50, %v5350_v52  ;;  %v4340_v52 = vld [vmem:[%s6316_s2 + $0x370] sm:$0xff] }
 0x1b2   : > { %v1255_v2 = vadd.f32 %v1239_v27, %v1169_v61  ;;  %2685 = vmatpush.msrb.mxu0 %v4340_v52  ;;  %v5551_v61 = vld [vmem:[#allocation2 + $0x22] sm:$0xff]  ;;  %v5576_v52 = vld [vmem:[#allocation2 + $0x2b] sm:$0xff] }
 0x1b3   : > { %v1328_v4 = vpop.f32.mrf.mxu0  ;;  %4215 = vmatmul.msk.f32.gmra.mxu1 %vm315_vm1, %v5487_v60  ;;  %v5557_v27 = vld [vmem:[#allocation2 + $0x23] sm:$0xff] }
 0x1b4   : > { %4227 = vmatmul.msk.f32.gmra.mxu2 %vm315_vm1, %v5489_v6  ;;  %v5499_v21 = vadd.f32 %v1325_v26, %v1255_v2  ;;  %v2033_v26 = vld [vmem:[#allocation2 + $0x19] sm:$0xff] }
 0x1b5   : > { %4239 = vmatmul.msk.f32.gmra.mxu3 %vm315_vm1, %v5495_v7 }
 0x1b6   : > { %4251 = vmatmul.msk.f32.gmra.mxu0 %vm315_vm1, %v5497_v8 }
 0x1b7   : > { %v1156_v28 = vpop.f32.mrf.mxu2 }
 0x1b8   : > { %v1170_v38 = vadd.f32 %v1156_v28, %v1084_v0  ;;  %v1242_v14 = vpop.f32.mrf.mxu3  ;;  %v1073_v15 = vpop.f32.mrf.mxu1 }
 0x1b9   : > { %v1085_v39 = vadd.f32 %v1073_v15, %v5372_v13 }
 0x1ba   : > { %v1256_v32 = vadd.f32 %v1242_v14, %v1170_v38 }
 0x1bb   : > { %v1331_v30 = vpop.f32.mrf.mxu0  ;;  %4216 = vmatmul.msk.f32.gmra.mxu1 %vm315_vm1, %v5211_v31 }
 0x1bc   : > { %4228 = vmatmul.msk.f32.gmra.mxu2 %vm315_vm1, %v5213_v25  ;;  %v5510_v34 = vadd.f32 %v1328_v4, %v1256_v32  ;;  %v5568_v32 = vld [vmem:[#allocation2 + $0x29] sm:$0xff] }
 0x1bd   : > { %4240 = vmatmul.msk.f32.gmra.mxu3 %vm315_vm1, %v5221_v29  ;;  %v5528_v29 = vld [vmem:[#allocation2 + $0x4f] sm:$0xff] }
 0x1be   : > { %4252 = vmatmul.msk.f32.gmra.mxu0 %vm315_vm1, %v5223_v47  ;;  %v5530_v47 = vld [vmem:[#allocation2 + $0x50] sm:$0xff] }
 0x1bf   : > { %v1159_v40 = vpop.f32.mrf.mxu2 }
 0x1c0   : > { %v1171_v31 = vadd.f32 %v1159_v40, %v1085_v39  ;;  %v1245_v41 = vpop.f32.mrf.mxu3  ;;  %v1076_v44 = vpop.f32.mrf.mxu1  ;;  %v5578_v39 = vld [vmem:[#allocation2 + $0x2c] sm:$0xff]  ;;  %v4338_v40 = vld [vmem:[%s6316_s2 + $0x360] sm:$0xff] }
 0x1c1   : > { %v1086_v5 = vadd.f32 %v1076_v44, %v5383_v22  ;;  %v4339_v22 = vld [vmem:[%s6316_s2 + $0x368] sm:$0xff] }
 0x1c2   : > { %v1257_v25 = vadd.f32 %v1245_v41, %v1171_v31  ;;  %2686 = vmatpush.msrb.mxu0 %v4339_v22 }
 0x1c3   : > { %v1334_v56 = vpop.f32.mrf.mxu0  ;;  %4217 = vmatmul.msk.f32.gmra.mxu1 %vm315_vm1, %v5520_v20 }
 0x1c4   : > { %4229 = vmatmul.msk.f32.gmra.mxu2 %vm315_vm1, %v5522_v53  ;;  %v5532_v13 = vadd.f32 %v1331_v30, %v1257_v25  ;;  %v5570_v30 = vld [vmem:[#allocation2 + $0x2a] sm:$0xff]  ;;  %2687 = vmatpush.msrb.mxu0 %v4338_v40  ;;  %v4389_v40 = vld [vmem:[%s6316_s2 + $0x3f8] sm:$0xff] }
 0x1c5   : > { %4241 = vmatmul.msk.f32.gmra.mxu3 %vm315_vm1, %v5528_v29 }
 0x1c6   : > { %4253 = vmatmul.msk.f32.gmra.mxu0 %vm315_vm1, %v5530_v47 }
 0x1c7   : > { %v1162_v24 = vpop.f32.mrf.mxu2 }
 0x1c8   : > { %v1172_v54 = vadd.f32 %v1162_v24, %v1086_v5  ;;  %v1248_v23 = vpop.f32.mrf.mxu3  ;;  %v1399_v55 = vpop.f32.mrf.mxu1 }
 0x1c9   : > { %v1423_v49 = vadd.f32 %v1399_v55, %v5397_v58  ;;  %v5559_v58 = vld [vmem:[#allocation2 + $0x24] sm:$0xff]  ;;  %v5598_v55 = vld [vmem:[#allocation2 + $0x33] sm:$0xff] }
 0x1ca   : > { %v1258_v37 = vadd.f32 %v1248_v23, %v1172_v54  ;;  %v5590_v54 = vld [vmem:[#allocation2 + $0x31] sm:$0xff] }
 0x1cb   : > { %v1657_v51 = vpop.f32.mrf.mxu0  ;;  %4258 = vmatmul.msk.f32.vlgmr.msra.gmra.mxu1 %vm315_vm1, %v2033_v26  ;;  %v5592_v23 = vld [vmem:[#allocation2 + $0x32] sm:$0xff] }
 0x1cc   : > { %4270 = vmatmul.msk.f32.vlgmr.msra.gmra.mxu2 %vm315_vm1, %v2119_v43  ;;  %v5541_v1 = vadd.f32 %v1334_v56, %v1258_v37  ;;  %v4305_v37 = vld [vmem:[%s6316_s2 + $0x318] sm:$0xff] }
 0x1cd   : > { %4282 = vmatmul.msk.f32.vlgmr.msra.gmra.mxu3 %vm315_vm1, %v2205_v35  ;;  %v4329_v26 = vld [vmem:[%s6316_s2 + $0x358] sm:$0xff]  ;;  %2426 = vmatpush.msrb.mxu1 %v4305_v37 }
 0x1ce   : > { %4294 = vmatmul.msk.f32.vlgmr.msra.gmra.mxu0 %vm315_vm1, %v2291_v10  ;;  %2598 = vmatpush.msrb.mxu3 %v4329_v26  ;;  %v5667_v26 = vld [vmem:[#allocation2 + $0x41] sm:$0xff] }
 0x1cf   : > { %v1485_v11 = vpop.f32.mrf.mxu2  ;;  %3028 = vmatpush.msra.mxu0 %v4389_v40 }
 0x1d0   : > { %v1509_v45 = vadd.f32 %v1485_v11, %v1423_v49  ;;  %v1571_v36 = vpop.f32.mrf.mxu3  ;;  %v1402_v33 = vpop.f32.mrf.mxu1 }
 0x1d1   : > { %v1424_v2 = vadd.f32 %v1402_v33, %v5408_v12  ;;  %v5618_v33 = vld [vmem:[#allocation2 + $0x39] sm:$0xff] }
 0x1d2   : > { %v1595_v59 = vadd.f32 %v1571_v36, %v1509_v45 }
 0x1d3   : > { %v1660_v16 = vpop.f32.mrf.mxu0  ;;  %4259 = vmatmul.msk.f32.gmra.mxu1 %vm315_vm1, %v5549_v62 }
 0x1d4   : > { %4271 = vmatmul.msk.f32.gmra.mxu2 %vm315_vm1, %v5551_v61  ;;  %v5561_v50 = vadd.f32 %v1657_v51, %v1595_v59  ;;  %v4317_v51 = vld [vmem:[%s6316_s2 + $0x338] sm:$0xff]  ;;  %v4304_v59 = vld [vmem:[%s6316_s2 + $0x310] sm:$0xff] }
 0x1d5   : > { %4283 = vmatmul.msk.f32.gmra.mxu3 %vm315_vm1, %v5557_v27  ;;  %2512 = vmatpush.msrb.mxu2 %v4317_v51 }
 0x1d6   : > { %4295 = vmatmul.msk.f32.gmra.mxu0 %vm315_vm1, %v5559_v58  ;;  %2427 = vmatpush.msrb.mxu1 %v4304_v59 }
 0x1d7   : > { %v1488_v4 = vpop.f32.mrf.mxu2 }
 0x1d8   : > { %v1510_v0 = vadd.f32 %v1488_v4, %v1424_v2  ;;  %v1574_v28 = vpop.f32.mrf.mxu3  ;;  %v1405_v38 = vpop.f32.mrf.mxu1  ;;  %v4328_v2 = vld [vmem:[%s6316_s2 + $0x350] sm:$0xff]  ;;  %v4303_v4 = vld [vmem:[%s6316_s2 + $0x308] sm:$0xff] }
 0x1d9   : > { %v1425_v31 = vadd.f32 %v1405_v38, %v5422_v48  ;;  %v5600_v48 = vld [vmem:[#allocation2 + $0x34] sm:$0xff]  ;;  %v4315_v38 = vld [vmem:[%s6316_s2 + $0x328] sm:$0xff]  ;;  %2599 = vmatpush.msrb.mxu3 %v4328_v2  ;;  %2428 = vmatpush.msrb.mxu1 %v4303_v4 }
 0x1da   : > { %v1596_v14 = vadd.f32 %v1574_v28, %v1510_v0  ;;  %v5638_v0 = vld [vmem:[#allocation2 + $0x3b] sm:$0xff] }
 0x1db   : > { %v1663_v15 = vpop.f32.mrf.mxu0  ;;  %4260 = vmatmul.msk.f32.gmra.mxu1 %vm315_vm1, %v5568_v32  ;;  %v5640_v28 = vld [vmem:[#allocation2 + $0x3c] sm:$0xff] }
 0x1dc   : > { %4272 = vmatmul.msk.f32.gmra.mxu2 %vm315_vm1, %v5570_v30  ;;  %v5580_v12 = vadd.f32 %v1660_v16, %v1596_v14  ;;  %v4316_v16 = vld [vmem:[%s6316_s2 + $0x330] sm:$0xff]  ;;  %v4327_v14 = vld [vmem:[%s6316_s2 + $0x348] sm:$0xff] }
 0x1dd   : > { %4284 = vmatmul.msk.f32.gmra.mxu3 %vm315_vm1, %v5576_v52  ;;  %2513 = vmatpush.msrb.mxu2 %v4316_v16 }
 0x1de   : > { %4296 = vmatmul.msk.f32.gmra.mxu0 %vm315_vm1, %v5578_v39  ;;  %2600 = vmatpush.msrb.mxu3 %v4327_v14 }
 0x1df   : > { %v1491_v41 = vpop.f32.mrf.mxu2  ;;  %2514 = vmatpush.msrb.mxu2 %v4315_v38 }
 0x1e0   : > { %v1511_v44 = vadd.f32 %v1491_v41, %v1425_v31  ;;  %v1577_v25 = vpop.f32.mrf.mxu3  ;;  %v1408_v56 = vpop.f32.mrf.mxu1 }
 0x1e1   : > { %v1426_v35 = vadd.f32 %v1408_v56, %v5465_v3  ;;  %v5626_v3 = vld [vmem:[#allocation2 + $0x3a] sm:$0xff] }
 0x1e2   : > { %v1597_v5 = vadd.f32 %v1577_v25, %v1511_v44  ;;  %v4314_v44 = vld [vmem:[%s6316_s2 + $0x320] sm:$0xff] }
 0x1e3   : > { %v1666_v24 = vpop.f32.mrf.mxu0  ;;  %4261 = vmatmul.msk.f32.gmra.mxu1 %vm315_vm1, %v5590_v54  ;;  %v4326_v56 = vld [vmem:[%s6316_s2 + $0x340] sm:$0xff]  ;;  %2515 = vmatpush.msrb.mxu2 %v4314_v44 }
 0x1e4   : > { %4273 = vmatmul.msk.f32.gmra.mxu2 %vm315_vm1, %v5592_v23  ;;  %v5615_v43 = vadd.f32 %v1663_v15, %v1597_v5  ;;  %v4302_v15 = vld [vmem:[%s6316_s2 + $0x300] sm:$0xff]  ;;  %2601 = vmatpush.msrb.mxu3 %v4326_v56 }
 0x1e5   : > { %4285 = vmatmul.msk.f32.gmra.mxu3 %vm315_vm1, %v5598_v55  ;;  %2429 = vmatpush.msrb.mxu1 %v4302_v15 }
 0x1e6   : > { %4297 = vmatmul.msk.f32.gmra.mxu0 %vm315_vm1, %v5600_v48 }
 0x1e7   : > { %v1494_v10 = vpop.f32.mrf.mxu2 }
 0x1e8   : > { %v1512_v22 = vadd.f32 %v1494_v10, %v1426_v35  ;;  %v1580_v49 = vpop.f32.mrf.mxu3  ;;  %v1411_v11 = vpop.f32.mrf.mxu1  ;;  %v5669_v35 = vld [vmem:[#allocation2 + $0x42] sm:$0xff] }
 0x1e9   : > { %v1427_v41 = vadd.f32 %v1411_v11, %v5499_v21  ;;  %v5675_v10 = vld [vmem:[#allocation2 + $0x43] sm:$0xff] }
 0x1ea   : > { %v1598_v45 = vadd.f32 %v1580_v49, %v1512_v22  ;;  %v5677_v22 = vld [vmem:[#allocation2 + $0x44] sm:$0xff] }
 0x1eb   : > { %v1669_v36 = vpop.f32.mrf.mxu0  ;;  %4262 = vmatmul.msk.f32.gmra.mxu1 %vm315_vm1, %v5618_v33 }
 0x1ec   : > { %4274 = vmatmul.msk.f32.gmra.mxu2 %vm315_vm1, %v5626_v3  ;;  %v5658_v31 = vadd.f32 %v1666_v24, %v1598_v45 }
 0x1ed   : > { %4286 = vmatmul.msk.f32.gmra.mxu3 %vm315_vm1, %v5638_v0 }
 0x1ee   : > { %4298 = vmatmul.msk.f32.gmra.mxu0 %vm315_vm1, %v5640_v28 }
 0x1ef   : > { %v1497_v25 = vpop.f32.mrf.mxu2 }
 0x1f0   : > { %v1513_v5 = vadd.f32 %v1497_v25, %v1427_v41  ;;  %v1583_v37 = vpop.f32.mrf.mxu3  ;;  %v1414_v24 = vpop.f32.mrf.mxu1  ;;  %v5700_v25 = vld [vmem:[#allocation2 + $0x51] sm:$0xff] }
 0x1f1   : > { %v1428_v11 = vadd.f32 %v1414_v24, %v5510_v34  ;;  %v4388_v34 = vld [vmem:[%s6316_s2 + $0x3f0] sm:$0xff] }
 0x1f2   : > { %v1599_v21 = vadd.f32 %v1583_v37, %v1513_v5  ;;  %3029 = vmatpush.msra.mxu0 %v4388_v34 }
 0x1f3   : > { %v1672_v51 = vpop.f32.mrf.mxu0  ;;  %4263 = vmatmul.msk.f32.gmra.mxu1 %vm315_vm1, %v5667_v26 }
 0x1f4   : > { %4275 = vmatmul.msk.f32.gmra.mxu2 %vm315_vm1, %v5669_v35  ;;  %v5683_v49 = vadd.f32 %v1669_v36, %v1599_v21 }
 0x1f5   : > { %4287 = vmatmul.msk.f32.gmra.mxu3 %vm315_vm1, %v5675_v10 }
 0x1f6   : > { %4299 = vmatmul.msk.f32.gmra.mxu0 %vm315_vm1, %v5677_v22 }
 0x1f7   : > { %v1500_v45 = vpop.f32.mrf.mxu2 }
 0x1f8   : > { %v1514_v59 = vadd.f32 %v1500_v45, %v1428_v11  ;;  %v1586_v16 = vpop.f32.mrf.mxu3  ;;  %v1417_v2 = vpop.f32.mrf.mxu1 }
 0x1f9   : > { %v1429_v14 = vadd.f32 %v1417_v2, %v5532_v13  ;;  %v5710_v13 = vld [vmem:[#allocation2 + $0x54] sm:$0xff]  ;;  %v2549_v2 = vld [vmem:[#allocation2 + $0x1f] sm:$0xff] }
 0x1fa   : > { %v1600_v4 = vadd.f32 %v1586_v16, %v1514_v59  ;;  %v2377_v59 = vld [vmem:[#allocation2 + $0x1d] sm:$0xff] }
 0x1fb   : > { %v1675_v38 = vpop.f32.mrf.mxu0  ;;  %4264 = vmatmul.msk.f32.gmra.mxu1 %vm315_vm1, %v5360_v19  ;;  %v2463_v16 = vld [vmem:[#allocation2 + $0x1e] sm:$0xff] }
 0x1fc   : > { %4276 = vmatmul.msk.f32.gmra.mxu2 %vm315_vm1, %v5362_v18  ;;  %v5697_v36 = vadd.f32 %v1672_v51, %v1600_v4  ;;  %v2635_v4 = vld [vmem:[#allocation2 + $0x20] sm:$0xff] }
 0x1fd   : > { %4288 = vmatmul.msk.f32.gmra.mxu3 %vm315_vm1, %v5368_v42  ;;  %v5702_v42 = vld [vmem:[#allocation2 + $0x52] sm:$0xff] }
 0x1fe   : > { %4300 = vmatmul.msk.f32.gmra.mxu0 %vm315_vm1, %v5370_v57  ;;  %v5708_v57 = vld [vmem:[#allocation2 + $0x53] sm:$0xff] }
 0x1ff   : > { %v1503_v15 = vpop.f32.mrf.mxu2 }
 0x200   : > { %v1515_v19 = vadd.f32 %v1503_v15, %v1429_v14  ;;  %v1589_v40 = vpop.f32.mrf.mxu3  ;;  %v1420_v41 = vpop.f32.mrf.mxu1 }
 0x201   : > { %v1430_v5 = vadd.f32 %v1420_v41, %v5541_v1  ;;  %v4387_v1 = vld [vmem:[%s6316_s2 + $0x3e8] sm:$0xff] }
 0x202   : > { %v1601_v18 = vadd.f32 %v1589_v40, %v1515_v19  ;;  %3030 = vmatpush.msra.mxu0 %v4387_v1  ;;  %v5748_v1 = vld [vmem:[#allocation2 + $0x2d] sm:$0xff] }
 0x203   : > { %v1678_v44 = vpop.f32.mrf.mxu0  ;;  %4265 = vmatmul.msk.f32.gmra.mxu1 %vm315_vm1, %v5700_v25 }
 0x204   : > { %4277 = vmatmul.msk.f32.gmra.mxu2 %vm315_vm1, %v5702_v42  ;;  %v5716_v56 = vadd.f32 %v1675_v38, %v1601_v18 }
 0x205   : > { %4289 = vmatmul.msk.f32.gmra.mxu3 %vm315_vm1, %v5708_v57 }
 0x206   : > { %4301 = vmatmul.msk.f32.gmra.mxu0 %vm315_vm1, %v5710_v13 }
 0x207   : > { %v1506_v37 = vpop.f32.mrf.mxu2 }
 0x208   : > { %v1516_v24 = vadd.f32 %v1506_v37, %v1430_v5  ;;  %v1592_v21 = vpop.f32.mrf.mxu3  ;;  %v1743_v51 = vpop.f32.mrf.mxu1  ;;  %v5729_v5 = vld [vmem:[#allocation2 + $0x25] sm:$0xff] }
 0x209   : > { %v1767_v34 = vadd.f32 %v1743_v51, %v5561_v50  ;;  %v5731_v37 = vld [vmem:[#allocation2 + $0x26] sm:$0xff] }
 0x20a   : > { %v1602_v11 = vadd.f32 %v1592_v21, %v1516_v24  ;;  %v5739_v50 = vld [vmem:[#allocation2 + $0x28] sm:$0xff] }
 0x20b   : > { %v2001_v45 = vpop.f32.mrf.mxu0  ;;  %4306 = vmatmul.msk.f32.vlgmr.msrb.gmra.mxu1 %vm315_vm1, %v2377_v59 }
 0x20c   : > { %4318 = vmatmul.msk.f32.vlgmr.msrb.gmra.mxu2 %vm315_vm1, %v2463_v16  ;;  %v5726_v38 = vadd.f32 %v1678_v44, %v1602_v11  ;;  %v5737_v44 = vld [vmem:[#allocation2 + $0x27] sm:$0xff] }
 0x20d   : > { %4330 = vmatmul.msk.f32.vlgmr.msrb.gmra.mxu3 %vm315_vm1, %v2549_v2 }
 0x20e   : > { %4342 = vmatmul.msk.f32.vlgmr.msrb.gmra.mxu0 %vm315_vm1, %v2635_v4 }
 0x20f   : > { %v1829_v14 = vpop.f32.mrf.mxu2 }
 0x210   : > { %v1853_v15 = vadd.f32 %v1829_v14, %v1767_v34  ;;  %v1915_v19 = vpop.f32.mrf.mxu3  ;;  %v1746_v40 = vpop.f32.mrf.mxu1  ;;  %v5750_v34 = vld [vmem:[#allocation2 + $0x2e] sm:$0xff] }
 0x211   : > { %v1768_v21 = vadd.f32 %v1746_v40, %v5580_v12  ;;  %v5758_v14 = vld [vmem:[#allocation2 + $0x30] sm:$0xff]  ;;  %v4386_v12 = vld [vmem:[%s6316_s2 + $0x3e0] sm:$0xff] }
 0x212   : > { %v1939_v41 = vadd.f32 %v1915_v19, %v1853_v15  ;;  %3031 = vmatpush.msra.mxu0 %v4386_v12 }
 0x213   : > { %v2004_v18 = vpop.f32.mrf.mxu0  ;;  %4307 = vmatmul.msk.f32.gmra.mxu1 %vm315_vm1, %v5729_v5 }
 0x214   : > { %4319 = vmatmul.msk.f32.gmra.mxu2 %vm315_vm1, %v5731_v37  ;;  %v5745_v24 = vadd.f32 %v2001_v45, %v1939_v41  ;;  %v5756_v45 = vld [vmem:[#allocation2 + $0x2f] sm:$0xff] }
 0x215   : > { %4331 = vmatmul.msk.f32.gmra.mxu3 %vm315_vm1, %v5737_v44 }
 0x216   : > { %4343 = vmatmul.msk.f32.gmra.mxu0 %vm315_vm1, %v5739_v50 }
 0x217   : > { %v1832_v51 = vpop.f32.mrf.mxu2 }
 0x218   : > { %v1854_v11 = vadd.f32 %v1832_v51, %v1768_v21  ;;  %v1918_v59 = vpop.f32.mrf.mxu3  ;;  %v1749_v16 = vpop.f32.mrf.mxu1 }
 0x219   : > { %v1769_v19 = vadd.f32 %v1749_v16, %v5615_v43  ;;  %v4353_v43 = vld [vmem:[%s6316_s2 + $0x398] sm:$0xff] }
 0x21a   : > { %v1940_v2 = vadd.f32 %v1918_v59, %v1854_v11  ;;  %2770 = vmatpush.msra.mxu1 %v4353_v43 }
 0x21b   : > { %v2007_v4 = vpop.f32.mrf.mxu0  ;;  %4308 = vmatmul.msk.f32.gmra.mxu1 %vm315_vm1, %v5748_v1 }
 0x21c   : > { %4320 = vmatmul.msk.f32.gmra.mxu2 %vm315_vm1, %v5750_v34  ;;  %v5767_v15 = vadd.f32 %v2004_v18, %v1940_v2  ;;  %v4365_v18 = vld [vmem:[%s6316_s2 + $0x3b8] sm:$0xff] }
 0x21d   : > { %4332 = vmatmul.msk.f32.gmra.mxu3 %vm315_vm1, %v5756_v45  ;;  %2856 = vmatpush.msra.mxu2 %v4365_v18 }
 0x21e   : > { %4344 = vmatmul.msk.f32.gmra.mxu0 %vm315_vm1, %v5758_v14 }
 0x21f   : > { %v1835_v40 = vpop.f32.mrf.mxu2 }
 0x220   : > { %v1855_v41 = vadd.f32 %v1835_v40, %v1769_v19  ;;  %v1921_v21 = vpop.f32.mrf.mxu3  ;;  %v1752_v51 = vpop.f32.mrf.mxu1 }
 0x222   : > { %v1941_v11 = vadd.f32 %v1921_v21, %v1855_v41  ;;  %v4376_v41 = vld [vmem:[%s6316_s2 + $0x3d0] sm:$0xff]  ;;  %v4351_v21 = vld [vmem:[%s6316_s2 + $0x388] sm:$0xff] }
 0x223   : > { %v2010_v59 = vpop.f32.mrf.mxu0  ;;  %4309 = vmatmul.msk.f32.gmra.mxu1 %vm315_vm1, %v5438_v46  ;;  %v1770_v46 = vadd.f32 %v1752_v51, %v5658_v31  ;;  %v4364_v31 = vld [vmem:[%s6316_s2 + $0x3b0] sm:$0xff]  ;;  %v4363_v51 = vld [vmem:[%s6316_s2 + $0x3a8] sm:$0xff] }
 0x224   : > { %4321 = vmatmul.msk.f32.gmra.mxu2 %vm315_vm1, %v5446_v63  ;;  %v5784_v16 = vadd.f32 %v2007_v4, %v1941_v11  ;;  %v4377_v63 = vld [vmem:[%s6316_s2 + $0x3d8] sm:$0xff]  ;;  %v4352_v4 = vld [vmem:[%s6316_s2 + $0x390] sm:$0xff]  ;;  %v4375_v11 = vld [vmem:[%s6316_s2 + $0x3c8] sm:$0xff] }
 0x225   : > { %4333 = vmatmul.msk.f32.gmra.mxu3 %vm315_vm1, %v5458_v17  ;;  %2771 = vmatpush.msra.mxu1 %v4352_v4  ;;  %v5841_v4 = vld [vmem:[#allocation2 + $0x48] sm:$0xff] }
 0x226   : > { %4345 = vmatmul.msk.f32.gmra.mxu0 %vm315_vm1, %v5460_v9  ;;  %2942 = vmatpush.msra.mxu3 %v4377_v63 }
 0x227   : > { %v1838_v17 = vpop.f32.mrf.mxu2  ;;  %2857 = vmatpush.msra.mxu2 %v4364_v31  ;;  %2772 = vmatpush.msra.mxu1 %v4351_v21 }
 0x228   : > { %v1856_v9 = vadd.f32 %v1838_v17, %v1770_v46  ;;  %v1924_v2 = vpop.f32.mrf.mxu3  ;;  %v1755_v12 = vpop.f32.mrf.mxu1  ;;  %2943 = vmatpush.msra.mxu3 %v4376_v41  ;;  %v4374_v46 = vld [vmem:[%s6316_s2 + $0x3c0] sm:$0xff] }
 0x229   : > { %v1771_v18 = vadd.f32 %v1755_v12, %v5683_v49  ;;  %2858 = vmatpush.msra.mxu2 %v4363_v51  ;;  %v5833_v12 = vld [vmem:[#allocation2 + $0x46] sm:$0xff] }
 0x22a   : > { %v1942_v19 = vadd.f32 %v1924_v2, %v1856_v9  ;;  %2944 = vmatpush.msra.mxu3 %v4375_v11  ;;  %v5831_v2 = vld [vmem:[#allocation2 + $0x45] sm:$0xff] }
 0x22b   : > { %v2013_v40 = vpop.f32.mrf.mxu0  ;;  %4310 = vmatmul.msk.f32.gmra.mxu1 %vm315_vm1, %v5487_v60  ;;  %v4350_v60 = vld [vmem:[%s6316_s2 + $0x380] sm:$0xff] }
 0x22c   : > { %4322 = vmatmul.msk.f32.gmra.mxu2 %vm315_vm1, %v5489_v6  ;;  %v4437_v6 = vld [vmem:[%s6316_s2 + $0x478] sm:$0xff]  ;;  %v5822_v43 = vadd.f32 %v2010_v59, %v1942_v19  ;;  %2773 = vmatpush.msra.mxu1 %v4350_v60  ;;  %v5839_v19 = vld [vmem:[#allocation2 + $0x47] sm:$0xff] }
 0x22d   : > { %4334 = vmatmul.msk.f32.gmra.mxu3 %vm315_vm1, %v5495_v7  ;;  %v4362_v7 = vld [vmem:[%s6316_s2 + $0x3a0] sm:$0xff]  ;;  %3372 = vmatpush.msrb.mxu0 %v4437_v6 }
 0x22e   : > { %4346 = vmatmul.msk.f32.gmra.mxu0 %vm315_vm1, %v5497_v8  ;;  %2859 = vmatpush.msra.mxu2 %v4362_v7 }
 0x22f   : > { %v1841_v8 = vpop.f32.mrf.mxu2  ;;  %2945 = vmatpush.msra.mxu3 %v4374_v46 }
 0x230   : > { %v1857_v63 = vadd.f32 %v1841_v8, %v1771_v18  ;;  %v1927_v17 = vpop.f32.mrf.mxu3  ;;  %v1758_v59 = vpop.f32.mrf.mxu1 }
 0x231   : > { %v1772_v41 = vadd.f32 %v1758_v59, %v5697_v36  ;;  %v4436_v36 = vld [vmem:[%s6316_s2 + $0x470] sm:$0xff]  ;;  %v5864_v59 = vld [vmem:[#allocation2 + $0x58] sm:$0xff] }
 0x232   : > { %v1943_v49 = vadd.f32 %v1927_v17, %v1857_v63  ;;  %3373 = vmatpush.msrb.mxu0 %v4436_v36 }
 0x233   : > { %v2016_v9 = vpop.f32.mrf.mxu0  ;;  %4311 = vmatmul.msk.f32.gmra.mxu1 %vm315_vm1, %v5831_v2 }
 0x234   : > { %4323 = vmatmul.msk.f32.gmra.mxu2 %vm315_vm1, %v5833_v12  ;;  %v5847_v31 = vadd.f32 %v2013_v40, %v1943_v49 }
 0x235   : > { %4335 = vmatmul.msk.f32.gmra.mxu3 %vm315_vm1, %v5839_v19 }
 0x236   : > { %4347 = vmatmul.msk.f32.gmra.mxu0 %vm315_vm1, %v5841_v4 }
 0x237   : > { %v1844_v21 = vpop.f32.mrf.mxu2 }
 0x238   : > { %v1858_v51 = vadd.f32 %v1844_v21, %v1772_v41  ;;  %v1930_v11 = vpop.f32.mrf.mxu3  ;;  %v1761_v60 = vpop.f32.mrf.mxu1 }
 0x239   : > { %v1773_v7 = vadd.f32 %v1761_v60, %v5716_v56  ;;  %v5874_v56 = vld [vmem:[#allocation2 + $0x57] sm:$0xff] }
 0x23a   : > { %v1944_v6 = vadd.f32 %v1930_v11, %v1858_v51 }
 0x23b   : > { %v2019_v18 = vpop.f32.mrf.mxu0  ;;  %4312 = vmatmul.msk.f32.gmra.mxu1 %vm315_vm1, %v5520_v20 }
 0x23c   : > { %4324 = vmatmul.msk.f32.gmra.mxu2 %vm315_vm1, %v5522_v53  ;;  %v5861_v40 = vadd.f32 %v2016_v9, %v1944_v6 }
 0x23d   : > { %4336 = vmatmul.msk.f32.gmra.mxu3 %vm315_vm1, %v5528_v29  ;;  %v5866_v29 = vld [vmem:[#allocation2 + $0x55] sm:$0xff] }
 0x23e   : > { %4348 = vmatmul.msk.f32.gmra.mxu0 %vm315_vm1, %v5530_v47  ;;  %v5868_v47 = vld [vmem:[#allocation2 + $0x56] sm:$0xff] }
 0x23f   : > { %v1847_v8 = vpop.f32.mrf.mxu2 }
 0x240   : > { %v1859_v20 = vadd.f32 %v1847_v8, %v1773_v7  ;;  %v1933_v46 = vpop.f32.mrf.mxu3  ;;  %v1764_v63 = vpop.f32.mrf.mxu1 }
 0x241   : > { %v1774_v9 = vadd.f32 %v1764_v63, %v5726_v38  ;;  %v4435_v38 = vld [vmem:[%s6316_s2 + $0x468] sm:$0xff] }
 0x242   : > { %v1945_v53 = vadd.f32 %v1933_v46, %v1859_v20  ;;  %3374 = vmatpush.msrb.mxu0 %v4435_v38 }
 0x243   : > { %v2022_v17 = vpop.f32.mrf.mxu0  ;;  %4313 = vmatmul.msk.f32.gmra.mxu1 %vm315_vm1, %v5866_v29 }
 0x244   : > { %4325 = vmatmul.msk.f32.gmra.mxu2 %vm315_vm1, %v5868_v47  ;;  %v5880_v49 = vadd.f32 %v2019_v18, %v1945_v53 }
 0x245   : > { %4337 = vmatmul.msk.f32.gmra.mxu3 %vm315_vm1, %v5874_v56 }
 0x246   : > { %4349 = vmatmul.msk.f32.gmra.mxu0 %vm315_vm1, %v5864_v59 }
 0x247   : > { %v1850_v41 = vpop.f32.mrf.mxu2 }
 0x248   : > { %v1860_v21 = vadd.f32 %v1850_v41, %v1774_v9  ;;  %v1936_v51 = vpop.f32.mrf.mxu3  ;;  %v2087_v11 = vpop.f32.mrf.mxu1 }
 0x249   : > { %v2111_v36 = vadd.f32 %v2087_v11, %v5745_v24 }
 0x24a   : > { %v1946_v60 = vadd.f32 %v1936_v51, %v1860_v21 }
 0x24b   : > { %v2345_v6 = vpop.f32.mrf.mxu0  ;;  %4354 = vmatmul.msk.f32.vlgmr.msra.gmra.mxu1 %vm315_vm1, %v5549_v62 }
 0x24c   : > { %4366 = vmatmul.msk.f32.vlgmr.msra.gmra.mxu2 %vm315_vm1, %v5551_v61  ;;  %v5894_v18 = vadd.f32 %v2022_v17, %v1946_v60 }
 0x24d   : > { %4378 = vmatmul.msk.f32.vlgmr.msra.gmra.mxu3 %vm315_vm1, %v5557_v27 }
 0x24e   : > { %4390 = vmatmul.msk.f32.vlgmr.msra.gmra.mxu0 %vm315_vm1, %v5559_v58 }
 0x24f   : > { %v2173_v7 = vpop.f32.mrf.mxu2 }
 0x250   : > { %v2197_v62 = vadd.f32 %v2173_v7, %v2111_v36  ;;  %v2259_v8 = vpop.f32.mrf.mxu3  ;;  %v2090_v20 = vpop.f32.mrf.mxu1  ;;  %v4400_v36 = vld [vmem:[%s6316_s2 + $0x410] sm:$0xff] }
 0x251   : > { %v2112_v58 = vadd.f32 %v2090_v20, %v5767_v15  ;;  %v4424_v7 = vld [vmem:[%s6316_s2 + $0x450] sm:$0xff]  ;;  %v4423_v20 = vld [vmem:[%s6316_s2 + $0x448] sm:$0xff] }
 0x252   : > { %v2283_v61 = vadd.f32 %v2259_v8, %v2197_v62  ;;  %v4399_v62 = vld [vmem:[%s6316_s2 + $0x408] sm:$0xff] }
 0x253   : > { %v2348_v46 = vpop.f32.mrf.mxu0  ;;  %4355 = vmatmul.msk.f32.gmra.mxu1 %vm315_vm1, %v5568_v32  ;;  %v4434_v32 = vld [vmem:[%s6316_s2 + $0x460] sm:$0xff]  ;;  %v4411_v8 = vld [vmem:[%s6316_s2 + $0x428] sm:$0xff] }
 0x254   : > { %4367 = vmatmul.msk.f32.gmra.mxu2 %vm315_vm1, %v5570_v30  ;;  %v5905_v27 = vadd.f32 %v2345_v6, %v2283_v61  ;;  %3375 = vmatpush.msrb.mxu0 %v4434_v32  ;;  %v5992_v32 = vld [vmem:[#allocation2 + $0x4b] sm:$0xff] }
 0x255   : > { %4379 = vmatmul.msk.f32.gmra.mxu3 %vm315_vm1, %v5576_v52 }
 0x256   : > { %4391 = vmatmul.msk.f32.gmra.mxu0 %vm315_vm1, %v5578_v39 }
 0x257   : > { %v2176_v24 = vpop.f32.mrf.mxu2 }
 0x258   : > { %v2198_v63 = vadd.f32 %v2176_v24, %v2112_v58  ;;  %v2262_v53 = vpop.f32.mrf.mxu3  ;;  %v2093_v17 = vpop.f32.mrf.mxu1  ;;  %v4422_v58 = vld [vmem:[%s6316_s2 + $0x440] sm:$0xff] }
 0x259   : > { %v2113_v52 = vadd.f32 %v2093_v17, %v5784_v16 }
 0x25a   : > { %v2284_v9 = vadd.f32 %v2262_v53, %v2198_v63 }
 0x25b   : > { %v2351_v41 = vpop.f32.mrf.mxu0  ;;  %4356 = vmatmul.msk.f32.gmra.mxu1 %vm315_vm1, %v5590_v54 }
 0x25c   : > { %4368 = vmatmul.msk.f32.gmra.mxu2 %vm315_vm1, %v5592_v23  ;;  %v5919_v30 = vadd.f32 %v2348_v46, %v2284_v9  ;;  %v5984_v9 = vld [vmem:[#allocation2 + $0x49] sm:$0xff] }
 0x25d   : > { %4380 = vmatmul.msk.f32.gmra.mxu3 %vm315_vm1, %v5598_v55  ;;  %v4401_v55 = vld [vmem:[%s6316_s2 + $0x418] sm:$0xff] }
 0x25e   : > { %4392 = vmatmul.msk.f32.gmra.mxu0 %vm315_vm1, %v5600_v48  ;;  %v4413_v48 = vld [vmem:[%s6316_s2 + $0x438] sm:$0xff]  ;;  %3114 = vmatpush.msrb.mxu1 %v4401_v55 }
 0x25f   : > { %v2179_v39 = vpop.f32.mrf.mxu2  ;;  %3200 = vmatpush.msrb.mxu2 %v4413_v48 }
 0x260   : > { %v2199_v54 = vadd.f32 %v2179_v39, %v2113_v52  ;;  %v2265_v15 = vpop.f32.mrf.mxu3  ;;  %v2096_v21 = vpop.f32.mrf.mxu1  ;;  %3115 = vmatpush.msrb.mxu1 %v4400_v36  ;;  %v2984_v52 = vld [vmem:[#allocation2 + $0x4c] sm:$0xff] }
 0x262   : > { %v2285_v23 = vadd.f32 %v2265_v15, %v2199_v54  ;;  %3116 = vmatpush.msrb.mxu1 %v4399_v62 }
 0x263   : > { %v2354_v51 = vpop.f32.mrf.mxu0  ;;  %4357 = vmatmul.msk.f32.gmra.mxu1 %vm315_vm1, %v5618_v33  ;;  %v2114_v33 = vadd.f32 %v2096_v21, %v5822_v43  ;;  %v4412_v43 = vld [vmem:[%s6316_s2 + $0x430] sm:$0xff] }
 0x264   : > { %4369 = vmatmul.msk.f32.gmra.mxu2 %vm315_vm1, %v5626_v3  ;;  %v5936_v16 = vadd.f32 %v2351_v41, %v2285_v23  ;;  %v4425_v3 = vld [vmem:[%s6316_s2 + $0x458] sm:$0xff]  ;;  %v5986_v41 = vld [vmem:[#allocation2 + $0x4a] sm:$0xff] }
 0x265   : > { %4381 = vmatmul.msk.f32.gmra.mxu3 %vm315_vm1, %v5638_v0  ;;  %3201 = vmatpush.msrb.mxu2 %v4412_v43 }
 0x266   : > { %4393 = vmatmul.msk.f32.gmra.mxu0 %vm315_vm1, %v5640_v28  ;;  %3286 = vmatpush.msrb.mxu3 %v4425_v3 }
 0x267   : > { %v2182_v0 = vpop.f32.mrf.mxu2  ;;  %3202 = vmatpush.msrb.mxu2 %v4411_v8 }
 0x268   : > { %v2200_v28 = vadd.f32 %v2182_v0, %v2114_v33  ;;  %v2268_v11 = vpop.f32.mrf.mxu3  ;;  %v2099_v60 = vpop.f32.mrf.mxu1  ;;  %3287 = vmatpush.msrb.mxu3 %v4424_v7 }
 0x269   : > { %v2115_v46 = vadd.f32 %v2099_v60, %v5847_v31  ;;  %v6011_v60 = vld [vmem:[#allocation2 + $0x59] sm:$0xff] }
 0x26a   : > { %v2286_v6 = vadd.f32 %v2268_v11, %v2200_v28  ;;  %3288 = vmatpush.msrb.mxu3 %v4423_v20 }
 0x26b   : > { %v2357_v38 = vpop.f32.mrf.mxu0  ;;  %4358 = vmatmul.msk.f32.gmra.mxu1 %vm315_vm1, %v5667_v26  ;;  %v4398_v26 = vld [vmem:[%s6316_s2 + $0x400] sm:$0xff] }
 0x26c   : > { %4370 = vmatmul.msk.f32.gmra.mxu2 %vm315_vm1, %v5669_v35  ;;  %v3758_v35 = vld [vmem:[%s6317_s3] sm:$0xf]  ;;  %v5974_v61 = vadd.f32 %v2354_v51, %v2286_v6  ;;  %3117 = vmatpush.msrb.mxu1 %v4398_v26 }
 0x26d   : > { %4382 = vmatmul.msk.f32.gmra.mxu3 %vm315_vm1, %v5675_v10  ;;  %v4410_v10 = vld [vmem:[%s6316_s2 + $0x420] sm:$0xff]  ;;  %4482 = vmatpush.msk.msra.mxu0 %vm270_vm0, %v3758_v35 }
 0x26e   : > { %4394 = vmatmul.msk.f32.gmra.mxu0 %vm315_vm1, %v5677_v22  ;;  %3203 = vmatpush.msrb.mxu2 %v4410_v10 }
 0x26f   : > { %v2185_v22 = vpop.f32.mrf.mxu2  ;;  %3289 = vmatpush.msrb.mxu3 %v4422_v58 }
 0x270   : > { %v2201_v24 = vadd.f32 %v2185_v22, %v2115_v46  ;;  %v2271_v63 = vpop.f32.mrf.mxu3  ;;  %v2102_v53 = vpop.f32.mrf.mxu1 }
 0x271   : > { %v2116_v54 = vadd.f32 %v2102_v53, %v5861_v40 }
 0x272   : > { %v2287_v31 = vadd.f32 %v2271_v63, %v2201_v24 }
 0x273   : > { %v2360_v17 = vpop.f32.mrf.mxu0  ;;  %4359 = vmatmul.msk.f32.gmra.mxu1 %vm315_vm1, %v5984_v9 }
 0x274   : > { %4371 = vmatmul.msk.f32.gmra.mxu2 %vm315_vm1, %v5986_v41  ;;  %v5997_v39 = vadd.f32 %v2357_v38, %v2287_v31  ;;  %v6015_v38 = vld [vmem:[#allocation2 + $0x5b] sm:$0xff] }
 0x275   : > { %4383 = vmatmul.msk.f32.gmra.mxu3 %vm315_vm1, %v5992_v32 }
 0x276   : > { %4395 = vmatmul.msk.f32.gmra.mxu0 %vm315_vm1, %v2984_v52 }
 0x277   : > { %v2188_v15 = vpop.f32.mrf.mxu2 }
 0x278   : > { %v2202_v21 = vadd.f32 %v2188_v15, %v2116_v54  ;;  %v2274_v23 = vpop.f32.mrf.mxu3  ;;  %v2105_v51 = vpop.f32.mrf.mxu1 }
 0x279   : > { %v2117_v40 = vadd.f32 %v2105_v51, %v5880_v49 }
 0x27a   : > { %v2288_v55 = vadd.f32 %v2274_v23, %v2202_v21 }
 0x27b   : > { %v2363_v48 = vpop.f32.mrf.mxu0  ;;  %4360 = vmatmul.msk.f32.gmra.mxu1 %vm315_vm1, %v5700_v25  ;;  %v6013_v25 = vld [vmem:[#allocation2 + $0x5a] sm:$0xff] }
 0x27c   : > { %4372 = vmatmul.msk.f32.gmra.mxu2 %vm315_vm1, %v5702_v42  ;;  %v6008_v33 = vadd.f32 %v2360_v17, %v2288_v55  ;;  %v3153_v17 = vld [vmem:[#allocation2 + $0x36] sm:$0xff] }
 0x27d   : > { %4384 = vmatmul.msk.f32.gmra.mxu3 %vm315_vm1, %v5708_v57  ;;  %v2986_v57 = vld [vmem:[#allocation2 + $0x5c] sm:$0xff] }
 0x27e   : > { %4396 = vmatmul.msk.f32.gmra.mxu0 %vm315_vm1, %v5710_v13  ;;  %v3068_v55 = vld [vmem:[#allocation2 + $0x3d] sm:$0xff] }
 0x27f   : > { %v2191_v3 = vpop.f32.mrf.mxu2 }
 0x280   : > { %v2203_v0 = vadd.f32 %v2191_v3, %v2117_v40  ;;  %v2277_v28 = vpop.f32.mrf.mxu3  ;;  %v2108_v11 = vpop.f32.mrf.mxu1  ;;  %v3240_v40 = vld [vmem:[#allocation2 + $0x3f] sm:$0xff] }
 0x281   : > { %v2118_v49 = vadd.f32 %v2108_v11, %v5894_v18  ;;  %v3326_v3 = vld [vmem:[#allocation2 + $0x40] sm:$0xff] }
 0x282   : > { %v2289_v6 = vadd.f32 %v2277_v28, %v2203_v0  ;;  %v4461_v0 = vld [vmem:[%s6316_s2 + $0x4b8] sm:$0xff] }
 0x283   : > { %v2366_v42 = vpop.f32.mrf.mxu0  ;;  %4361 = vmatmul.msk.f32.gmra.mxu1 %vm315_vm1, %v6011_v60  ;;  %3544 = vmatpush.msra.mxu2 %v4461_v0 }
 0x284   : > { %4373 = vmatmul.msk.f32.gmra.mxu2 %vm315_vm1, %v6013_v25  ;;  %v6024_v13 = vadd.f32 %v2363_v48, %v2289_v6  ;;  %v3154_v48 = vld [vmem:[#allocation2 + $0x3e] sm:$0xff] }
 0x285   : > { %4385 = vmatmul.msk.f32.gmra.mxu3 %vm315_vm1, %v6015_v38  ;;  %v4473_v6 = vld [vmem:[%s6316_s2 + $0x4d8] sm:$0xff] }
 0x286   : > { %4397 = vmatmul.msk.f32.gmra.mxu0 %vm315_vm1, %v2986_v57  ;;  %3630 = vmatpush.msra.mxu3 %v4473_v6 }
 0x287   : > { %v2194_v36 = vpop.f32.mrf.mxu2 }
 0x288   : > { %v2204_v43 = vadd.f32 %v2194_v36, %v2118_v49  ;;  %v2280_v7 = vpop.f32.mrf.mxu3  ;;  %v2431_v62 = vpop.f32.mrf.mxu1 }
 0x289   : > { %v2455_v18 = vadd.f32 %v2431_v62, %v5905_v27  ;;  %v4448_v62 = vld [vmem:[%s6316_s2 + $0x490] sm:$0xff] }
 0x28a   : > { %v2290_v8 = vadd.f32 %v2280_v7, %v2204_v43 }
 0x28b   : > { %v2689_v20 = vpop.f32.mrf.mxu0  ;;  %4402 = vmatmul.msk.f32.vlgmr.msrb.gmra.mxu1 %vm315_vm1, %v5729_v5 }
 0x28c   : > { %4414 = vmatmul.msk.f32.vlgmr.msrb.gmra.mxu2 %vm315_vm1, %v5731_v37  ;;  %v6035_v26 = vadd.f32 %v2366_v42, %v2290_v8  ;;  %v4472_v8 = vld [vmem:[%s6316_s2 + $0x4d0] sm:$0xff] }
 0x28d   : > { %4426 = vmatmul.msk.f32.vlgmr.msrb.gmra.mxu3 %vm315_vm1, %v5737_v44 }
 0x28e   : > { %4438 = vmatmul.msk.f32.vlgmr.msrb.gmra.mxu0 %vm315_vm1, %v5739_v50  ;;  %3631 = vmatpush.msra.mxu3 %v4472_v8 }
 0x28f   : > { %v2517_v35 = vpop.f32.mrf.mxu2 }
 0x290   : > { %v2541_v46 = vadd.f32 %v2517_v35, %v2455_v18  ;;  %v2603_v10 = vpop.f32.mrf.mxu3  ;;  %v2434_v22 = vpop.f32.mrf.mxu1  ;;  %v4459_v18 = vld [vmem:[%s6316_s2 + $0x4a8] sm:$0xff] }
 0x291   : > { %v2456_v37 = vadd.f32 %v2434_v22, %v5919_v30  ;;  %v4471_v35 = vld [vmem:[%s6316_s2 + $0x4c8] sm:$0xff] }
 0x292   : > { %v2627_v58 = vadd.f32 %v2603_v10, %v2541_v46  ;;  %3632 = vmatpush.msra.mxu3 %v4471_v35  ;;  %v3330_v35 = vld [vmem:[#allocation2 + $0x60] sm:$0xff] }
 0x293   : > { %v2692_v24 = vpop.f32.mrf.mxu0  ;;  %4403 = vmatmul.msk.f32.gmra.mxu1 %vm315_vm1, %v5748_v1  ;;  %v3067_v1 = vld [vmem:[#allocation2 + $0x35] sm:$0xff] }
 0x294   : > { %4415 = vmatmul.msk.f32.gmra.mxu2 %vm315_vm1, %v5750_v34  ;;  %v6046_v5 = vadd.f32 %v2689_v20, %v2627_v58  ;;  %v3239_v34 = vld [vmem:[#allocation2 + $0x37] sm:$0xff]  ;;  %v4447_v20 = vld [vmem:[%s6316_s2 + $0x488] sm:$0xff] }
 0x295   : > { %4427 = vmatmul.msk.f32.gmra.mxu3 %vm315_vm1, %v5756_v45  ;;  %v3325_v45 = vld [vmem:[#allocation2 + $0x38] sm:$0xff] }
 0x296   : > { %4439 = vmatmul.msk.f32.gmra.mxu0 %vm315_vm1, %v5758_v14 }
 0x297   : > { %v2520_v44 = vpop.f32.mrf.mxu2 }
 0x298   : > { %v2542_v50 = vadd.f32 %v2520_v44, %v2456_v37  ;;  %v2606_v27 = vpop.f32.mrf.mxu3  ;;  %v2437_v63 = vpop.f32.mrf.mxu1 }
 0x299   : > { %v2457_v30 = vadd.f32 %v2437_v63, %v5936_v16  ;;  %v4449_v16 = vld [vmem:[%s6316_s2 + $0x498] sm:$0xff]  ;;  %v3156_v63 = vld [vmem:[#allocation2 + $0x4e] sm:$0xff] }
 0x29a   : > { %v2628_v53 = vadd.f32 %v2606_v27, %v2542_v50  ;;  %3458 = vmatpush.msra.mxu1 %v4449_v16  ;;  %v3070_v27 = vld [vmem:[#allocation2 + $0x4d] sm:$0xff] }
 0x29b   : > { %v2695_v31 = vpop.f32.mrf.mxu0  ;;  %4404 = vmatmul.msk.f32.gmra.mxu1 %vm315_vm1, %v3067_v1  ;;  %v6396_v1 = vld [vmem:[#allocation5_spill] sm:$0xff] }
 0x29c   : > { %4416 = vmatmul.msk.f32.gmra.mxu2 %vm315_vm1, %v3153_v17  ;;  %v6053_v14 = vadd.f32 %v2692_v24, %v2628_v53  ;;  %3459 = vmatpush.msra.mxu1 %v4448_v62  ;;  %v4508_v24 = vld [vmem:[%s4609_s20 + $0x10] sm:$0xff]  ;;  %v6397_v17 = vrot.slane %v6396_v1, 1 }
 0x29d   : > { %4428 = vmatmul.msk.f32.gmra.mxu3 %vm315_vm1, %v3239_v34  ;;  %v3719_v37 = vrot.slane %v4508_v24, 1  ;;  %v3242_v53 = vld [vmem:[#allocation2 + $0x4f] sm:$0xff] }
 0x29e   : > { %4440 = vmatmul.msk.f32.gmra.mxu0 %vm315_vm1, %v3325_v45  ;;  %3460 = vmatpush.msra.mxu1 %v4447_v20  ;;  %v6398_v34 = vld [vmem:[#allocation3_spill] sm:$0xff] }
 0x29f   : > { %v2523_v52 = vpop.f32.mrf.mxu2  ;;  %v3731_v45 = vsel %vm3725_vm3, %v6397_v17, %v3719_v37  ;;  %v6407_v17 = vld [vmem:[#allocation19_spill] sm:$0xff] }
 0x2a0   : > { %v2543_v54 = vadd.f32 %v2523_v52, %v2457_v30  ;;  %v2609_v15 = vpop.f32.mrf.mxu3  ;;  %v2440_v21 = vpop.f32.mrf.mxu1 }
 0x2a1   : > { %v2458_v11 = vadd.f32 %v2440_v21, %v5974_v61  ;;  %v4460_v61 = vld [vmem:[%s6316_s2 + $0x4b0] sm:$0xff] }
 0x2a2   : > { %v2629_v23 = vadd.f32 %v2609_v15, %v2543_v54  ;;  %3545 = vmatpush.msra.mxu2 %v4460_v61  ;;  %v6399_v54 = vld [vmem:[#allocation10_spill] sm:$0xff]  ;;  %v3072_v61 = vld [vmem:[#allocation2 + $0x5d] sm:$0xff] }
 0x2a3   : > { %v2698_v51 = vpop.f32.mrf.mxu0  ;;  %4405 = vmatmul.msk.f32.gmra.mxu1 %vm315_vm1, %v3068_v55  ;;  %v6400_v15 = vmax.f32 %v6399_v54, %v6396_v1  ;;  %v3495_v1 = vld [vmem:[#allocation2 + $0x2a] sm:$0xff] }
 0x2a4   : > { %4417 = vmatmul.msk.f32.gmra.mxu2 %vm315_vm1, %v3154_v48  ;;  %v6066_v28 = vadd.f32 %v2695_v31, %v2629_v23  ;;  %v3328_v31 = vld [vmem:[#allocation2 + $0x50] sm:$0xff]  ;;  %v4509_v48 = vld [vmem:[%s4609_s20 + $0x18] sm:$0xff]  ;;  %v6408_v54 = vld [vmem:[#allocation14_spill] sm:$0xff] }
 0x2a5   : > { %4429 = vmatmul.msk.f32.gmra.mxu3 %vm315_vm1, %v3240_v40  ;;  %3546 = vmatpush.msra.mxu2 %v4459_v18  ;;  %v6125_v21 = vmax.f32 %v6400_v15, %v3731_v45  ;;  %v3720_v40 = vrot.slane %v4509_v48, 1  ;;  %v3244_v18 = vld [vmem:[#allocation2 + $0x5f] sm:$0xff] }
 0x2a6   : > { %4441 = vmatmul.msk.f32.gmra.mxu0 %vm315_vm1, %v3326_v3 }
 0x2a7   : > { %v2526_v42 = vpop.f32.mrf.mxu2 }
 0x2a8   : > { %v2544_v57 = vadd.f32 %v2526_v42, %v2458_v11  ;;  %v2612_v49 = vpop.f32.mrf.mxu3  ;;  %v2443_v36 = vpop.f32.mrf.mxu1  ;;  %v6401_v42 = vld [vmem:[#allocation12_spill] sm:$0xff] }
 0x2a9   : > { %v2459_v46 = vadd.f32 %v2443_v36, %v5997_v39 }
 0x2aa   : > { %v2630_v43 = vadd.f32 %v2612_v49, %v2544_v57  ;;  %v6402_v57 = vld [vmem:[#allocation6_spill] sm:$0xff] }
 0x2ab   : > { %v2701_v7 = vpop.f32.mrf.mxu0  ;;  %4406 = vmatmul.msk.f32.gmra.mxu1 %vm315_vm1, %v5831_v2  ;;  %v4446_v2 = vld [vmem:[%s6316_s2 + $0x480] sm:$0xff]  ;;  %v6403_v49 = vmax.f32 %v6401_v42, %v6402_v57  ;;  %v3410_v42 = vld [vmem:[#allocation2 + $0x31] sm:$0xff] }
 0x2ac   : > { %4418 = vmatmul.msk.f32.gmra.mxu2 %vm315_vm1, %v5833_v12  ;;  %v6101_v12 = vadd.f32 %v2698_v51, %v2630_v43  ;;  %3461 = vmatpush.msra.mxu1 %v4446_v2  ;;  %v3496_v57 = vld [vmem:[#allocation2 + $0x32] sm:$0xff] }
 0x2ad   : > { %4430 = vmatmul.msk.f32.gmra.mxu3 %vm315_vm1, %v5839_v19  ;;  %v4458_v19 = vld [vmem:[%s6316_s2 + $0x4a0] sm:$0xff] }
 0x2ae   : > { %4442 = vmatmul.msk.f32.gmra.mxu0 %vm315_vm1, %v5841_v4  ;;  %v4470_v4 = vld [vmem:[%s6316_s2 + $0x4c0] sm:$0xff]  ;;  %3547 = vmatpush.msra.mxu2 %v4458_v19 }
 0x2af   : > { %v2529_v10 = vpop.f32.mrf.mxu2  ;;  %3633 = vmatpush.msra.mxu3 %v4470_v4  ;;  %v6404_v19 = vld [vmem:[#allocation13_spill] sm:$0xff] }
 0x2b0   : > { %v2545_v22 = vadd.f32 %v2529_v10, %v2459_v46  ;;  %v2615_v58 = vpop.f32.mrf.mxu3  ;;  %v2446_v44 = vpop.f32.mrf.mxu1  ;;  %v6405_v10 = vld [vmem:[#allocation7_spill] sm:$0xff] }
 0x2b1   : > { %v2460_v52 = vadd.f32 %v2446_v44, %v6008_v33  ;;  %v3730_v33 = vsel %vm3725_vm3, %v3719_v37, %v3720_v40  ;;  %v6406_v4 = vmax.f32 %v6404_v19, %v6405_v10  ;;  %v4511_v44 = vld [vmem:[%s4609_s20 + $0x28] sm:$0xff]  ;;  %v3497_v19 = vld [vmem:[#allocation2 + $0x3a] sm:$0xff] }
 0x2b2   : > { %v2631_v39 = vadd.f32 %v2615_v58, %v2545_v22  ;;  %v3583_v10 = vld [vmem:[#allocation2 + $0x3b] sm:$0xff] }
 0x2b3   : > { %v2704_v50 = vpop.f32.mrf.mxu0  ;;  %4407 = vmatmul.msk.f32.gmra.mxu1 %vm315_vm1, %v3070_v27 }
 0x2b4   : > { %4419 = vmatmul.msk.f32.gmra.mxu2 %vm315_vm1, %v3156_v63  ;;  %v6119_v30 = vadd.f32 %v2701_v7, %v2631_v39  ;;  %v4510_v7 = vld [vmem:[%s4609_s20 + $0x20] sm:$0xff]  ;;  %v3722_v39 = vrot.slane %v4511_v44, 1 }
 0x2b5   : > { %4431 = vmatmul.msk.f32.gmra.mxu3 %vm315_vm1, %v3242_v53 }
 0x2b6   : > { %4443 = vmatmul.msk.f32.gmra.mxu0 %vm315_vm1, %v3328_v31  ;;  %v3409_v31 = vld [vmem:[#allocation2 + $0x29] sm:$0xff] }
 0x2b7   : > { %v2532_v23 = vpop.f32.mrf.mxu2 }
 0x2b8   : > { %v2546_v51 = vadd.f32 %v2532_v23, %v2460_v52  ;;  %v2618_v55 = vpop.f32.mrf.mxu3  ;;  %v2449_v3 = vpop.f32.mrf.mxu1 }
 0x2b9   : > { %v2461_v6 = vadd.f32 %v2449_v3, %v6024_v13 }
 0x2ba   : > { %v2632_v16 = vadd.f32 %v2618_v55, %v2546_v51 }
 0x2bb   : > { %v2707_v0 = vpop.f32.mrf.mxu0  ;;  %4408 = vmatmul.msk.f32.gmra.mxu1 %vm315_vm1, %v5866_v29  ;;  %v6144_v29 = vmax.f32 %v6403_v49, %v3730_v33  ;;  %v3582_v49 = vld [vmem:[#allocation2 + $0x33] sm:$0xff] }
 0x2bc   : > { %4420 = vmatmul.msk.f32.gmra.mxu2 %vm315_vm1, %v5868_v47  ;;  %v6138_v11 = vadd.f32 %v2704_v50, %v2632_v16 }
 0x2bd   : > { %4432 = vmatmul.msk.f32.gmra.mxu3 %vm315_vm1, %v5874_v56  ;;  %v3721_v56 = vrot.slane %v4510_v7, 1 }
 0x2be   : > { %4444 = vmatmul.msk.f32.gmra.mxu0 %vm315_vm1, %v5864_v59  ;;  %v3158_v59 = vld [vmem:[#allocation2 + $0x5e] sm:$0xff] }
 0x2bf   : > { %v2535_v36 = vpop.f32.mrf.mxu2  ;;  %v3729_v13 = vsel %vm3725_vm3, %v3720_v40, %v3721_v56  ;;  %v3728_v45 = vsel %vm3725_vm3, %v3721_v56, %v3722_v39  ;;  %v4512_v40 = vld [vmem:[%s4609_s20 + $0x30] sm:$0xff] }
 0x2c0   : > { %v2547_v47 = vadd.f32 %v2535_v36, %v2461_v6  ;;  %v2621_v43 = vpop.f32.mrf.mxu3  ;;  %v2452_v62 = vpop.f32.mrf.mxu1  ;;  %v6159_v22 = vmax.f32 %v6406_v4, %v3729_v13  ;;  %v3723_v3 = vrot.slane %v4512_v40, 1 }
 0x2c1   : > { %v2462_v46 = vadd.f32 %v2452_v62, %v6035_v26  ;;  %v3581_v26 = vld [vmem:[#allocation2 + $0x2b] sm:$0xff] }
 0x2c2   : > { %v2633_v8 = vadd.f32 %v2621_v43, %v2547_v47  ;;  %v3727_v36 = vsel %vm3725_vm3, %v3722_v39, %v3723_v3  ;;  %v6411_v43 = vld [vmem:[#allocation15_spill] sm:$0xff] }
 0x2c3   : > { %v2710_v20 = vpop.f32.mrf.mxu0  ;;  %4409 = vmatmul.msk.f32.gmra.mxu1 %vm315_vm1, %v3072_v61  ;;  %v4513_v61 = vld [vmem:[%s4609_s20 + $0x38] sm:$0xff]  ;;  %s4523_s20 = smov 96  }
 0x2c4   : > { %4421 = vmatmul.msk.f32.gmra.mxu2 %vm315_vm1, %v3158_v59  ;;  %v6153_v2 = vadd.f32 %v2707_v0, %v2633_v8  ;;  %v3724_v59 = vrot.slane %v4513_v61, 1  ;;  %v3500_v61 = vld [vmem:[#allocation2 + $0x52] sm:$0xff] }
 0x2c5   : > { %4433 = vmatmul.msk.f32.gmra.mxu3 %vm315_vm1, %v3244_v18 }
 0x2c6   : > { %4445 = vmatmul.msk.f32.gmra.mxu0 %vm315_vm1, %v3330_v35  ;;  %v3726_v4 = vsel %vm3725_vm3, %v3723_v3, %v3724_v59  ;;  %v6419_v3 = vld [vmem:[#allocation18_spill] sm:$0xff] }
 0x2c7   : > { %v2538_v58 = vpop.f32.mrf.mxu2 }
 0x2c8   : > { %v2548_v24 = vadd.f32 %v2538_v58, %v2462_v46  ;;  %v2624_v37 = vpop.f32.mrf.mxu3  ;;  %v2775_v50 = vpop.f32.mrf.mxu1  ;;  %v3411_v46 = vld [vmem:[#allocation2 + $0x39] sm:$0xff] }
 0x2c9   : > { %v2799_v63 = vadd.f32 %v2775_v50, %v6046_v5  ;;  %v6409_v5 = vld [vmem:[#allocation8_spill] sm:$0xff]  ;;  %v6414_v58 = vld [vmem:[#allocation17_spill] sm:$0xff] }
 0x2ca   : > { %v2634_v27 = vadd.f32 %v2624_v37, %v2548_v24  ;;  %v6410_v15 = vmax.f32 %v6408_v54, %v6409_v5  ;;  %v6415_v24 = vld [vmem:[#allocation9_spill] sm:$0xff]  ;;  %v6417_v54 = vld [vmem:[#allocation4_spill] sm:$0xff] }
 0x2cb   : > { %v3033_v53 = vpop.f32.mrf.mxu0  ;;  %4450 = vmatmul.msk.f32.vlgmr.msra.gmra.mxu1 %vm315_vm1, %v3409_v31  ;;  %v6416_v37 = vmax.f32 %v6414_v58, %v6415_v24  ;;  %v6418_v5 = vrot.slane %v6417_v54, 1  ;;  %v3588_v24 = vld [vmem:[#allocation2 + $0x63] sm:$0xff] }
 0x2cc   : > { %4462 = vmatmul.msk.f32.vlgmr.msra.gmra.mxu2 %vm315_vm1, %v3495_v1  ;;  %v6170_v52 = vadd.f32 %v2710_v20, %v2634_v27  ;;  %v6175_v23 = vmax.f32 %v6410_v15, %v3728_v45  ;;  %v3675_v45 = vadd.s32 56, %v6398_v34 }
 0x2cd   : > { %4474 = vmatmul.msk.f32.vlgmr.msra.gmra.mxu3 %vm315_vm1, %v3581_v26  ;;  %v3412_v26 = vld [vmem:[#allocation2 + $0x41] sm:$0xff]  ;;  %v3733_v15 = vsel %vm3725_vm3, %v3724_v59, %v6418_v5 }
 0x2ce   : > { %4483 = vmatmul.msk.f32.vlgmr.msra.gmra.mxu0 %vm245_vm2, %v6407_v17  ;;  %v3498_v17 = vld [vmem:[#allocation2 + $0x42] sm:$0xff]  ;;  %vm3716_vm6 = vcmp.eq.s32.totalorder %v3675_v45, 63 }
 0x2cf   : > { %v2861_v51 = vpop.f32.mrf.mxu2 }
 0x2d0   : > { %v2885_v55 = vadd.f32 %v2861_v51, %v2799_v63  ;;  %v2947_v48 = vpop.f32.mrf.mxu3  ;;  %v2778_v16 = vpop.f32.mrf.mxu1 }
 0x2d1   : > { %v2800_v33 = vadd.f32 %v2778_v16, %v6053_v14  ;;  %v6412_v14 = vld [vmem:[#allocation11_spill] sm:$0xff]  ;;  %v6420_v16 = vld [vmem:[#allocation16_spill] sm:$0xff] }
 0x2d2   : > { %v2971_v0 = vadd.f32 %v2947_v48, %v2885_v55  ;;  %v6413_v7 = vmax.f32 %v6411_v43, %v6412_v14  ;;  %v3741_v55 = vsel %vm3716_vm6, -inf, %v3733_v15 }
 0x2d3   : > { %v3036_v6 = vpop.f32.mrf.mxu0  ;;  %4451 = vmatmul.msk.f32.gmra.mxu1 %vm315_vm1, %v3410_v42 }
 0x2d4   : > { %4463 = vmatmul.msk.f32.gmra.mxu2 %vm315_vm1, %v3496_v57  ;;  %v6186_v47 = vadd.f32 %v3033_v53, %v2971_v0  ;;  %v6191_v56 = vmax.f32 %v6413_v7, %v3727_v36  ;;  %v6421_v0 = vmax.f32 %v6419_v3, %v6420_v16 }
 0x2d5   : > { %4475 = vmatmul.msk.f32.gmra.mxu3 %vm315_vm1, %v3582_v49 }
 0x2d6   : > { %4484 = vmatmul.msk.f32.gmra.mxu0 %vm245_vm2, %v6125_v21 }
 0x2d7   : > { %v2864_v62 = vpop.f32.mrf.mxu2 }
 0x2d8   : > { %v2886_v8 = vadd.f32 %v2864_v62, %v2800_v33  ;;  %v2950_v20 = vpop.f32.mrf.mxu3  ;;  %v2781_v18 = vpop.f32.mrf.mxu1  ;;  %v3757_v33 = vmax.f32 %v6421_v0, %v3741_v55 }
 0x2d9   : > { %v2801_v13 = vadd.f32 %v2781_v18, %v6066_v28  ;;  %v3756_v28 = vmax.f32 %v6416_v37, %v3726_v4 }
 0x2da   : > { %v2972_v35 = vadd.f32 %v2950_v20, %v2886_v8 }
 0x2db   : > { %v3039_v21 = vpop.f32.mrf.mxu0  ;;  %4452 = vmatmul.msk.f32.gmra.mxu1 %vm315_vm1, %v3411_v46 }
 0x2dc   : > { %4464 = vmatmul.msk.f32.gmra.mxu2 %vm315_vm1, %v3497_v19  ;;  %v6205_v44 = vadd.f32 %v3036_v6, %v2972_v35 }
 0x2dd   : > { %4476 = vmatmul.msk.f32.gmra.mxu3 %vm315_vm1, %v3583_v10  ;;  %v3416_v10 = vld [vmem:[#allocation2 + $0x61] sm:$0xff] }
 0x2de   : > { %4485 = vmatmul.msk.f32.gmra.mxu0 %vm245_vm2, %v6144_v29  ;;  %v3584_v29 = vld [vmem:[#allocation2 + $0x43] sm:$0xff] }
 0x2df   : > { %v2867_v39 = vpop.f32.mrf.mxu2 }
 0x2e0   : > { %v2887_v50 = vadd.f32 %v2867_v39, %v2801_v13  ;;  %v2953_v27 = vpop.f32.mrf.mxu3  ;;  %v2784_v63 = vpop.f32.mrf.mxu1 }
 0x2e1   : > { %v2802_v31 = vadd.f32 %v2784_v63, %v6101_v12 }
 0x2e2   : > { %v2973_v53 = vadd.f32 %v2953_v27, %v2887_v50 }
 0x2e3   : > { %v3042_v1 = vpop.f32.mrf.mxu0  ;;  %4453 = vmatmul.msk.f32.gmra.mxu1 %vm315_vm1, %v3412_v26 }
 0x2e4   : > { %4465 = vmatmul.msk.f32.gmra.mxu2 %vm315_vm1, %v3498_v17  ;;  %v6218_v12 = vadd.f32 %v3039_v21, %v2973_v53 }
 0x2e5   : > { %4477 = vmatmul.msk.f32.gmra.mxu3 %vm315_vm1, %v3584_v29 }
 0x2e6   : > { %4486 = vmatmul.msk.f32.gmra.mxu0 %vm245_vm2, %v6159_v22 }
 0x2e7   : > { %v2870_v51 = vpop.f32.mrf.mxu2 }
 0x2e8   : > { %v2888_v48 = vadd.f32 %v2870_v51, %v2802_v31  ;;  %v2956_v40 = vpop.f32.mrf.mxu3  ;;  %v2787_v6 = vpop.f32.mrf.mxu1 }
 0x2e9   : > { %v2803_v34 = vadd.f32 %v2787_v6, %v6119_v30 }
 0x2ea   : > { %v2974_v42 = vadd.f32 %v2956_v40, %v2888_v48 }
 0x2eb   : > { %v3045_v57 = vpop.f32.mrf.mxu0  ;;  %4454 = vmatmul.msk.f32.gmra.mxu1 %vm315_vm1, %v5984_v9  ;;  %v3414_v9 = vld [vmem:[#allocation2 + $0x51] sm:$0xff] }
 0x2ec   : > { %4466 = vmatmul.msk.f32.gmra.mxu2 %vm315_vm1, %v5986_v41  ;;  %v6232_v22 = vadd.f32 %v3042_v1, %v2974_v42  ;;  %v3586_v41 = vld [vmem:[#allocation2 + $0x53] sm:$0xff] }
 0x2ed   : > { %4478 = vmatmul.msk.f32.gmra.mxu3 %vm315_vm1, %v5992_v32 }
 0x2ee   : > { %4487 = vmatmul.msk.f32.gmra.mxu0 %vm245_vm2, %v6175_v23 }
 0x2ef   : > { %v2873_v49 = vpop.f32.mrf.mxu2 }
 0x2f0   : > { %v2889_v36 = vadd.f32 %v2873_v49, %v2803_v34  ;;  %v2959_v43 = vpop.f32.mrf.mxu3  ;;  %v2790_v14 = vpop.f32.mrf.mxu1 }
 0x2f1   : > { %v2804_v7 = vadd.f32 %v2790_v14, %v6138_v11 }
 0x2f2   : > { %v2975_v30 = vadd.f32 %v2959_v43, %v2889_v36 }
 0x2f3   : > { %v3048_v62 = vpop.f32.mrf.mxu0  ;;  %4455 = vmatmul.msk.f32.gmra.mxu1 %vm315_vm1, %v3414_v9 }
 0x2f4   : > { %4467 = vmatmul.msk.f32.gmra.mxu2 %vm315_vm1, %v3500_v61  ;;  %v6240_v32 = vadd.f32 %v3045_v57, %v2975_v30 }
 0x2f5   : > { %4479 = vmatmul.msk.f32.gmra.mxu3 %vm315_vm1, %v3586_v41 }
 0x2f6   : > { %4488 = vmatmul.msk.f32.gmra.mxu0 %vm245_vm2, %v6191_v56 }
 0x2f7   : > { %v2876_v23 = vpop.f32.mrf.mxu2 }
 0x2f8   : > { %v2890_v59 = vadd.f32 %v2876_v23, %v2804_v7  ;;  %v2962_v8 = vpop.f32.mrf.mxu3  ;;  %v2793_v20 = vpop.f32.mrf.mxu1 }
 0x2f9   : > { %v2805_v18 = vadd.f32 %v2793_v20, %v6153_v2  ;;  %v3502_v2 = vld [vmem:[#allocation2 + $0x62] sm:$0xff] }
 0x2fa   : > { %v2976_v11 = vadd.f32 %v2962_v8, %v2890_v59 }
 0x2fb   : > { %v3051_v35 = vpop.f32.mrf.mxu0  ;;  %4456 = vmatmul.msk.f32.gmra.mxu1 %vm315_vm1, %v6011_v60 }
 0x2fc   : > { %4468 = vmatmul.msk.f32.gmra.mxu2 %vm315_vm1, %v6013_v25  ;;  %v6250_v56 = vadd.f32 %v3048_v62, %v2976_v11 }
 0x2fd   : > { %4480 = vmatmul.msk.f32.gmra.mxu3 %vm315_vm1, %v6015_v38 }
 0x2fe   : > { %4489 = vmatmul.msk.f32.gmra.mxu0 %vm245_vm2, %v3756_v28 }
 0x2ff   : > { %v2879_v13 = vpop.f32.mrf.mxu2 }
 0x300   : > { %v2891_v21 = vadd.f32 %v2879_v13, %v2805_v18  ;;  %v2965_v46 = vpop.f32.mrf.mxu3  ;;  %v2796_v19 = vpop.f32.mrf.mxu1 }
 0x301   : > { %v2806_v58 = vadd.f32 %v2796_v19, %v6170_v52 }
 0x302   : > { %v2977_v4 = vadd.f32 %v2965_v46, %v2891_v21 }
 0x303   : > { %v3054_v60 = vpop.f32.mrf.mxu0  ;;  %4457 = vmatmul.msk.f32.gmra.mxu1 %vm315_vm1, %v3416_v10 }
 0x304   : > { %4469 = vmatmul.msk.f32.gmra.mxu2 %vm315_vm1, %v3502_v2  ;;  %v3063_v25 = vadd.f32 %v3051_v35, %v2977_v4 }
 0x305   : > { %4481 = vmatmul.msk.f32.gmra.mxu3 %vm315_vm1, %v3588_v24 }
 0x306   : > { %4490 = vmatmul.msk.f32.gmra.mxu0 %vm245_vm2, %v3757_v33 }
 0x307   : > { %v2882_v38 = vpop.f32.mrf.mxu2 }
 0x308   : > { %v2892_v37 = vadd.f32 %v2882_v38, %v2806_v58  ;;  %v2968_v28 = vpop.f32.mrf.mxu3  ;;  %v3119_v39 = vpop.f32.mrf.mxu1 }
 0x309   : > { %v3143_v27 = vadd.f32 %v3119_v39, %v6186_v47 }
 0x30a   : > { %v2978_v50 = vadd.f32 %v2968_v28, %v2892_v37 }
 0x30b   : > { %v3377_v63 = vpop.f32.mrf.mxu0 }
 0x30c   : > { %v3064_v52 = vadd.f32 %v3054_v60, %v2978_v50 }
 0x30f   : > { %v3205_v53 = vpop.f32.mrf.mxu2 }
 0x310   : > { %v3229_v31 = vadd.f32 %v3205_v53, %v3143_v27  ;;  %v3291_v1 = vpop.f32.mrf.mxu3  ;;  %v3122_v26 = vpop.f32.mrf.mxu1 }
 0x311   : > { %v3144_v29 = vadd.f32 %v3122_v26, %v6205_v44 }
 0x312   : > { %v3315_v17 = vadd.f32 %v3291_v1, %v3229_v31 }
 0x313   : > { %v3380_v45 = vpop.f32.mrf.mxu0 }
 0x314   : > { %v6259_v54 = vadd.f32 %v3377_v63, %v3315_v17 }
 0x317   : > { %v3208_v5 = vpop.f32.mrf.mxu2 }
 0x318   : > { %v3230_v15 = vadd.f32 %v3208_v5, %v3144_v29  ;;  %v3294_v51 = vpop.f32.mrf.mxu3  ;;  %v3125_v55 = vpop.f32.mrf.mxu1 }
 0x319   : > { %v3145_v40 = vadd.f32 %v3125_v55, %v6218_v12 }
 0x31a   : > { %v3316_v48 = vadd.f32 %v3294_v51, %v3230_v15 }
 0x31b   : > { %v3383_v47 = vpop.f32.mrf.mxu0 }
 0x31c   : > { %v6262_v3 = vadd.f32 %v3380_v45, %v3316_v48 }
 0x31f   : > { %v3211_v16 = vpop.f32.mrf.mxu2 }
 0x320   : > { %v3231_v0 = vadd.f32 %v3211_v16, %v3145_v40  ;;  %v3297_v33 = vpop.f32.mrf.mxu3  ;;  %v3128_v6 = vpop.f32.mrf.mxu1 }
 0x321   : > { %v3146_v44 = vadd.f32 %v3128_v6, %v6232_v22 }
 0x322   : > { %v3317_v42 = vadd.f32 %v3297_v33, %v3231_v0 }
 0x323   : > { %v3386_v34 = vpop.f32.mrf.mxu0 }
 0x324   : > { %v6265_v57 = vadd.f32 %v3383_v47, %v3317_v42 }
 0x327   : > { %v3214_v49 = vpop.f32.mrf.mxu2 }
 0x328   : > { %v3232_v36 = vadd.f32 %v3214_v49, %v3146_v44  ;;  %v3300_v43 = vpop.f32.mrf.mxu3  ;;  %v3131_v14 = vpop.f32.mrf.mxu1 }
 0x329   : > { %v3147_v62 = vadd.f32 %v3131_v14, %v6240_v32 }
 0x32a   : > { %v3318_v30 = vadd.f32 %v3300_v43, %v3232_v36 }
 0x32b   : > { %v3389_v7 = vpop.f32.mrf.mxu0 }
 0x32c   : > { %v6267_v12 = vadd.f32 %v3386_v34, %v3318_v30 }
 0x32f   : > { %v3217_v9 = vpop.f32.mrf.mxu2 }
 0x330   : > { %v3233_v61 = vadd.f32 %v3217_v9, %v3147_v62  ;;  %v3303_v41 = vpop.f32.mrf.mxu3  ;;  %v3134_v23 = vpop.f32.mrf.mxu1 }
 0x331   : > { %v3148_v20 = vadd.f32 %v3134_v23, %v6250_v56 }
 0x332   : > { %v3319_v59 = vadd.f32 %v3303_v41, %v3233_v61 }
 0x333   : > { %v3392_v8 = vpop.f32.mrf.mxu0 }
 0x334   : > { %v3405_v22 = vadd.f32 %v3389_v7, %v3319_v59 }
 0x337   : > { %v3220_v11 = vpop.f32.mrf.mxu2 }
 0x338   : > { %v3234_v18 = vadd.f32 %v3220_v11, %v3148_v20  ;;  %v3306_v35 = vpop.f32.mrf.mxu3  ;;  %v3137_v13 = vpop.f32.mrf.mxu1 }
 0x339   : > { %v3149_v46 = vadd.f32 %v3137_v13, %v3063_v25 }
 0x33a   : > { %v3320_v21 = vadd.f32 %v3306_v35, %v3234_v18 }
 0x33b   : > { %v3395_v19 = vpop.f32.mrf.mxu0 }
 0x33c   : > { %v6271_v10 = vadd.f32 %v3392_v8, %v3320_v21 }
 0x33f   : > { %v3223_v2 = vpop.f32.mrf.mxu2 }
 0x340   : > { %v3235_v32 = vadd.f32 %v3223_v2, %v3149_v46  ;;  %v3309_v4 = vpop.f32.mrf.mxu3  ;;  %v3140_v58 = vpop.f32.mrf.mxu1 }
 0x341   : > { %v3150_v24 = vadd.f32 %v3140_v58, %v3064_v52 }
 0x342   : > { %v3321_v60 = vadd.f32 %v3309_v4, %v3235_v32 }
 0x343   : > { %v3398_v38 = vpop.f32.mrf.mxu0 }
 0x344   : > { %v6273_v37 = vadd.f32 %v3395_v19, %v3321_v60 }
 0x347   : > { %v3226_v28 = vpop.f32.mrf.mxu2 }
 0x348   : > { %v3236_v56 = vadd.f32 %v3226_v28, %v3150_v24  ;;  %v3312_v39 = vpop.f32.mrf.mxu3  ;;  %v3463_v29 = vpop.f32.mrf.mxu1 }
 0x349   : > { %v3487_v33 = vadd.f32 %v3463_v29, %v6259_v54 }
 0x34a   : > { %v3322_v50 = vadd.f32 %v3312_v39, %v3236_v56 }
 0x34b   : > { %v3803_v27 = vpop.f32.mrf.mxu0 }
 0x34c   : > { %3835 = vrot.lane.b32.xlu0 %v3803_v27, %s4523_s20  ;;  %v6275_v25 = vadd.f32 %v3398_v38, %v3322_v50 }
 0x34f   : > { %v3549_v45 = vpop.f32.mrf.mxu2 }
 0x350   : > { %v3635_v5 = vpop.f32.mrf.mxu3  ;;  %v3466_v15 = vpop.f32.mrf.mxu1  ;;  %v3573_v42 = vadd.f32 %v3549_v45, %v3487_v33 }
 0x351   : > { %v3488_v43 = vadd.f32 %v3466_v15, %v6262_v3 }
 0x352   : > { %v3659_v49 = vadd.f32 %v3635_v5, %v3573_v42 }
 0x353   : > { %v3806_v63 = vpop.f32.mrf.mxu0 }
 0x354   : > { %3837 = vrot.lane.b32.xlu0 %v3806_v63, %s4523_s20 }
 0x357   : > { %v3552_v51 = vpop.f32.mrf.mxu2 }
 0x358   : > { %v3638_v55 = vpop.f32.mrf.mxu3  ;;  %v3469_v48 = vpop.f32.mrf.mxu1  ;;  %v3574_v54 = vadd.f32 %v3552_v51, %v3488_v43 }
 0x359   : > { %v3489_v20 = vadd.f32 %v3469_v48, %v6265_v57 }
 0x35a   : > { %v3660_v61 = vadd.f32 %v3638_v55, %v3574_v54 }
 0x35b   : > { %v3809_v53 = vpop.f32.mrf.mxu0 }
 0x35c   : > { %3839 = vrot.lane.b32.xlu1 %v3809_v53, %s4523_s20 }
 0x35f   : > { %v3555_v40 = vpop.f32.mrf.mxu2 }
 0x360   : > { %v3641_v47 = vpop.f32.mrf.mxu3  ;;  %v3472_v16 = vpop.f32.mrf.mxu1  ;;  %v3575_v21 = vadd.f32 %v3555_v40, %v3489_v20 }
 0x361   : > { %v3490_v58 = vadd.f32 %v3472_v16, %v6267_v12 }
 0x362   : > { %v3661_v32 = vadd.f32 %v3641_v47, %v3575_v21 }
 0x363   : > { %v3812_v31 = vpop.f32.mrf.mxu0 }
 0x364   : > { %3841 = vrot.lane.b32.xlu1 %v3812_v31, %s4523_s20 }
 0x367   : > { %v3558_v0 = vpop.f32.mrf.mxu2 }
 0x368   : > { %v3644_v6 = vpop.f32.mrf.mxu3  ;;  %v3475_v44 = vpop.f32.mrf.mxu1  ;;  %v3576_v56 = vadd.f32 %v3558_v0, %v3490_v58 }
 0x369   : > { %v3491_v14 = vadd.f32 %v3475_v44, %v3405_v22 }
 0x36a   : > { %v3662_v50 = vadd.f32 %v3644_v6, %v3576_v56 }
 0x36b   : > { %v3815_v1 = vpop.f32.mrf.mxu0 }
 0x36c   : > { %3843 = vrot.lane.b32.xlu2 %v3815_v1, %s4523_s20 }
 0x36f   : > { %v3561_v34 = vpop.f32.mrf.mxu2 }
 0x370   : > { %v3577_v7 = vadd.f32 %v3561_v34, %v3491_v14  ;;  %v3647_v62 = vpop.f32.mrf.mxu3  ;;  %v3478_v9 = vpop.f32.mrf.mxu1 }
 0x371   : > { %v3492_v11 = vadd.f32 %v3478_v9, %v6271_v10 }
 0x372   : > { %v3663_v41 = vadd.f32 %v3647_v62, %v3577_v7 }
 0x373   : > { %v3818_v52 = vpop.f32.mrf.mxu0 }
 0x374   : > { %3845 = vrot.lane.b32.xlu2 %v3818_v52, %s4523_s20 }
 0x377   : > { %v3564_v23 = vpop.f32.mrf.mxu2 }
 0x378   : > { %v3578_v46 = vadd.f32 %v3564_v23, %v3492_v11  ;;  %v3650_v2 = vpop.f32.mrf.mxu3  ;;  %v3481_v5 = vpop.f32.mrf.mxu1 }
 0x379   : > { %v3493_v51 = vadd.f32 %v3481_v5, %v6273_v37 }
 0x37a   : > { %v3664_v57 = vadd.f32 %v3650_v2, %v3578_v46 }
 0x37b   : > { %v3821_v26 = vpop.f32.mrf.mxu0 }
 0x37c   : > { %3847 = vrot.lane.b32.xlu0 %v3821_v26, %s4523_s20 }
 0x37f   : > { %v3567_v15 = vpop.f32.mrf.mxu2 }
 0x380   : > { %v3653_v55 = vpop.f32.mrf.mxu3  ;;  %v3579_v48 = vadd.f32 %v3567_v15, %v3493_v51  ;;  %v3484_v40 = vpop.f32.mrf.mxu1 }
 0x381   : > { %v3494_v33 = vadd.f32 %v3484_v40, %v6275_v25 }
 0x382   : > { %v3665_v47 = vadd.f32 %v3653_v55, %v3579_v48 }
 0x383   : > { %v3824_v17 = vpop.f32.mrf.mxu0 }
 0x384   : > { %3849 = vrot.lane.b32.xlu1 %v3824_v17, %s4523_s20 }
 0x387   : > { %v3570_v16 = vpop.f32.mrf.mxu2 }
 0x388   : > { %v3580_v34 = vadd.f32 %v3570_v16, %v3494_v33 }
 0x3be   : > { %v3836_v36 = vpop.permute.xlu0 %3835 }
 0x3bf   : > { %v3860_v30 = vsel %vm3859_vm7, %v3659_v49, %v3836_v36  ;;  %v3656_v49 = vpop.f32.mrf.mxu3 }
 0x3c0   : > { %3868 = vst [vmem:[%s6283_s25] sm:$0xff] %v3860_v30  ;;  %v3889_v18 = vmul.f32 %v3860_v30, %v3860_v30  ;;  %v3666_v43 = vadd.f32 %v3656_v49, %v3580_v34 }
 0x3c6   : > { %v3838_v59 = vpop.permute.xlu0 %3837  ;;  %v3844_v8 = vpop.permute.xlu2 %3843 }
 0x3c7   : > { %v3861_v3 = vsel %vm3859_vm7, %v3660_v61, %v3838_v59  ;;  %v3864_v22 = vsel %vm3859_vm7, %v3663_v41, %v3844_v8 }
 0x3c8   : > { %3869 = vst [vmem:[%s6283_s25 + $0x8] sm:$0xff] %v3861_v3  ;;  %v3876_v35 = vadd.f32 %v3861_v3, %v3860_v30  ;;  %v3890_v13 = vmul.f32 %v3861_v3, %v3861_v3  ;;  %v3893_v1 = vmul.f32 %v3864_v22, %v3864_v22 }
 0x3c9   : > { %3872 = vst [vmem:[%s6283_s25 + $0x20] sm:$0xff] %v3864_v22 }
 0x3ca   : > { %v3897_v19 = vadd.f32 %v3890_v13, %v3889_v18 }
 0x3ce   : > { %v3840_v4 = vpop.permute.xlu1 %3839  ;;  %v3846_v10 = vpop.permute.xlu2 %3845 }
 0x3cf   : > { %v3862_v60 = vsel %vm3859_vm7, %v3661_v32, %v3840_v4  ;;  %v3865_v24 = vsel %vm3859_vm7, %v3664_v57, %v3846_v10 }
 0x3d0   : > { %3870 = vst [vmem:[%s6283_s25 + $0x10] sm:$0xff] %v3862_v60  ;;  %v3877_v38 = vadd.f32 %v3876_v35, %v3862_v60  ;;  %v3891_v28 = vmul.f32 %v3862_v60, %v3862_v60  ;;  %v3894_v26 = vmul.f32 %v3865_v24, %v3865_v24 }
 0x3d1   : > { %3873 = vst [vmem:[%s6283_s25 + $0x28] sm:$0xff] %v3865_v24 }
 0x3d2   : > { %v3898_v39 = vadd.f32 %v3897_v19, %v3891_v28 }
 0x3d6   : > { %v3842_v27 = vpop.permute.xlu1 %3841 }
 0x3d7   : > { %v3863_v63 = vsel %vm3859_vm7, %v3662_v50, %v3842_v27 }
 0x3d8   : > { %3871 = vst [vmem:[%s6283_s25 + $0x18] sm:$0xff] %v3863_v63  ;;  %v3878_v53 = vadd.f32 %v3877_v38, %v3863_v63  ;;  %v3892_v31 = vmul.f32 %v3863_v63, %v3863_v63 }
 0x3da   : > { %v3879_v52 = vadd.f32 %v3878_v53, %v3864_v22  ;;  %v3899_v12 = vadd.f32 %v3898_v39, %v3892_v31 }
 0x3dc   : > { %v3900_v17 = vadd.f32 %v3899_v12, %v3893_v1  ;;  %v3880_v29 = vadd.f32 %v3879_v52, %v3865_v24 }
 0x3de   : > { %v3901_v45 = vadd.f32 %v3900_v17, %v3894_v26 }
 0x3ee   : > { %v3848_v0 = vpop.permute.xlu0 %3847 }
 0x3ef   : > { %v3866_v6 = vsel %vm3859_vm7, %v3665_v47, %v3848_v0 }
 0x3f0   : > { %3874 = vst [vmem:[%s6283_s25 + $0x30] sm:$0xff] %v3866_v6  ;;  %v3881_v42 = vadd.f32 %v3880_v29, %v3866_v6  ;;  %v3895_v44 = vmul.f32 %v3866_v6, %v3866_v6 }
 0x3f2   : > { %v3902_v36 = vadd.f32 %v3901_v45, %v3895_v44 }
 0x3f6   : > { %v3850_v37 = vpop.permute.xlu1 %3849 }
 0x3f7   : > { %v3867_v14 = vsel %vm3859_vm7, %v3666_v43, %v3850_v37 }
 0x3f8   : > { %3875 = vst [vmem:[%s6283_s25 + $0x38] sm:$0xff] %v3867_v14  ;;  %v3882_v30 = vadd.f32 %v3881_v42, %v3867_v14  ;;  %v3896_v54 = vmul.f32 %v3867_v14, %v3867_v14 }
 0x3fa   : > { %v3883_v7 = vrot.slane %v3882_v30, 4  ;;  %v3903_v62 = vadd.f32 %v3902_v36, %v3896_v54 }
 0x3fc   : > { %v3884_v9 = vadd.f32 %v3883_v7, %v3882_v30  ;;  %v3904_v25 = vrot.slane %v3903_v62, 4 }
 0x3fe   : > { %v3885_v61 = vrot.slane %v3884_v9, 2  ;;  %v3905_v41 = vadd.f32 %v3904_v25, %v3903_v62 }
 0x400   : > { %v3886_v23 = vadd.f32 %v3885_v61, %v3884_v9  ;;  %v3906_v59 = vrot.slane %v3905_v41, 2 }
 0x402   : > { %v3887_v8 = vrot.slane %v3886_v23, 1  ;;  %v3907_v20 = vadd.f32 %v3906_v59, %v3905_v41 }
 0x404   : > { %v3908_v11 = vrot.slane %v3907_v20, 1  ;;  %v3888_v3 = vadd.f32 %v3887_v8, %v3886_v23 }
 0x406   : > { %v3909_v22 = vadd.f32 %v3908_v11, %v3907_v20 }
 0x408   : > { %v3911_v18 = vsel %vm3910_vm8, %v3888_v3, %v3909_v22 }
 0x409   : > { %3912 = vst [vmem:[%s235_s28] sm:$0x3] %v3911_v18 }
 0x40a PF: > { %s16_s18 = sadd.s32 1, %s4520_s18  }
 0x40b   : > { %p13_p4 = scmp.ge.s32.totalorder %s16_s18, 4  }
 0x40d   :  { %15 = sbr.rel (!%p13_p4) target bundleno = 1 (0x1), region = 116 }

</bundles_post_ra>
